<compile_context>
chip_gen: v6e
topology: v6e:2x2x1
jax: 0.10.0
libtpu: 0.0.40
codegen_flags: <defaults>
</compile_context>

<pallas_src>
import functools
import math

import jax
import jax.numpy as jnp
from jax.experimental import pallas as pl
from jax.experimental.pallas import tpu as pltpu


# ---------------------------------------------------------------------------
# helpers used inside the kernel
# ---------------------------------------------------------------------------
def _layer_norm(x, gamma, beta, eps=1e-6):
    # torch.nn.LayerNorm: biased variance, eps inside sqrt
    mean = jnp.mean(x, axis=-1, keepdims=True)
    var = jnp.mean(jnp.square(x - mean), axis=-1, keepdims=True)
    return (x - mean) * jax.lax.rsqrt(var + eps) * gamma + beta


def _gelu(x):
    # PreSumm's tanh-approximation gelu
    return 0.5 * x * (1.0 + jnp.tanh(math.sqrt(2.0 / math.pi)
                                     * (x + 0.044715 * x * x * x)))


# ---------------------------------------------------------------------------
# Pallas kernel: one query tile of one batch element, full encoder layer
# ---------------------------------------------------------------------------
def encoder_layer_kernel(xh_ref, xq_ref, maskb_ref,
                         g1_ref, b1_ref,
                         wq_ref, bq_ref, wk_ref, bk_ref, wv_ref, bv_ref,
                         wo_ref, bo_ref,
                         g2_ref, b2_ref,
                         w1_ref, bf1_ref, w2_ref, bf2_ref,
                         out_ref,
                         kh_scr, vh_scr, bias_scr,
                         *, heads, apply_pre_ln, q_tile, k_tile):
    S = xh_ref.shape[1]
    D = xh_ref.shape[2]
    dh = D // heads
    n_k = S // k_tile

    # ---- fill the per-batch K/V (+ mask-bias) VMEM cache on the first q tile ----
    @pl.when(pl.program_id(1) == 0)
    def _fill_kv_cache():
        x_full = xh_ref[0]                               # (S, D) bf16
        if apply_pre_ln:
            xn = _layer_norm(x_full.astype(jnp.float32), g1_ref[...], b1_ref[...])
            xn_bf = xn.astype(jnp.bfloat16)
        else:
            xn_bf = x_full
        k = jnp.dot(xn_bf, wk_ref[...],
                    preferred_element_type=jnp.float32) + bk_ref[...]
        v = jnp.dot(xn_bf, wv_ref[...],
                    preferred_element_type=jnp.float32) + bv_ref[...]
        # head-major bf16 cache: the S-sized head-split relayout happens once
        # per batch element, not once per query tile.
        kh_all = k.astype(jnp.bfloat16).reshape(S, heads, dh).transpose(1, 0, 2)
        vh_all = v.astype(jnp.bfloat16).reshape(S, heads, dh).transpose(1, 0, 2)
        mb = maskb_ref[0]                                # (1, S) additive bias
        for c in range(n_k):                             # static unroll (fill runs once per b)
            sl = slice(c * k_tile, (c + 1) * k_tile)
            kh_scr[c] = kh_all[:, sl, :]
            vh_scr[c] = vh_all[:, sl, :]
            bias_scr[c] = mb[:, sl]

    # ---- per-query-tile work ----
    x_q = xq_ref[0]                                      # (TQ, D) f32 (residual path)
    xn_q = _layer_norm(x_q, g1_ref[...], b1_ref[...]) if apply_pre_ln else x_q
    # wq / bq are pre-scaled by 1/sqrt(dh) in the wrapper.
    q = jnp.dot(xn_q.astype(jnp.bfloat16), wq_ref[...],
                preferred_element_type=jnp.float32) + bq_ref[...]
    qh = q.astype(jnp.bfloat16).reshape(q_tile, heads, dh).transpose(1, 0, 2)  # (H,TQ,dh)

    # ---- flash-style attention over cached key/value chunks (online softmax) ----
    def kv_step(ki, carry):
        m_prev, l_prev, acc_prev = carry
        kh = kh_scr[ki]                                  # (H, TK, dh) bf16
        vh = vh_scr[ki]
        s = jnp.einsum('hqd,hkd->hqk', qh, kh,
                       preferred_element_type=jnp.float32)          # (H, TQ, TK)
        s = s + bias_scr[ki][None]                       # additive key-padding bias
        m_cur = jnp.max(s, axis=-1, keepdims=True)
        m_new = jnp.maximum(m_prev, m_cur)
        alpha = jnp.exp(m_prev - m_new)
        p = jnp.exp(s - m_new)
        l_new = alpha * l_prev + jnp.sum(p, axis=-1, keepdims=True)
        acc_new = alpha * acc_prev + jnp.einsum(
            'hqk,hkd->hqd', p.astype(jnp.bfloat16), vh,
            preferred_element_type=jnp.float32)
        return m_new, l_new, acc_new

    init = (jnp.full((heads, q_tile, 1), -1e30, jnp.float32),
            jnp.zeros((heads, q_tile, 1), jnp.float32),
            jnp.zeros((heads, q_tile, dh), jnp.float32))
    if n_k == 1:
        _, l_f, acc = kv_step(0, init)
    else:
        _, l_f, acc = jax.lax.fori_loop(0, n_k, kv_step, init, unroll=(n_k <= 4))

    ctx = acc * pl.reciprocal(l_f, approx=False)         # exact: rows sum to 1
    ctx = ctx.transpose(1, 0, 2).reshape(q_tile, D)      # small (TQ, D) relayout

    # ---- output projection + residual (residual path stays f32) ----
    ctx = jnp.dot(ctx.astype(jnp.bfloat16), wo_ref[...],
                  preferred_element_type=jnp.float32) + bo_ref[...]
    out1 = ctx + x_q                                     # dropout == identity

    # ---- position-wise feed-forward (LN -> W1 -> gelu -> W2 -> +residual) ----
    xn2 = _layer_norm(out1, g2_ref[...], b2_ref[...])
    inter = _gelu(jnp.dot(xn2.astype(jnp.bfloat16), w1_ref[...],
                          preferred_element_type=jnp.float32) + bf1_ref[...])
    ff = jnp.dot(inter.astype(jnp.bfloat16), w2_ref[...],
                 preferred_element_type=jnp.float32) + bf2_ref[...]
    out_ref[0] = ff + out1


# ---------------------------------------------------------------------------
# wrapper
# ---------------------------------------------------------------------------
def _physical_vmem_bytes():
    try:
        return int(pltpu.get_tpu_info().vmem_capacity_bytes)
    except Exception:
        return 64 * 1024 * 1024          # conservative (v7x-sized) fallback


def _pick_tile(S, target):
    """Largest divisor of S <= target, preferring multiples of 128, then 16, then 8."""
    if S <= target:
        return S
    for step in (128, 16, 8):
        t = (min(target, S) // step) * step
        while t >= step:
            if S % t == 0:
                return t
            t -= step
    return S


def transformer_encoder_layer(it, query, inputs, mask, params, *, heads,
                              q_tile=None, k_tile=None):
    """Matches torch forward(iter, query, inputs, mask).  `query` is accepted but
    unused (the torch module ignores it too).  `it` must be a static Python int:
    it selects the pre-attention LayerNorm branch at trace time."""
    del query
    B, S, D = inputs.shape
    assert D % heads == 0
    dh = D // heads
    d_ff = params["w1"].shape[1]
    apply_pre_ln = bool(it != 0)

    phys_vmem = _physical_vmem_bytes()
    big_vmem = phys_vmem >= 100 * 1024 * 1024            # 128-MiB parts (v5e / v6e)
    if q_tile is None:
        q_tile = _pick_tile(S, 512 if big_vmem else 256)
    if k_tile is None:
        k_tile = _pick_tile(S, 512)
    assert S % q_tile == 0 and S % k_tile == 0
    n_q = S // q_tile
    n_k = S // k_tile

    f32 = lambda a: jnp.asarray(a, jnp.float32)
    bf16 = lambda a: jnp.asarray(a, jnp.bfloat16)

    scale = jnp.float32(1.0 / math.sqrt(dh))
    inputs_f32 = f32(inputs)
    inputs_bf = bf16(inputs)                             # K/V source (full sequence)
    # additive key-padding bias, computed once host-side (1.0 in mask => padded key)
    mask_bias = jnp.where(f32(mask) > 0.5, jnp.float32(-1e18),
                          jnp.float32(0.0)).reshape(B, 1, S)

    args = (
        inputs_bf, inputs_f32, mask_bias,
        f32(params["g1"]), f32(params["b1"]),
        bf16(f32(params["wq"]) * scale), f32(params["bq"]) * scale,  # fold 1/sqrt(dh)
        bf16(params["wk"]), f32(params["bk"]),
        bf16(params["wv"]), f32(params["bv"]),
        bf16(params["wo"]), f32(params["bo"]),
        f32(params["g2"]), f32(params["b2"]),
        bf16(params["w1"]), f32(params["bf1"]),
        bf16(params["w2"]), f32(params["bf2"]),
    )

    kern = functools.partial(encoder_layer_kernel, heads=heads,
                             apply_pre_ln=apply_pre_ln,
                             q_tile=q_tile, k_tile=k_tile)

    def _vmem_limit(weight_bufs):
        dpad = max(dh, 128)
        kpad = ((k_tile + 15) // 16) * 16
        est = (weight_bufs * 2 * (4 * D * D + 2 * D * d_ff)      # bf16 weights
               + 2 * 4 * (8 * D + d_ff)                          # biases / LN params
               + 2 * 2 * S * D                                   # bf16 full-seq block x2
               + 2 * 4 * q_tile * D * 2                          # f32 q block + out block x2
               + 2 * 4 * S                                       # mask-bias block x2
               + 2 * 2 * n_k * heads * kpad * dpad               # K/V VMEM cache (bf16)
               + 4 * n_k * 8 * max(k_tile, 128)                  # mask-bias chunks
               + 4 * (3 * S * D                                  # cache-fill f32 temporaries
                      + 4 * heads * q_tile * k_tile              # scores / probs
                      + 2 * heads * q_tile * (dh + 2)            # acc / m / l
                      + 2 * q_tile * d_ff                        # FFN intermediate
                      + 8 * q_tile * D))                         # misc per-tile f32 temps
        cap = int(phys_vmem * 0.78)                              # headroom for Mosaic scratch
        return int(min(max(int(est * 1.5), 32 * 1024 * 1024), cap))

    def build(single_buffer_weights):
        def rep(shape):                                  # grid-invariant weights / biases
            nd = len(shape)
            kwargs = {}
            if single_buffer_weights:
                # constant index_map => double buffering buys nothing; halve weight VMEM
                kwargs["pipeline_mode"] = pl.Buffered(1)
            return pl.BlockSpec(shape, lambda b, qi: (0,) * nd, **kwargs)

        in_specs = [
            pl.BlockSpec((1, S, D), lambda b, qi: (b, 0, 0)),        # inputs bf16 (K/V src)
            pl.BlockSpec((1, q_tile, D), lambda b, qi: (b, qi, 0)),  # inputs f32 (Q/residual)
            pl.BlockSpec((1, 1, S), lambda b, qi: (b, 0, 0)),        # key-padding bias
            rep((1, D)), rep((1, D)),                                # g1, b1
            rep((D, D)), rep((1, D)),                                # wq, bq
            rep((D, D)), rep((1, D)),                                # wk, bk
            rep((D, D)), rep((1, D)),                                # wv, bv
            rep((D, D)), rep((1, D)),                                # wo, bo
            rep((1, D)), rep((1, D)),                                # g2, b2
            rep((D, d_ff)), rep((1, d_ff)),                          # w1, bf1
            rep((d_ff, D)), rep((1, D)),                             # w2, bf2
        ]
        out_specs = pl.BlockSpec((1, q_tile, D), lambda b, qi: (b, qi, 0))
        scratch_shapes = [
            pltpu.VMEM((n_k, heads, k_tile, dh), jnp.bfloat16),      # cached K (head-major)
            pltpu.VMEM((n_k, heads, k_tile, dh), jnp.bfloat16),      # cached V
            pltpu.VMEM((n_k, 1, k_tile), jnp.float32),               # cached mask-bias chunks
        ]
        grid_spec = pltpu.PrefetchScalarGridSpec(
            num_scalar_prefetch=0, grid=(B, n_q),
            in_specs=in_specs, out_specs=out_specs,
            scratch_shapes=scratch_shapes)
        return pl.pallas_call(
            kern,
            out_shape=jax.ShapeDtypeStruct((B, S, D), jnp.float32),
            grid_spec=grid_spec,
            compiler_params=pltpu.CompilerParams(
                # batch axis -> megacore; q-tile axis runs in order (K/V cache reuse)
                dimension_semantics=("parallel", "arbitrary"),
                vmem_limit_bytes=_vmem_limit(1 if single_buffer_weights else 2)),
        )

    try:
        return build(True)(*args)
    except Exception:
        # pl.Buffered(1) not accepted by this jax/Mosaic build -> default buffering.
        return build(False)(*args)


# ---------------------------------------------------------------------------
# pure-JAX reference (for numerical check)
# ---------------------------------------------------------------------------
def reference(it, inputs, mask, p, heads):
    def ln(x, g, b):
        m = x.mean(-1, keepdims=True)
        v = jnp.square(x - m).mean(-1, keepdims=True)
        return (x - m) / jnp.sqrt(v + 1e-6) * g + b

    x = inputs
    B, S, D = x.shape
    dh = D // heads
    xn = ln(x, p["g1"], p["b1"]) if it != 0 else x
    q = xn @ p["wq"] + p["bq"]
    k = xn @ p["wk"] + p["bk"]
    v = xn @ p["wv"] + p["bv"]
    qh = q.reshape(B, S, heads, dh).transpose(0, 2, 1, 3) / math.sqrt(dh)
    kh = k.reshape(B, S, heads, dh).transpose(0, 2, 1, 3)
    vh = v.reshape(B, S, heads, dh).transpose(0, 2, 1, 3)
    sc = jnp.einsum("bhqd,bhkd->bhqk", qh, kh,
                    precision=jax.lax.Precision.HIGHEST)
    sc = jnp.where(mask[:, None, None, :] > 0.5, -1e18, sc)
    at = jax.nn.softmax(sc, axis=-1)
    ctx = jnp.einsum("bhqk,bhkd->bhqd", at, vh,
                     precision=jax.lax.Precision.HIGHEST)
    ctx = ctx.transpose(0, 2, 1, 3).reshape(B, S, D)
    ctx = ctx @ p["wo"] + p["bo"]
    out1 = ctx + x
    xn2 = ln(out1, p["g2"], p["b2"])
    inter = _gelu(xn2 @ p["w1"] + p["bf1"])
    return inter @ p["w2"] + p["bf2"] + out1


# ---------------------------------------------------------------------------
if __name__ == "__main__":
    B, S, D, H, d_ff = 2, 16, 64, 4, 128

    key = jax.random.PRNGKey(0)
    ks = jax.random.split(key, 14)

    def w(k, shape, scale=0.02):
        return (scale * jax.random.normal(k, shape)).astype(jnp.float32)

    params = {
        "g1": jnp.ones((1, D), jnp.float32), "b1": jnp.zeros((1, D), jnp.float32),
        "wq": w(ks[0], (D, D)), "bq": w(ks[1], (1, D)),
        "wk": w(ks[2], (D, D)), "bk": w(ks[3], (1, D)),
        "wv": w(ks[4], (D, D)), "bv": w(ks[5], (1, D)),
        "wo": w(ks[6], (D, D)), "bo": w(ks[7], (1, D)),
        "g2": jnp.ones((1, D), jnp.float32), "b2": jnp.zeros((1, D), jnp.float32),
        "w1": w(ks[8], (D, d_ff)), "bf1": w(ks[9], (1, d_ff)),
        "w2": w(ks[10], (d_ff, D)), "bf2": w(ks[11], (1, D)),
    }

    inputs = jax.random.normal(ks[12], (B, S, D), jnp.float32)
    query = inputs                                   # unused (as in torch code)
    # mask: 1.0 = padded key position (to be masked), 0.0 = real token
    mask = jnp.zeros((B, S), jnp.float32).at[1, S - 3:].set(1.0)

    # (iter, q_tile, k_tile): exercise both pre-LN branches, the multi-q-tile
    # K/V-cache reuse path, the multi-chunk online-softmax path, and the
    # single-tile default path.
    for it, qt, kt in ((0, 8, 8), (1, 8, 8), (1, None, None)):
        out = transformer_encoder_layer(it, query, inputs, mask, params,
                                        heads=H, q_tile=qt, k_tile=kt)
        out = jax.block_until_ready(out)
        ref = reference(it, inputs, mask, params, H)
        assert out.shape == (B, S, D)
        err = float(jnp.max(jnp.abs(out - ref)))
        assert jnp.allclose(out, ref, rtol=1e-2, atol=1e-2), (
            f"mismatch at iter={it}, q_tile={qt}, k_tile={kt}: max abs err {err}")

    print("KERNEL_OK")
</pallas_src>

<mosaic_0001>
module attributes {stable_mosaic.version = 11 : i64} {
  func.func @encoder_layer_kernel(%arg0: i32, %arg1: i32, %arg2: memref<1x16x64xbf16, #tpu.memory_space<vmem>>, %arg3: memref<1x8x64xf32, #tpu.memory_space<vmem>>, %arg4: memref<1x1x16xf32, #tpu.memory_space<vmem>>, %arg5: memref<1x64xf32, #tpu.memory_space<vmem>>, %arg6: memref<1x64xf32, #tpu.memory_space<vmem>>, %arg7: memref<64x64xbf16, #tpu.memory_space<vmem>>, %arg8: memref<1x64xf32, #tpu.memory_space<vmem>>, %arg9: memref<64x64xbf16, #tpu.memory_space<vmem>>, %arg10: memref<1x64xf32, #tpu.memory_space<vmem>>, %arg11: memref<64x64xbf16, #tpu.memory_space<vmem>>, %arg12: memref<1x64xf32, #tpu.memory_space<vmem>>, %arg13: memref<64x64xbf16, #tpu.memory_space<vmem>>, %arg14: memref<1x64xf32, #tpu.memory_space<vmem>>, %arg15: memref<1x64xf32, #tpu.memory_space<vmem>>, %arg16: memref<1x64xf32, #tpu.memory_space<vmem>>, %arg17: memref<64x128xbf16, #tpu.memory_space<vmem>>, %arg18: memref<1x128xf32, #tpu.memory_space<vmem>>, %arg19: memref<128x64xbf16, #tpu.memory_space<vmem>>, %arg20: memref<1x64xf32, #tpu.memory_space<vmem>>, %arg21: memref<1x8x64xf32, #tpu.memory_space<vmem>>, %arg22: memref<2x4x8x16xbf16, #tpu.memory_space<vmem>>, %arg23: memref<2x4x8x16xbf16, #tpu.memory_space<vmem>>, %arg24: memref<2x1x8xf32, #tpu.memory_space<vmem>>) attributes {dimension_semantics = [#tpu.dimension_semantics<parallel>, #tpu.dimension_semantics<arbitrary>], iteration_bounds = array<i64: 2, 2>, scalar_prefetch = 0 : i64, scratch_operands = 3 : i64, tpu.core_type = #tpu.core_type<tc>, window_params = [{transform_indices = @transform_0, window_bounds = array<i64: 1, 16, 64>}, {transform_indices = @transform_1, window_bounds = array<i64: 1, 8, 64>}, {transform_indices = @transform_2, window_bounds = array<i64: 1, 1, 16>}, {pipeline_mode = #tpu.pipeline_mode<synchronous>, transform_indices = @transform_3, window_bounds = array<i64: 1, 64>}, {pipeline_mode = #tpu.pipeline_mode<synchronous>, transform_indices = @transform_4, window_bounds = array<i64: 1, 64>}, {pipeline_mode = #tpu.pipeline_mode<synchronous>, transform_indices = @transform_5, window_bounds = array<i64: 64, 64>}, {pipeline_mode = #tpu.pipeline_mode<synchronous>, transform_indices = @transform_6, window_bounds = array<i64: 1, 64>}, {pipeline_mode = #tpu.pipeline_mode<synchronous>, transform_indices = @transform_7, window_bounds = array<i64: 64, 64>}, {pipeline_mode = #tpu.pipeline_mode<synchronous>, transform_indices = @transform_8, window_bounds = array<i64: 1, 64>}, {pipeline_mode = #tpu.pipeline_mode<synchronous>, transform_indices = @transform_9, window_bounds = array<i64: 64, 64>}, {pipeline_mode = #tpu.pipeline_mode<synchronous>, transform_indices = @transform_10, window_bounds = array<i64: 1, 64>}, {pipeline_mode = #tpu.pipeline_mode<synchronous>, transform_indices = @transform_11, window_bounds = array<i64: 64, 64>}, {pipeline_mode = #tpu.pipeline_mode<synchronous>, transform_indices = @transform_12, window_bounds = array<i64: 1, 64>}, {pipeline_mode = #tpu.pipeline_mode<synchronous>, transform_indices = @transform_13, window_bounds = array<i64: 1, 64>}, {pipeline_mode = #tpu.pipeline_mode<synchronous>, transform_indices = @transform_14, window_bounds = array<i64: 1, 64>}, {pipeline_mode = #tpu.pipeline_mode<synchronous>, transform_indices = @transform_15, window_bounds = array<i64: 64, 128>}, {pipeline_mode = #tpu.pipeline_mode<synchronous>, transform_indices = @transform_16, window_bounds = array<i64: 1, 128>}, {pipeline_mode = #tpu.pipeline_mode<synchronous>, transform_indices = @transform_17, window_bounds = array<i64: 128, 64>}, {pipeline_mode = #tpu.pipeline_mode<synchronous>, transform_indices = @transform_18, window_bounds = array<i64: 1, 64>}, {transform_indices = @transform_19, window_bounds = array<i64: 1, 8, 64>}]} {
    %c0_i32 = arith.constant 0 : i32
    %0 = arith.cmpi eq, %arg1, %c0_i32 : i32
    %1 = arith.extui %0 : i1 to i32
    %c0_i32_0 = arith.constant 0 : i32
    %2 = arith.cmpi ne, %1, %c0_i32_0 : i32
    scf.if %2 {
      %c0_66 = arith.constant 0 : index
      %c0_67 = arith.constant 0 : index
      %c0_68 = arith.constant 0 : index
      %142 = vector.load %arg2[%c0_66, %c0_67, %c0_68] : memref<1x16x64xbf16, #tpu.memory_space<vmem>>, vector<1x16x64xbf16>
      %143 = vector.shape_cast %142 : vector<1x16x64xbf16> to vector<16x64xbf16>
      %c0_69 = arith.constant 0 : index
      %c0_70 = arith.constant 0 : index
      %144 = vector.load %arg9[%c0_69, %c0_70] : memref<64x64xbf16, #tpu.memory_space<vmem>>, vector<64x64xbf16>
      %cst_71 = arith.constant dense<0.000000e+00> : vector<16x64xf32>
      %145 = tpu.matmul %143, %144, %cst_71 {dimension_numbers = #tpu.dot_dimension_numbers<[1], [0], [0], [1], [0, 0, 1, 1], [], []>} : vector<16x64xbf16>, vector<64x64xbf16>, vector<16x64xf32> -> vector<16x64xf32>
      %c0_72 = arith.constant 0 : index
      %c0_73 = arith.constant 0 : index
      %146 = vector.load %arg10[%c0_72, %c0_73] : memref<1x64xf32, #tpu.memory_space<vmem>>, vector<1x64xf32>
      %147 = vector.broadcast %146 : vector<1x64xf32> to vector<16x64xf32>
      %148 = arith.addf %145, %147 : vector<16x64xf32>
      %c0_74 = arith.constant 0 : index
      %c0_75 = arith.constant 0 : index
      %149 = vector.load %arg11[%c0_74, %c0_75] : memref<64x64xbf16, #tpu.memory_space<vmem>>, vector<64x64xbf16>
      %cst_76 = arith.constant dense<0.000000e+00> : vector<16x64xf32>
      %150 = tpu.matmul %143, %149, %cst_76 {dimension_numbers = #tpu.dot_dimension_numbers<[1], [0], [0], [1], [0, 0, 1, 1], [], []>} : vector<16x64xbf16>, vector<64x64xbf16>, vector<16x64xf32> -> vector<16x64xf32>
      %c0_77 = arith.constant 0 : index
      %c0_78 = arith.constant 0 : index
      %151 = vector.load %arg12[%c0_77, %c0_78] : memref<1x64xf32, #tpu.memory_space<vmem>>, vector<1x64xf32>
      %152 = vector.broadcast %151 : vector<1x64xf32> to vector<16x64xf32>
      %153 = arith.addf %150, %152 : vector<16x64xf32>
      %154 = arith.truncf %148 : vector<16x64xf32> to vector<16x64xbf16>
      %155 = vector.shape_cast %154 : vector<16x64xbf16> to vector<16x4x16xbf16>
      %156 = tpu.transpose %155, [1, 0, 2] : vector<16x4x16xbf16> -> vector<4x16x16xbf16>
      %157 = arith.truncf %153 : vector<16x64xf32> to vector<16x64xbf16>
      %158 = vector.shape_cast %157 : vector<16x64xbf16> to vector<16x4x16xbf16>
      %159 = tpu.transpose %158, [1, 0, 2] : vector<16x4x16xbf16> -> vector<4x16x16xbf16>
      %c0_79 = arith.constant 0 : index
      %c0_80 = arith.constant 0 : index
      %c0_81 = arith.constant 0 : index
      %160 = vector.load %arg4[%c0_79, %c0_80, %c0_81] : memref<1x1x16xf32, #tpu.memory_space<vmem>>, vector<1x1x16xf32>
      %161 = vector.shape_cast %160 : vector<1x1x16xf32> to vector<1x16xf32>
      %162 = vector.extract_strided_slice %156 {offsets = [0, 0, 0], sizes = [4, 8, 16], strides = [1, 1, 1]} : vector<4x16x16xbf16> to vector<4x8x16xbf16>
      %c0_82 = arith.constant 0 : index
      %c0_83 = arith.constant 0 : index
      %c0_84 = arith.constant 0 : index
      %c0_85 = arith.constant 0 : index
      %163 = vector.load %arg22[%c0_82, %c0_83, %c0_84, %c0_85] : memref<2x4x8x16xbf16, #tpu.memory_space<vmem>>, vector<1x4x8x16xbf16>
      %164 = vector.shape_cast %163 : vector<1x4x8x16xbf16> to vector<4x8x16xbf16>
      %165 = vector.shape_cast %162 : vector<4x8x16xbf16> to vector<1x4x8x16xbf16>
      tpu.vector_store %arg22[%c0_82, %c0_83, %c0_84, %c0_85], %165 {strides = array<i32>} : memref<2x4x8x16xbf16, #tpu.memory_space<vmem>>, vector<1x4x8x16xbf16>,
      %166 = vector.extract_strided_slice %159 {offsets = [0, 0, 0], sizes = [4, 8, 16], strides = [1, 1, 1]} : vector<4x16x16xbf16> to vector<4x8x16xbf16>
      %c0_86 = arith.constant 0 : index
      %c0_87 = arith.constant 0 : index
      %c0_88 = arith.constant 0 : index
      %c0_89 = arith.constant 0 : index
      %167 = vector.load %arg23[%c0_86, %c0_87, %c0_88, %c0_89] : memref<2x4x8x16xbf16, #tpu.memory_space<vmem>>, vector<1x4x8x16xbf16>
      %168 = vector.shape_cast %167 : vector<1x4x8x16xbf16> to vector<4x8x16xbf16>
      %169 = vector.shape_cast %166 : vector<4x8x16xbf16> to vector<1x4x8x16xbf16>
      tpu.vector_store %arg23[%c0_86, %c0_87, %c0_88, %c0_89], %169 {strides = array<i32>} : memref<2x4x8x16xbf16, #tpu.memory_space<vmem>>, vector<1x4x8x16xbf16>,
      %170 = vector.extract_strided_slice %161 {offsets = [0, 0], sizes = [1, 8], strides = [1, 1]} : vector<1x16xf32> to vector<1x8xf32>
      %c0_90 = arith.constant 0 : index
      %c0_91 = arith.constant 0 : index
      %c0_92 = arith.constant 0 : index
      %171 = vector.load %arg24[%c0_90, %c0_91, %c0_92] : memref<2x1x8xf32, #tpu.memory_space<vmem>>, vector<1x1x8xf32>
      %172 = vector.shape_cast %171 : vector<1x1x8xf32> to vector<1x8xf32>
      %173 = vector.shape_cast %170 : vector<1x8xf32> to vector<1x1x8xf32>
      tpu.vector_store %arg24[%c0_90, %c0_91, %c0_92], %173 {strides = array<i32>} : memref<2x1x8xf32, #tpu.memory_space<vmem>>, vector<1x1x8xf32>,
      %174 = vector.extract_strided_slice %156 {offsets = [0, 8, 0], sizes = [4, 8, 16], strides = [1, 1, 1]} : vector<4x16x16xbf16> to vector<4x8x16xbf16>
      %c1 = arith.constant 1 : index
      %c0_93 = arith.constant 0 : index
      %c0_94 = arith.constant 0 : index
      %c0_95 = arith.constant 0 : index
      %175 = vector.load %arg22[%c1, %c0_93, %c0_94, %c0_95] : memref<2x4x8x16xbf16, #tpu.memory_space<vmem>>, vector<1x4x8x16xbf16>
      %176 = vector.shape_cast %175 : vector<1x4x8x16xbf16> to vector<4x8x16xbf16>
      %177 = vector.shape_cast %174 : vector<4x8x16xbf16> to vector<1x4x8x16xbf16>
      tpu.vector_store %arg22[%c1, %c0_93, %c0_94, %c0_95], %177 {strides = array<i32>} : memref<2x4x8x16xbf16, #tpu.memory_space<vmem>>, vector<1x4x8x16xbf16>,
      %178 = vector.extract_strided_slice %159 {offsets = [0, 8, 0], sizes = [4, 8, 16], strides = [1, 1, 1]} : vector<4x16x16xbf16> to vector<4x8x16xbf16>
      %c1_96 = arith.constant 1 : index
      %c0_97 = arith.constant 0 : index
      %c0_98 = arith.constant 0 : index
      %c0_99 = arith.constant 0 : index
      %179 = vector.load %arg23[%c1_96, %c0_97, %c0_98, %c0_99] : memref<2x4x8x16xbf16, #tpu.memory_space<vmem>>, vector<1x4x8x16xbf16>
      %180 = vector.shape_cast %179 : vector<1x4x8x16xbf16> to vector<4x8x16xbf16>
      %181 = vector.shape_cast %178 : vector<4x8x16xbf16> to vector<1x4x8x16xbf16>
      tpu.vector_store %arg23[%c1_96, %c0_97, %c0_98, %c0_99], %181 {strides = array<i32>} : memref<2x4x8x16xbf16, #tpu.memory_space<vmem>>, vector<1x4x8x16xbf16>,
      %182 = vector.extract_strided_slice %161 {offsets = [0, 8], sizes = [1, 8], strides = [1, 1]} : vector<1x16xf32> to vector<1x8xf32>
      %c1_100 = arith.constant 1 : index
      %c0_101 = arith.constant 0 : index
      %c0_102 = arith.constant 0 : index
      %183 = vector.load %arg24[%c1_100, %c0_101, %c0_102] : memref<2x1x8xf32, #tpu.memory_space<vmem>>, vector<1x1x8xf32>
      %184 = vector.shape_cast %183 : vector<1x1x8xf32> to vector<1x8xf32>
      %185 = vector.shape_cast %182 : vector<1x8xf32> to vector<1x1x8xf32>
      tpu.vector_store %arg24[%c1_100, %c0_101, %c0_102], %185 {strides = array<i32>} : memref<2x1x8xf32, #tpu.memory_space<vmem>>, vector<1x1x8xf32>,
    } else {
    }
    %c0 = arith.constant 0 : index
    %c0_1 = arith.constant 0 : index
    %c0_2 = arith.constant 0 : index
    %3 = vector.load %arg3[%c0, %c0_1, %c0_2] : memref<1x8x64xf32, #tpu.memory_space<vmem>>, vector<1x8x64xf32>
    %4 = vector.shape_cast %3 : vector<1x8x64xf32> to vector<8x64xf32>
    %5 = arith.truncf %4 : vector<8x64xf32> to vector<8x64xbf16>
    %c0_3 = arith.constant 0 : index
    %c0_4 = arith.constant 0 : index
    %6 = vector.load %arg7[%c0_3, %c0_4] : memref<64x64xbf16, #tpu.memory_space<vmem>>, vector<64x64xbf16>
    %cst = arith.constant dense<0.000000e+00> : vector<8x64xf32>
    %7 = tpu.matmul %5, %6, %cst {dimension_numbers = #tpu.dot_dimension_numbers<[1], [0], [0], [1], [0, 0, 1, 1], [], []>} : vector<8x64xbf16>, vector<64x64xbf16>, vector<8x64xf32> -> vector<8x64xf32>
    %c0_5 = arith.constant 0 : index
    %c0_6 = arith.constant 0 : index
    %8 = vector.load %arg8[%c0_5, %c0_6] : memref<1x64xf32, #tpu.memory_space<vmem>>, vector<1x64xf32>
    %9 = vector.broadcast %8 : vector<1x64xf32> to vector<8x64xf32>
    %10 = arith.addf %7, %9 : vector<8x64xf32>
    %11 = arith.truncf %10 : vector<8x64xf32> to vector<8x64xbf16>
    %12 = vector.shape_cast %11 : vector<8x64xbf16> to vector<8x4x16xbf16>
    %13 = tpu.transpose %12, [1, 0, 2] : vector<8x4x16xbf16> -> vector<4x8x16xbf16>
    %cst_7 = arith.constant -1.000000e+30 : f32
    %14 = vector.broadcast %cst_7 : f32 to vector<4x8x1xf32>
    %cst_8 = arith.constant 0.000000e+00 : f32
    %15 = vector.broadcast %cst_8 : f32 to vector<4x8x1xf32>
    %cst_9 = arith.constant 0.000000e+00 : f32
    %16 = vector.broadcast %cst_9 : f32 to vector<4x8x16xf32>
    %c0_i32_10 = arith.constant 0 : i32
    %17 = arith.index_cast %c0_i32_10 : i32 to index
    %c0_11 = arith.constant 0 : index
    %c0_12 = arith.constant 0 : index
    %c0_13 = arith.constant 0 : index
    %18 = vector.load %arg22[%17, %c0_11, %c0_12, %c0_13] : memref<2x4x8x16xbf16, #tpu.memory_space<vmem>>, vector<1x4x8x16xbf16>
    %19 = vector.shape_cast %18 : vector<1x4x8x16xbf16> to vector<4x8x16xbf16>
    %20 = arith.index_cast %c0_i32_10 : i32 to index
    %c0_14 = arith.constant 0 : index
    %c0_15 = arith.constant 0 : index
    %c0_16 = arith.constant 0 : index
    %21 = vector.load %arg23[%20, %c0_14, %c0_15, %c0_16] : memref<2x4x8x16xbf16, #tpu.memory_space<vmem>>, vector<1x4x8x16xbf16>
    %22 = vector.shape_cast %21 : vector<1x4x8x16xbf16> to vector<4x8x16xbf16>
    "tpu.trace_start"() <{level = 10 : i32, message = "hqd,hkd->hqk"}> : () -> ()
    %cst_17 = arith.constant dense<0.000000e+00> : vector<4x8x8xf32>
    %23 = tpu.matmul %13, %19, %cst_17 {dimension_numbers = #tpu.dot_dimension_numbers<[2], [2], [1], [1], [0, 0, 0, 1, 1, 1], [0], [0]>} : vector<4x8x16xbf16>, vector<4x8x16xbf16>, vector<4x8x8xf32> -> vector<4x8x8xf32>
    "tpu.trace_stop"() : () -> ()
    %24 = arith.index_cast %c0_i32_10 : i32 to index
    %c0_18 = arith.constant 0 : index
    %c0_19 = arith.constant 0 : index
    %25 = vector.load %arg24[%24, %c0_18, %c0_19] : memref<2x1x8xf32, #tpu.memory_space<vmem>>, vector<1x1x8xf32>
    %26 = vector.shape_cast %25 : vector<1x1x8xf32> to vector<1x8xf32>
    %27 = vector.shape_cast %26 : vector<1x8xf32> to vector<1x1x8xf32>
    %28 = vector.broadcast %27 : vector<1x1x8xf32> to vector<4x8x8xf32>
    %29 = arith.addf %23, %28 : vector<4x8x8xf32>
    %cst_20 = arith.constant dense<0xFF800000> : vector<4x8xf32>
    %30 = vector.multi_reduction <maximumf>, %29, %cst_20 [2] : vector<4x8x8xf32> to vector<4x8xf32>
    %31 = vector.shape_cast %30 : vector<4x8xf32> to vector<4x8x1xf32>
    %32 = arith.maximumf %14, %31 : vector<4x8x1xf32>
    %33 = arith.subf %14, %32 : vector<4x8x1xf32>
    %34 = math.exp %33 : vector<4x8x1xf32>
    %35 = vector.broadcast %32 : vector<4x8x1xf32> to vector<4x8x8xf32>
    %36 = arith.subf %29, %35 : vector<4x8x8xf32>
    %37 = math.exp %36 : vector<4x8x8xf32>
    %38 = arith.mulf %34, %15 : vector<4x8x1xf32>
    %cst_21 = arith.constant dense<0.000000e+00> : vector<4x8xf32>
    %39 = vector.multi_reduction <add>, %37, %cst_21 [2] : vector<4x8x8xf32> to vector<4x8xf32>
    %40 = vector.shape_cast %39 : vector<4x8xf32> to vector<4x8x1xf32>
    %41 = arith.addf %38, %40 : vector<4x8x1xf32>
    %42 = vector.broadcast %34 : vector<4x8x1xf32> to vector<4x8x16xf32>
    %43 = arith.mulf %42, %16 : vector<4x8x16xf32>
    %44 = arith.truncf %37 : vector<4x8x8xf32> to vector<4x8x8xbf16>
    "tpu.trace_start"() <{level = 10 : i32, message = "hqk,hkd->hqd"}> : () -> ()
    %cst_22 = arith.constant dense<0.000000e+00> : vector<4x8x16xf32>
    %45 = tpu.matmul %44, %22, %cst_22 {dimension_numbers = #tpu.dot_dimension_numbers<[2], [1], [1], [2], [0, 0, 0, 1, 1, 2], [0], [0]>} : vector<4x8x8xbf16>, vector<4x8x16xbf16>, vector<4x8x16xf32> -> vector<4x8x16xf32>
    "tpu.trace_stop"() : () -> ()
    %46 = arith.addf %43, %45 : vector<4x8x16xf32>
    %c1_i32 = arith.constant 1 : i32
    %47 = arith.index_cast %c1_i32 : i32 to index
    %c0_23 = arith.constant 0 : index
    %c0_24 = arith.constant 0 : index
    %c0_25 = arith.constant 0 : index
    %48 = vector.load %arg22[%47, %c0_23, %c0_24, %c0_25] : memref<2x4x8x16xbf16, #tpu.memory_space<vmem>>, vector<1x4x8x16xbf16>
    %49 = vector.shape_cast %48 : vector<1x4x8x16xbf16> to vector<4x8x16xbf16>
    %50 = arith.index_cast %c1_i32 : i32 to index
    %c0_26 = arith.constant 0 : index
    %c0_27 = arith.constant 0 : index
    %c0_28 = arith.constant 0 : index
    %51 = vector.load %arg23[%50, %c0_26, %c0_27, %c0_28] : memref<2x4x8x16xbf16, #tpu.memory_space<vmem>>, vector<1x4x8x16xbf16>
    %52 = vector.shape_cast %51 : vector<1x4x8x16xbf16> to vector<4x8x16xbf16>
    "tpu.trace_start"() <{level = 10 : i32, message = "hqd,hkd->hqk"}> : () -> ()
    %cst_29 = arith.constant dense<0.000000e+00> : vector<4x8x8xf32>
    %53 = tpu.matmul %13, %49, %cst_29 {dimension_numbers = #tpu.dot_dimension_numbers<[2], [2], [1], [1], [0, 0, 0, 1, 1, 1], [0], [0]>} : vector<4x8x16xbf16>, vector<4x8x16xbf16>, vector<4x8x8xf32> -> vector<4x8x8xf32>
    "tpu.trace_stop"() : () -> ()
    %54 = arith.index_cast %c1_i32 : i32 to index
    %c0_30 = arith.constant 0 : index
    %c0_31 = arith.constant 0 : index
    %55 = vector.load %arg24[%54, %c0_30, %c0_31] : memref<2x1x8xf32, #tpu.memory_space<vmem>>, vector<1x1x8xf32>
    %56 = vector.shape_cast %55 : vector<1x1x8xf32> to vector<1x8xf32>
    %57 = vector.shape_cast %56 : vector<1x8xf32> to vector<1x1x8xf32>
    %58 = vector.broadcast %57 : vector<1x1x8xf32> to vector<4x8x8xf32>
    %59 = arith.addf %53, %58 : vector<4x8x8xf32>
    %cst_32 = arith.constant dense<0xFF800000> : vector<4x8xf32>
    %60 = vector.multi_reduction <maximumf>, %59, %cst_32 [2] : vector<4x8x8xf32> to vector<4x8xf32>
    %61 = vector.shape_cast %60 : vector<4x8xf32> to vector<4x8x1xf32>
    %62 = arith.maximumf %32, %61 : vector<4x8x1xf32>
    %63 = arith.subf %32, %62 : vector<4x8x1xf32>
    %64 = math.exp %63 : vector<4x8x1xf32>
    %65 = vector.broadcast %62 : vector<4x8x1xf32> to vector<4x8x8xf32>
    %66 = arith.subf %59, %65 : vector<4x8x8xf32>
    %67 = math.exp %66 : vector<4x8x8xf32>
    %68 = arith.mulf %64, %41 : vector<4x8x1xf32>
    %cst_33 = arith.constant dense<0.000000e+00> : vector<4x8xf32>
    %69 = vector.multi_reduction <add>, %67, %cst_33 [2] : vector<4x8x8xf32> to vector<4x8xf32>
    %70 = vector.shape_cast %69 : vector<4x8xf32> to vector<4x8x1xf32>
    %71 = arith.addf %68, %70 : vector<4x8x1xf32>
    %72 = vector.broadcast %64 : vector<4x8x1xf32> to vector<4x8x16xf32>
    %73 = arith.mulf %72, %46 : vector<4x8x16xf32>
    %74 = arith.truncf %67 : vector<4x8x8xf32> to vector<4x8x8xbf16>
    "tpu.trace_start"() <{level = 10 : i32, message = "hqk,hkd->hqd"}> : () -> ()
    %cst_34 = arith.constant dense<0.000000e+00> : vector<4x8x16xf32>
    %75 = tpu.matmul %74, %52, %cst_34 {dimension_numbers = #tpu.dot_dimension_numbers<[2], [1], [1], [2], [0, 0, 0, 1, 1, 2], [0], [0]>} : vector<4x8x8xbf16>, vector<4x8x16xbf16>, vector<4x8x16xf32> -> vector<4x8x16xf32>
    "tpu.trace_stop"() : () -> ()
    %76 = arith.addf %73, %75 : vector<4x8x16xf32>
    %c2_i32 = arith.constant 2 : i32
    %77 = tpu.reciprocal %71 : vector<4x8x1xf32> -> vector<4x8x1xf32>
    %78 = vector.broadcast %77 : vector<4x8x1xf32> to vector<4x8x16xf32>
    %79 = arith.mulf %76, %78 : vector<4x8x16xf32>
    %80 = tpu.transpose %79, [1, 0, 2] : vector<4x8x16xf32> -> vector<8x4x16xf32>
    %81 = vector.shape_cast %80 : vector<8x4x16xf32> to vector<8x64xf32>
    %82 = arith.truncf %81 : vector<8x64xf32> to vector<8x64xbf16>
    %c0_35 = arith.constant 0 : index
    %c0_36 = arith.constant 0 : index
    %83 = vector.load %arg13[%c0_35, %c0_36] : memref<64x64xbf16, #tpu.memory_space<vmem>>, vector<64x64xbf16>
    %cst_37 = arith.constant dense<0.000000e+00> : vector<8x64xf32>
    %84 = tpu.matmul %82, %83, %cst_37 {dimension_numbers = #tpu.dot_dimension_numbers<[1], [0], [0], [1], [0, 0, 1, 1], [], []>} : vector<8x64xbf16>, vector<64x64xbf16>, vector<8x64xf32> -> vector<8x64xf32>
    %c0_38 = arith.constant 0 : index
    %c0_39 = arith.constant 0 : index
    %85 = vector.load %arg14[%c0_38, %c0_39] : memref<1x64xf32, #tpu.memory_space<vmem>>, vector<1x64xf32>
    %86 = vector.broadcast %85 : vector<1x64xf32> to vector<8x64xf32>
    %87 = arith.addf %84, %86 : vector<8x64xf32>
    %88 = arith.addf %87, %4 : vector<8x64xf32>
    %c0_40 = arith.constant 0 : index
    %c0_41 = arith.constant 0 : index
    %89 = vector.load %arg15[%c0_40, %c0_41] : memref<1x64xf32, #tpu.memory_space<vmem>>, vector<1x64xf32>
    %c0_42 = arith.constant 0 : index
    %c0_43 = arith.constant 0 : index
    %90 = vector.load %arg16[%c0_42, %c0_43] : memref<1x64xf32, #tpu.memory_space<vmem>>, vector<1x64xf32>
    %cst_44 = arith.constant dense<0.000000e+00> : vector<8xf32>
    %91 = vector.multi_reduction <add>, %88, %cst_44 [1] : vector<8x64xf32> to vector<8xf32>
    %92 = vector.shape_cast %91 : vector<8xf32> to vector<8x1xf32>
    %cst_45 = arith.constant 6.400000e+01 : f32
    %93 = vector.broadcast %cst_45 : f32 to vector<8x1xf32>
    %94 = arith.divf %92, %93 : vector<8x1xf32>
    %95 = vector.broadcast %94 : vector<8x1xf32> to vector<8x64xf32>
    %96 = arith.subf %88, %95 : vector<8x64xf32>
    %97 = arith.mulf %96, %96 : vector<8x64xf32>
    %cst_46 = arith.constant dense<0.000000e+00> : vector<8xf32>
    %98 = vector.multi_reduction <add>, %97, %cst_46 [1] : vector<8x64xf32> to vector<8xf32>
    %99 = vector.shape_cast %98 : vector<8xf32> to vector<8x1xf32>
    %cst_47 = arith.constant 6.400000e+01 : f32
    %100 = vector.broadcast %cst_47 : f32 to vector<8x1xf32>
    %101 = arith.divf %99, %100 : vector<8x1xf32>
    %102 = vector.broadcast %94 : vector<8x1xf32> to vector<8x64xf32>
    %103 = arith.subf %88, %102 : vector<8x64xf32>
    %cst_48 = arith.constant 9.99999997E-7 : f32
    %104 = vector.broadcast %cst_48 : f32 to vector<8x1xf32>
    %105 = arith.addf %101, %104 : vector<8x1xf32>
    %106 = math.rsqrt %105 : vector<8x1xf32>
    %107 = vector.broadcast %106 : vector<8x1xf32> to vector<8x64xf32>
    %108 = arith.mulf %103, %107 : vector<8x64xf32>
    %109 = vector.broadcast %89 : vector<1x64xf32> to vector<8x64xf32>
    %110 = arith.mulf %108, %109 : vector<8x64xf32>
    %111 = vector.broadcast %90 : vector<1x64xf32> to vector<8x64xf32>
    %112 = arith.addf %110, %111 : vector<8x64xf32>
    %113 = arith.truncf %112 : vector<8x64xf32> to vector<8x64xbf16>
    %c0_49 = arith.constant 0 : index
    %c0_50 = arith.constant 0 : index
    %114 = vector.load %arg17[%c0_49, %c0_50] : memref<64x128xbf16, #tpu.memory_space<vmem>>, vector<64x128xbf16>
    %cst_51 = arith.constant dense<0.000000e+00> : vector<8x128xf32>
    %115 = tpu.matmul %113, %114, %cst_51 {dimension_numbers = #tpu.dot_dimension_numbers<[1], [0], [0], [1], [0, 0, 1, 1], [], []>} : vector<8x64xbf16>, vector<64x128xbf16>, vector<8x128xf32> -> vector<8x128xf32>
    %c0_52 = arith.constant 0 : index
    %c0_53 = arith.constant 0 : index
    %116 = vector.load %arg18[%c0_52, %c0_53] : memref<1x128xf32, #tpu.memory_space<vmem>>, vector<1x128xf32>
    %117 = vector.broadcast %116 : vector<1x128xf32> to vector<8x128xf32>
    %118 = arith.addf %115, %117 : vector<8x128xf32>
    %cst_54 = arith.constant 5.000000e-01 : f32
    %119 = vector.broadcast %cst_54 : f32 to vector<8x128xf32>
    %120 = arith.mulf %119, %118 : vector<8x128xf32>
    %cst_55 = arith.constant 4.471500e-02 : f32
    %121 = vector.broadcast %cst_55 : f32 to vector<8x128xf32>
    %122 = arith.mulf %121, %118 : vector<8x128xf32>
    %123 = arith.mulf %122, %118 : vector<8x128xf32>
    %124 = arith.mulf %123, %118 : vector<8x128xf32>
    %125 = arith.addf %118, %124 : vector<8x128xf32>
    %cst_56 = arith.constant 0.797884583 : f32
    %126 = vector.broadcast %cst_56 : f32 to vector<8x128xf32>
    %127 = arith.mulf %126, %125 : vector<8x128xf32>
    %128 = math.tanh %127 : vector<8x128xf32>
    %cst_57 = arith.constant 1.000000e+00 : f32
    %129 = vector.broadcast %cst_57 : f32 to vector<8x128xf32>
    %130 = arith.addf %129, %128 : vector<8x128xf32>
    %131 = arith.mulf %120, %130 : vector<8x128xf32>
    %132 = arith.truncf %131 : vector<8x128xf32> to vector<8x128xbf16>
    %c0_58 = arith.constant 0 : index
    %c0_59 = arith.constant 0 : index
    %133 = vector.load %arg19[%c0_58, %c0_59] : memref<128x64xbf16, #tpu.memory_space<vmem>>, vector<128x64xbf16>
    %cst_60 = arith.constant dense<0.000000e+00> : vector<8x64xf32>
    %134 = tpu.matmul %132, %133, %cst_60 {dimension_numbers = #tpu.dot_dimension_numbers<[1], [0], [0], [1], [0, 0, 1, 1], [], []>} : vector<8x128xbf16>, vector<128x64xbf16>, vector<8x64xf32> -> vector<8x64xf32>
    %c0_61 = arith.constant 0 : index
    %c0_62 = arith.constant 0 : index
    %135 = vector.load %arg20[%c0_61, %c0_62] : memref<1x64xf32, #tpu.memory_space<vmem>>, vector<1x64xf32>
    %136 = vector.broadcast %135 : vector<1x64xf32> to vector<8x64xf32>
    %137 = arith.addf %134, %136 : vector<8x64xf32>
    %138 = arith.addf %137, %88 : vector<8x64xf32>
    %c0_63 = arith.constant 0 : index
    %c0_64 = arith.constant 0 : index
    %c0_65 = arith.constant 0 : index
    %139 = vector.load %arg21[%c0_63, %c0_64, %c0_65] : memref<1x8x64xf32, #tpu.memory_space<vmem>>, vector<1x8x64xf32>
    %140 = vector.shape_cast %139 : vector<1x8x64xf32> to vector<8x64xf32>
    %141 = vector.shape_cast %138 : vector<8x64xf32> to vector<1x8x64xf32>
    tpu.vector_store %arg21[%c0_63, %c0_64, %c0_65], %141 {strides = array<i32>} : memref<1x8x64xf32, #tpu.memory_space<vmem>>, vector<1x8x64xf32>,
    return
  }
  func.func @transform_0(%arg0: i32, %arg1: i32) -> (i32, i32, i32) {
    %c0_i32 = arith.constant 0 : i32
    %c0_i32_0 = arith.constant 0 : i32
    %c0_i32_1 = arith.constant 0 : i32
    return %arg0, %c0_i32, %c0_i32_0 : i32, i32, i32
  }
  func.func @transform_1(%arg0: i32, %arg1: i32) -> (i32, i32, i32) {
    %c0_i32 = arith.constant 0 : i32
    %c0_i32_0 = arith.constant 0 : i32
    return %arg0, %arg1, %c0_i32 : i32, i32, i32
  }
  func.func @transform_2(%arg0: i32, %arg1: i32) -> (i32, i32, i32) {
    %c0_i32 = arith.constant 0 : i32
    %c0_i32_0 = arith.constant 0 : i32
    %c0_i32_1 = arith.constant 0 : i32
    return %arg0, %c0_i32, %c0_i32_0 : i32, i32, i32
  }
  func.func @transform_3(%arg0: i32, %arg1: i32) -> (i32, i32) {
    %c0_i32 = arith.constant 0 : i32
    %c0_i32_0 = arith.constant 0 : i32
    %c0_i32_1 = arith.constant 0 : i32
    return %c0_i32, %c0_i32_0 : i32, i32
  }
  func.func @transform_4(%arg0: i32, %arg1: i32) -> (i32, i32) {
    %c0_i32 = arith.constant 0 : i32
    %c0_i32_0 = arith.constant 0 : i32
    %c0_i32_1 = arith.constant 0 : i32
    return %c0_i32, %c0_i32_0 : i32, i32
  }
  func.func @transform_5(%arg0: i32, %arg1: i32) -> (i32, i32) {
    %c0_i32 = arith.constant 0 : i32
    %c0_i32_0 = arith.constant 0 : i32
    %c0_i32_1 = arith.constant 0 : i32
    return %c0_i32, %c0_i32_0 : i32, i32
  }
  func.func @transform_6(%arg0: i32, %arg1: i32) -> (i32, i32) {
    %c0_i32 = arith.constant 0 : i32
    %c0_i32_0 = arith.constant 0 : i32
    %c0_i32_1 = arith.constant 0 : i32
    return %c0_i32, %c0_i32_0 : i32, i32
  }
  func.func @transform_7(%arg0: i32, %arg1: i32) -> (i32, i32) {
    %c0_i32 = arith.constant 0 : i32
    %c0_i32_0 = arith.constant 0 : i32
    %c0_i32_1 = arith.constant 0 : i32
    return %c0_i32, %c0_i32_0 : i32, i32
  }
  func.func @transform_8(%arg0: i32, %arg1: i32) -> (i32, i32) {
    %c0_i32 = arith.constant 0 : i32
    %c0_i32_0 = arith.constant 0 : i32
    %c0_i32_1 = arith.constant 0 : i32
    return %c0_i32, %c0_i32_0 : i32, i32
  }
  func.func @transform_9(%arg0: i32, %arg1: i32) -> (i32, i32) {
    %c0_i32 = arith.constant 0 : i32
    %c0_i32_0 = arith.constant 0 : i32
    %c0_i32_1 = arith.constant 0 : i32
    return %c0_i32, %c0_i32_0 : i32, i32
  }
  func.func @transform_10(%arg0: i32, %arg1: i32) -> (i32, i32) {
    %c0_i32 = arith.constant 0 : i32
    %c0_i32_0 = arith.constant 0 : i32
    %c0_i32_1 = arith.constant 0 : i32
    return %c0_i32, %c0_i32_0 : i32, i32
  }
  func.func @transform_11(%arg0: i32, %arg1: i32) -> (i32, i32) {
    %c0_i32 = arith.constant 0 : i32
    %c0_i32_0 = arith.constant 0 : i32
    %c0_i32_1 = arith.constant 0 : i32
    return %c0_i32, %c0_i32_0 : i32, i32
  }
  func.func @transform_12(%arg0: i32, %arg1: i32) -> (i32, i32) {
    %c0_i32 = arith.constant 0 : i32
    %c0_i32_0 = arith.constant 0 : i32
    %c0_i32_1 = arith.constant 0 : i32
    return %c0_i32, %c0_i32_0 : i32, i32
  }
  func.func @transform_13(%arg0: i32, %arg1: i32) -> (i32, i32) {
    %c0_i32 = arith.constant 0 : i32
    %c0_i32_0 = arith.constant 0 : i32
    %c0_i32_1 = arith.constant 0 : i32
    return %c0_i32, %c0_i32_0 : i32, i32
  }
  func.func @transform_14(%arg0: i32, %arg1: i32) -> (i32, i32) {
    %c0_i32 = arith.constant 0 : i32
    %c0_i32_0 = arith.constant 0 : i32
    %c0_i32_1 = arith.constant 0 : i32
    return %c0_i32, %c0_i32_0 : i32, i32
  }
  func.func @transform_15(%arg0: i32, %arg1: i32) -> (i32, i32) {
    %c0_i32 = arith.constant 0 : i32
    %c0_i32_0 = arith.constant 0 : i32
    %c0_i32_1 = arith.constant 0 : i32
    return %c0_i32, %c0_i32_0 : i32, i32
  }
  func.func @transform_16(%arg0: i32, %arg1: i32) -> (i32, i32) {
    %c0_i32 = arith.constant 0 : i32
    %c0_i32_0 = arith.constant 0 : i32
    %c0_i32_1 = arith.constant 0 : i32
    return %c0_i32, %c0_i32_0 : i32, i32
  }
  func.func @transform_17(%arg0: i32, %arg1: i32) -> (i32, i32) {
    %c0_i32 = arith.constant 0 : i32
    %c0_i32_0 = arith.constant 0 : i32
    %c0_i32_1 = arith.constant 0 : i32
    return %c0_i32, %c0_i32_0 : i32, i32
  }
  func.func @transform_18(%arg0: i32, %arg1: i32) -> (i32, i32) {
    %c0_i32 = arith.constant 0 : i32
    %c0_i32_0 = arith.constant 0 : i32
    %c0_i32_1 = arith.constant 0 : i32
    return %c0_i32, %c0_i32_0 : i32, i32
  }
  func.func @transform_19(%arg0: i32, %arg1: i32) -> (i32, i32, i32) {
    %c0_i32 = arith.constant 0 : i32
    %c0_i32_0 = arith.constant 0 : i32
    return %arg0, %arg1, %c0_i32 : i32, i32, i32
  }
}

module attributes {stable_mosaic.version = 11 : i64} {
  func.func @encoder_layer_kernel(%arg0: i32, %arg1: i32, %arg2: memref<1x16x64xbf16, #tpu.memory_space<vmem>>, %arg3: memref<1x8x64xf32, #tpu.memory_space<vmem>>, %arg4: memref<1x1x16xf32, #tpu.memory_space<vmem>>, %arg5: memref<1x64xf32, #tpu.memory_space<vmem>>, %arg6: memref<1x64xf32, #tpu.memory_space<vmem>>, %arg7: memref<64x64xbf16, #tpu.memory_space<vmem>>, %arg8: memref<1x64xf32, #tpu.memory_space<vmem>>, %arg9: memref<64x64xbf16, #tpu.memory_space<vmem>>, %arg10: memref<1x64xf32, #tpu.memory_space<vmem>>, %arg11: memref<64x64xbf16, #tpu.memory_space<vmem>>, %arg12: memref<1x64xf32, #tpu.memory_space<vmem>>, %arg13: memref<64x64xbf16, #tpu.memory_space<vmem>>, %arg14: memref<1x64xf32, #tpu.memory_space<vmem>>, %arg15: memref<1x64xf32, #tpu.memory_space<vmem>>, %arg16: memref<1x64xf32, #tpu.memory_space<vmem>>, %arg17: memref<64x128xbf16, #tpu.memory_space<vmem>>, %arg18: memref<1x128xf32, #tpu.memory_space<vmem>>, %arg19: memref<128x64xbf16, #tpu.memory_space<vmem>>, %arg20: memref<1x64xf32, #tpu.memory_space<vmem>>, %arg21: memref<1x8x64xf32, #tpu.memory_space<vmem>>, %arg22: memref<2x4x8x16xbf16, #tpu.memory_space<vmem>>, %arg23: memref<2x4x8x16xbf16, #tpu.memory_space<vmem>>, %arg24: memref<2x1x8xf32, #tpu.memory_space<vmem>>) attributes {dimension_semantics = [#tpu.dimension_semantics<parallel>, #tpu.dimension_semantics<arbitrary>], iteration_bounds = array<i64: 2, 2>, scalar_prefetch = 0 : i64, scratch_operands = 3 : i64, tpu.core_type = #tpu.core_type<tc>, window_params = [{transform_indices = @transform_0, window_bounds = array<i64: 1, 16, 64>}, {transform_indices = @transform_1, window_bounds = array<i64: 1, 8, 64>}, {transform_indices = @transform_2, window_bounds = array<i64: 1, 1, 16>}, {pipeline_mode = #tpu.pipeline_mode<synchronous>, transform_indices = @transform_3, window_bounds = array<i64: 1, 64>}, {pipeline_mode = #tpu.pipeline_mode<synchronous>, transform_indices = @transform_4, window_bounds = array<i64: 1, 64>}, {pipeline_mode = #tpu.pipeline_mode<synchronous>, transform_indices = @transform_5, window_bounds = array<i64: 64, 64>}, {pipeline_mode = #tpu.pipeline_mode<synchronous>, transform_indices = @transform_6, window_bounds = array<i64: 1, 64>}, {pipeline_mode = #tpu.pipeline_mode<synchronous>, transform_indices = @transform_7, window_bounds = array<i64: 64, 64>}, {pipeline_mode = #tpu.pipeline_mode<synchronous>, transform_indices = @transform_8, window_bounds = array<i64: 1, 64>}, {pipeline_mode = #tpu.pipeline_mode<synchronous>, transform_indices = @transform_9, window_bounds = array<i64: 64, 64>}, {pipeline_mode = #tpu.pipeline_mode<synchronous>, transform_indices = @transform_10, window_bounds = array<i64: 1, 64>}, {pipeline_mode = #tpu.pipeline_mode<synchronous>, transform_indices = @transform_11, window_bounds = array<i64: 64, 64>}, {pipeline_mode = #tpu.pipeline_mode<synchronous>, transform_indices = @transform_12, window_bounds = array<i64: 1, 64>}, {pipeline_mode = #tpu.pipeline_mode<synchronous>, transform_indices = @transform_13, window_bounds = array<i64: 1, 64>}, {pipeline_mode = #tpu.pipeline_mode<synchronous>, transform_indices = @transform_14, window_bounds = array<i64: 1, 64>}, {pipeline_mode = #tpu.pipeline_mode<synchronous>, transform_indices = @transform_15, window_bounds = array<i64: 64, 128>}, {pipeline_mode = #tpu.pipeline_mode<synchronous>, transform_indices = @transform_16, window_bounds = array<i64: 1, 128>}, {pipeline_mode = #tpu.pipeline_mode<synchronous>, transform_indices = @transform_17, window_bounds = array<i64: 128, 64>}, {pipeline_mode = #tpu.pipeline_mode<synchronous>, transform_indices = @transform_18, window_bounds = array<i64: 1, 64>}, {transform_indices = @transform_19, window_bounds = array<i64: 1, 8, 64>}]} {
    %c0_i32 = arith.constant 0 : i32
    %0 = arith.cmpi eq, %arg1, %c0_i32 : i32
    %1 = arith.extui %0 : i1 to i32
    %c0_i32_0 = arith.constant 0 : i32
    %2 = arith.cmpi ne, %1, %c0_i32_0 : i32
    scf.if %2 {
      %c0_66 = arith.constant 0 : index
      %c0_67 = arith.constant 0 : index
      %c0_68 = arith.constant 0 : index
      %142 = vector.load %arg2[%c0_66, %c0_67, %c0_68] : memref<1x16x64xbf16, #tpu.memory_space<vmem>>, vector<1x16x64xbf16>
      %143 = vector.shape_cast %142 : vector<1x16x64xbf16> to vector<16x64xbf16>
      %c0_69 = arith.constant 0 : index
      %c0_70 = arith.constant 0 : index
      %144 = vector.load %arg9[%c0_69, %c0_70] : memref<64x64xbf16, #tpu.memory_space<vmem>>, vector<64x64xbf16>
      %cst_71 = arith.constant dense<0.000000e+00> : vector<16x64xf32>
      %145 = tpu.matmul %143, %144, %cst_71 {dimension_numbers = #tpu.dot_dimension_numbers<[1], [0], [0], [1], [0, 0, 1, 1], [], []>} : vector<16x64xbf16>, vector<64x64xbf16>, vector<16x64xf32> -> vector<16x64xf32>
      %c0_72 = arith.constant 0 : index
      %c0_73 = arith.constant 0 : index
      %146 = vector.load %arg10[%c0_72, %c0_73] : memref<1x64xf32, #tpu.memory_space<vmem>>, vector<1x64xf32>
      %147 = vector.broadcast %146 : vector<1x64xf32> to vector<16x64xf32>
      %148 = arith.addf %145, %147 : vector<16x64xf32>
      %c0_74 = arith.constant 0 : index
      %c0_75 = arith.constant 0 : index
      %149 = vector.load %arg11[%c0_74, %c0_75] : memref<64x64xbf16, #tpu.memory_space<vmem>>, vector<64x64xbf16>
      %cst_76 = arith.constant dense<0.000000e+00> : vector<16x64xf32>
      %150 = tpu.matmul %143, %149, %cst_76 {dimension_numbers = #tpu.dot_dimension_numbers<[1], [0], [0], [1], [0, 0, 1, 1], [], []>} : vector<16x64xbf16>, vector<64x64xbf16>, vector<16x64xf32> -> vector<16x64xf32>
      %c0_77 = arith.constant 0 : index
      %c0_78 = arith.constant 0 : index
      %151 = vector.load %arg12[%c0_77, %c0_78] : memref<1x64xf32, #tpu.memory_space<vmem>>, vector<1x64xf32>
      %152 = vector.broadcast %151 : vector<1x64xf32> to vector<16x64xf32>
      %153 = arith.addf %150, %152 : vector<16x64xf32>
      %154 = arith.truncf %148 : vector<16x64xf32> to vector<16x64xbf16>
      %155 = vector.shape_cast %154 : vector<16x64xbf16> to vector<16x4x16xbf16>
      %156 = tpu.transpose %155, [1, 0, 2] : vector<16x4x16xbf16> -> vector<4x16x16xbf16>
      %157 = arith.truncf %153 : vector<16x64xf32> to vector<16x64xbf16>
      %158 = vector.shape_cast %157 : vector<16x64xbf16> to vector<16x4x16xbf16>
      %159 = tpu.transpose %158, [1, 0, 2] : vector<16x4x16xbf16> -> vector<4x16x16xbf16>
      %c0_79 = arith.constant 0 : index
      %c0_80 = arith.constant 0 : index
      %c0_81 = arith.constant 0 : index
      %160 = vector.load %arg4[%c0_79, %c0_80, %c0_81] : memref<1x1x16xf32, #tpu.memory_space<vmem>>, vector<1x1x16xf32>
      %161 = vector.shape_cast %160 : vector<1x1x16xf32> to vector<1x16xf32>
      %162 = vector.extract_strided_slice %156 {offsets = [0, 0, 0], sizes = [4, 8, 16], strides = [1, 1, 1]} : vector<4x16x16xbf16> to vector<4x8x16xbf16>
      %c0_82 = arith.constant 0 : index
      %c0_83 = arith.constant 0 : index
      %c0_84 = arith.constant 0 : index
      %c0_85 = arith.constant 0 : index
      %163 = vector.load %arg22[%c0_82, %c0_83, %c0_84, %c0_85] : memref<2x4x8x16xbf16, #tpu.memory_space<vmem>>, vector<1x4x8x16xbf16>
      %164 = vector.shape_cast %163 : vector<1x4x8x16xbf16> to vector<4x8x16xbf16>
      %165 = vector.shape_cast %162 : vector<4x8x16xbf16> to vector<1x4x8x16xbf16>
      tpu.vector_store %arg22[%c0_82, %c0_83, %c0_84, %c0_85], %165 {strides = array<i32>} : memref<2x4x8x16xbf16, #tpu.memory_space<vmem>>, vector<1x4x8x16xbf16>,
      %166 = vector.extract_strided_slice %159 {offsets = [0, 0, 0], sizes = [4, 8, 16], strides = [1, 1, 1]} : vector<4x16x16xbf16> to vector<4x8x16xbf16>
      %c0_86 = arith.constant 0 : index
      %c0_87 = arith.constant 0 : index
      %c0_88 = arith.constant 0 : index
      %c0_89 = arith.constant 0 : index
      %167 = vector.load %arg23[%c0_86, %c0_87, %c0_88, %c0_89] : memref<2x4x8x16xbf16, #tpu.memory_space<vmem>>, vector<1x4x8x16xbf16>
      %168 = vector.shape_cast %167 : vector<1x4x8x16xbf16> to vector<4x8x16xbf16>
      %169 = vector.shape_cast %166 : vector<4x8x16xbf16> to vector<1x4x8x16xbf16>
      tpu.vector_store %arg23[%c0_86, %c0_87, %c0_88, %c0_89], %169 {strides = array<i32>} : memref<2x4x8x16xbf16, #tpu.memory_space<vmem>>, vector<1x4x8x16xbf16>,
      %170 = vector.extract_strided_slice %161 {offsets = [0, 0], sizes = [1, 8], strides = [1, 1]} : vector<1x16xf32> to vector<1x8xf32>
      %c0_90 = arith.constant 0 : index
      %c0_91 = arith.constant 0 : index
      %c0_92 = arith.constant 0 : index
      %171 = vector.load %arg24[%c0_90, %c0_91, %c0_92] : memref<2x1x8xf32, #tpu.memory_space<vmem>>, vector<1x1x8xf32>
      %172 = vector.shape_cast %171 : vector<1x1x8xf32> to vector<1x8xf32>
      %173 = vector.shape_cast %170 : vector<1x8xf32> to vector<1x1x8xf32>
      tpu.vector_store %arg24[%c0_90, %c0_91, %c0_92], %173 {strides = array<i32>} : memref<2x1x8xf32, #tpu.memory_space<vmem>>, vector<1x1x8xf32>,
      %174 = vector.extract_strided_slice %156 {offsets = [0, 8, 0], sizes = [4, 8, 16], strides = [1, 1, 1]} : vector<4x16x16xbf16> to vector<4x8x16xbf16>
      %c1 = arith.constant 1 : index
      %c0_93 = arith.constant 0 : index
      %c0_94 = arith.constant 0 : index
      %c0_95 = arith.constant 0 : index
      %175 = vector.load %arg22[%c1, %c0_93, %c0_94, %c0_95] : memref<2x4x8x16xbf16, #tpu.memory_space<vmem>>, vector<1x4x8x16xbf16>
      %176 = vector.shape_cast %175 : vector<1x4x8x16xbf16> to vector<4x8x16xbf16>
      %177 = vector.shape_cast %174 : vector<4x8x16xbf16> to vector<1x4x8x16xbf16>
      tpu.vector_store %arg22[%c1, %c0_93, %c0_94, %c0_95], %177 {strides = array<i32>} : memref<2x4x8x16xbf16, #tpu.memory_space<vmem>>, vector<1x4x8x16xbf16>,
      %178 = vector.extract_strided_slice %159 {offsets = [0, 8, 0], sizes = [4, 8, 16], strides = [1, 1, 1]} : vector<4x16x16xbf16> to vector<4x8x16xbf16>
      %c1_96 = arith.constant 1 : index
      %c0_97 = arith.constant 0 : index
      %c0_98 = arith.constant 0 : index
      %c0_99 = arith.constant 0 : index
      %179 = vector.load %arg23[%c1_96, %c0_97, %c0_98, %c0_99] : memref<2x4x8x16xbf16, #tpu.memory_space<vmem>>, vector<1x4x8x16xbf16>
      %180 = vector.shape_cast %179 : vector<1x4x8x16xbf16> to vector<4x8x16xbf16>
      %181 = vector.shape_cast %178 : vector<4x8x16xbf16> to vector<1x4x8x16xbf16>
      tpu.vector_store %arg23[%c1_96, %c0_97, %c0_98, %c0_99], %181 {strides = array<i32>} : memref<2x4x8x16xbf16, #tpu.memory_space<vmem>>, vector<1x4x8x16xbf16>,
      %182 = vector.extract_strided_slice %161 {offsets = [0, 8], sizes = [1, 8], strides = [1, 1]} : vector<1x16xf32> to vector<1x8xf32>
      %c1_100 = arith.constant 1 : index
      %c0_101 = arith.constant 0 : index
      %c0_102 = arith.constant 0 : index
      %183 = vector.load %arg24[%c1_100, %c0_101, %c0_102] : memref<2x1x8xf32, #tpu.memory_space<vmem>>, vector<1x1x8xf32>
      %184 = vector.shape_cast %183 : vector<1x1x8xf32> to vector<1x8xf32>
      %185 = vector.shape_cast %182 : vector<1x8xf32> to vector<1x1x8xf32>
      tpu.vector_store %arg24[%c1_100, %c0_101, %c0_102], %185 {strides = array<i32>} : memref<2x1x8xf32, #tpu.memory_space<vmem>>, vector<1x1x8xf32>,
    } else {
    }
    %c0 = arith.constant 0 : index
    %c0_1 = arith.constant 0 : index
    %c0_2 = arith.constant 0 : index
    %3 = vector.load %arg3[%c0, %c0_1, %c0_2] : memref<1x8x64xf32, #tpu.memory_space<vmem>>, vector<1x8x64xf32>
    %4 = vector.shape_cast %3 : vector<1x8x64xf32> to vector<8x64xf32>
    %5 = arith.truncf %4 : vector<8x64xf32> to vector<8x64xbf16>
    %c0_3 = arith.constant 0 : index
    %c0_4 = arith.constant 0 : index
    %6 = vector.load %arg7[%c0_3, %c0_4] : memref<64x64xbf16, #tpu.memory_space<vmem>>, vector<64x64xbf16>
    %cst = arith.constant dense<0.000000e+00> : vector<8x64xf32>
    %7 = tpu.matmul %5, %6, %cst {dimension_numbers = #tpu.dot_dimension_numbers<[1], [0], [0], [1], [0, 0, 1, 1], [], []>} : vector<8x64xbf16>, vector<64x64xbf16>, vector<8x64xf32> -> vector<8x64xf32>
    %c0_5 = arith.constant 0 : index
    %c0_6 = arith.constant 0 : index
    %8 = vector.load %arg8[%c0_5, %c0_6] : memref<1x64xf32, #tpu.memory_space<vmem>>, vector<1x64xf32>
    %9 = vector.broadcast %8 : vector<1x64xf32> to vector<8x64xf32>
    %10 = arith.addf %7, %9 : vector<8x64xf32>
    %11 = arith.truncf %10 : vector<8x64xf32> to vector<8x64xbf16>
    %12 = vector.shape_cast %11 : vector<8x64xbf16> to vector<8x4x16xbf16>
    %13 = tpu.transpose %12, [1, 0, 2] : vector<8x4x16xbf16> -> vector<4x8x16xbf16>
    %cst_7 = arith.constant -1.000000e+30 : f32
    %14 = vector.broadcast %cst_7 : f32 to vector<4x8x1xf32>
    %cst_8 = arith.constant 0.000000e+00 : f32
    %15 = vector.broadcast %cst_8 : f32 to vector<4x8x1xf32>
    %cst_9 = arith.constant 0.000000e+00 : f32
    %16 = vector.broadcast %cst_9 : f32 to vector<4x8x16xf32>
    %c0_i32_10 = arith.constant 0 : i32
    %17 = arith.index_cast %c0_i32_10 : i32 to index
    %c0_11 = arith.constant 0 : index
    %c0_12 = arith.constant 0 : index
    %c0_13 = arith.constant 0 : index
    %18 = vector.load %arg22[%17, %c0_11, %c0_12, %c0_13] : memref<2x4x8x16xbf16, #tpu.memory_space<vmem>>, vector<1x4x8x16xbf16>
    %19 = vector.shape_cast %18 : vector<1x4x8x16xbf16> to vector<4x8x16xbf16>
    %20 = arith.index_cast %c0_i32_10 : i32 to index
    %c0_14 = arith.constant 0 : index
    %c0_15 = arith.constant 0 : index
    %c0_16 = arith.constant 0 : index
    %21 = vector.load %arg23[%20, %c0_14, %c0_15, %c0_16] : memref<2x4x8x16xbf16, #tpu.memory_space<vmem>>, vector<1x4x8x16xbf16>
    %22 = vector.shape_cast %21 : vector<1x4x8x16xbf16> to vector<4x8x16xbf16>
    "tpu.trace_start"() <{level = 10 : i32, message = "hqd,hkd->hqk"}> : () -> ()
    %cst_17 = arith.constant dense<0.000000e+00> : vector<4x8x8xf32>
    %23 = tpu.matmul %13, %19, %cst_17 {dimension_numbers = #tpu.dot_dimension_numbers<[2], [2], [1], [1], [0, 0, 0, 1, 1, 1], [0], [0]>} : vector<4x8x16xbf16>, vector<4x8x16xbf16>, vector<4x8x8xf32> -> vector<4x8x8xf32>
    "tpu.trace_stop"() : () -> ()
    %24 = arith.index_cast %c0_i32_10 : i32 to index
    %c0_18 = arith.constant 0 : index
    %c0_19 = arith.constant 0 : index
    %25 = vector.load %arg24[%24, %c0_18, %c0_19] : memref<2x1x8xf32, #tpu.memory_space<vmem>>, vector<1x1x8xf32>
    %26 = vector.shape_cast %25 : vector<1x1x8xf32> to vector<1x8xf32>
    %27 = vector.shape_cast %26 : vector<1x8xf32> to vector<1x1x8xf32>
    %28 = vector.broadcast %27 : vector<1x1x8xf32> to vector<4x8x8xf32>
    %29 = arith.addf %23, %28 : vector<4x8x8xf32>
    %cst_20 = arith.constant dense<0xFF800000> : vector<4x8xf32>
    %30 = vector.multi_reduction <maximumf>, %29, %cst_20 [2] : vector<4x8x8xf32> to vector<4x8xf32>
    %31 = vector.shape_cast %30 : vector<4x8xf32> to vector<4x8x1xf32>
    %32 = arith.maximumf %14, %31 : vector<4x8x1xf32>
    %33 = arith.subf %14, %32 : vector<4x8x1xf32>
    %34 = math.exp %33 : vector<4x8x1xf32>
    %35 = vector.broadcast %32 : vector<4x8x1xf32> to vector<4x8x8xf32>
    %36 = arith.subf %29, %35 : vector<4x8x8xf32>
    %37 = math.exp %36 : vector<4x8x8xf32>
    %38 = arith.mulf %34, %15 : vector<4x8x1xf32>
    %cst_21 = arith.constant dense<0.000000e+00> : vector<4x8xf32>
    %39 = vector.multi_reduction <add>, %37, %cst_21 [2] : vector<4x8x8xf32> to vector<4x8xf32>
    %40 = vector.shape_cast %39 : vector<4x8xf32> to vector<4x8x1xf32>
    %41 = arith.addf %38, %40 : vector<4x8x1xf32>
    %42 = vector.broadcast %34 : vector<4x8x1xf32> to vector<4x8x16xf32>
    %43 = arith.mulf %42, %16 : vector<4x8x16xf32>
    %44 = arith.truncf %37 : vector<4x8x8xf32> to vector<4x8x8xbf16>
    "tpu.trace_start"() <{level = 10 : i32, message = "hqk,hkd->hqd"}> : () -> ()
    %cst_22 = arith.constant dense<0.000000e+00> : vector<4x8x16xf32>
    %45 = tpu.matmul %44, %22, %cst_22 {dimension_numbers = #tpu.dot_dimension_numbers<[2], [1], [1], [2], [0, 0, 0, 1, 1, 2], [0], [0]>} : vector<4x8x8xbf16>, vector<4x8x16xbf16>, vector<4x8x16xf32> -> vector<4x8x16xf32>
    "tpu.trace_stop"() : () -> ()
    %46 = arith.addf %43, %45 : vector<4x8x16xf32>
    %c1_i32 = arith.constant 1 : i32
    %47 = arith.index_cast %c1_i32 : i32 to index
    %c0_23 = arith.constant 0 : index
    %c0_24 = arith.constant 0 : index
    %c0_25 = arith.constant 0 : index
    %48 = vector.load %arg22[%47, %c0_23, %c0_24, %c0_25] : memref<2x4x8x16xbf16, #tpu.memory_space<vmem>>, vector<1x4x8x16xbf16>
    %49 = vector.shape_cast %48 : vector<1x4x8x16xbf16> to vector<4x8x16xbf16>
    %50 = arith.index_cast %c1_i32 : i32 to index
    %c0_26 = arith.constant 0 : index
    %c0_27 = arith.constant 0 : index
    %c0_28 = arith.constant 0 : index
    %51 = vector.load %arg23[%50, %c0_26, %c0_27, %c0_28] : memref<2x4x8x16xbf16, #tpu.memory_space<vmem>>, vector<1x4x8x16xbf16>
    %52 = vector.shape_cast %51 : vector<1x4x8x16xbf16> to vector<4x8x16xbf16>
    "tpu.trace_start"() <{level = 10 : i32, message = "hqd,hkd->hqk"}> : () -> ()
    %cst_29 = arith.constant dense<0.000000e+00> : vector<4x8x8xf32>
    %53 = tpu.matmul %13, %49, %cst_29 {dimension_numbers = #tpu.dot_dimension_numbers<[2], [2], [1], [1], [0, 0, 0, 1, 1, 1], [0], [0]>} : vector<4x8x16xbf16>, vector<4x8x16xbf16>, vector<4x8x8xf32> -> vector<4x8x8xf32>
    "tpu.trace_stop"() : () -> ()
    %54 = arith.index_cast %c1_i32 : i32 to index
    %c0_30 = arith.constant 0 : index
    %c0_31 = arith.constant 0 : index
    %55 = vector.load %arg24[%54, %c0_30, %c0_31] : memref<2x1x8xf32, #tpu.memory_space<vmem>>, vector<1x1x8xf32>
    %56 = vector.shape_cast %55 : vector<1x1x8xf32> to vector<1x8xf32>
    %57 = vector.shape_cast %56 : vector<1x8xf32> to vector<1x1x8xf32>
    %58 = vector.broadcast %57 : vector<1x1x8xf32> to vector<4x8x8xf32>
    %59 = arith.addf %53, %58 : vector<4x8x8xf32>
    %cst_32 = arith.constant dense<0xFF800000> : vector<4x8xf32>
    %60 = vector.multi_reduction <maximumf>, %59, %cst_32 [2] : vector<4x8x8xf32> to vector<4x8xf32>
    %61 = vector.shape_cast %60 : vector<4x8xf32> to vector<4x8x1xf32>
    %62 = arith.maximumf %32, %61 : vector<4x8x1xf32>
    %63 = arith.subf %32, %62 : vector<4x8x1xf32>
    %64 = math.exp %63 : vector<4x8x1xf32>
    %65 = vector.broadcast %62 : vector<4x8x1xf32> to vector<4x8x8xf32>
    %66 = arith.subf %59, %65 : vector<4x8x8xf32>
    %67 = math.exp %66 : vector<4x8x8xf32>
    %68 = arith.mulf %64, %41 : vector<4x8x1xf32>
    %cst_33 = arith.constant dense<0.000000e+00> : vector<4x8xf32>
    %69 = vector.multi_reduction <add>, %67, %cst_33 [2] : vector<4x8x8xf32> to vector<4x8xf32>
    %70 = vector.shape_cast %69 : vector<4x8xf32> to vector<4x8x1xf32>
    %71 = arith.addf %68, %70 : vector<4x8x1xf32>
    %72 = vector.broadcast %64 : vector<4x8x1xf32> to vector<4x8x16xf32>
    %73 = arith.mulf %72, %46 : vector<4x8x16xf32>
    %74 = arith.truncf %67 : vector<4x8x8xf32> to vector<4x8x8xbf16>
    "tpu.trace_start"() <{level = 10 : i32, message = "hqk,hkd->hqd"}> : () -> ()
    %cst_34 = arith.constant dense<0.000000e+00> : vector<4x8x16xf32>
    %75 = tpu.matmul %74, %52, %cst_34 {dimension_numbers = #tpu.dot_dimension_numbers<[2], [1], [1], [2], [0, 0, 0, 1, 1, 2], [0], [0]>} : vector<4x8x8xbf16>, vector<4x8x16xbf16>, vector<4x8x16xf32> -> vector<4x8x16xf32>
    "tpu.trace_stop"() : () -> ()
    %76 = arith.addf %73, %75 : vector<4x8x16xf32>
    %c2_i32 = arith.constant 2 : i32
    %77 = tpu.reciprocal %71 : vector<4x8x1xf32> -> vector<4x8x1xf32>
    %78 = vector.broadcast %77 : vector<4x8x1xf32> to vector<4x8x16xf32>
    %79 = arith.mulf %76, %78 : vector<4x8x16xf32>
    %80 = tpu.transpose %79, [1, 0, 2] : vector<4x8x16xf32> -> vector<8x4x16xf32>
    %81 = vector.shape_cast %80 : vector<8x4x16xf32> to vector<8x64xf32>
    %82 = arith.truncf %81 : vector<8x64xf32> to vector<8x64xbf16>
    %c0_35 = arith.constant 0 : index
    %c0_36 = arith.constant 0 : index
    %83 = vector.load %arg13[%c0_35, %c0_36] : memref<64x64xbf16, #tpu.memory_space<vmem>>, vector<64x64xbf16>
    %cst_37 = arith.constant dense<0.000000e+00> : vector<8x64xf32>
    %84 = tpu.matmul %82, %83, %cst_37 {dimension_numbers = #tpu.dot_dimension_numbers<[1], [0], [0], [1], [0, 0, 1, 1], [], []>} : vector<8x64xbf16>, vector<64x64xbf16>, vector<8x64xf32> -> vector<8x64xf32>
    %c0_38 = arith.constant 0 : index
    %c0_39 = arith.constant 0 : index
    %85 = vector.load %arg14[%c0_38, %c0_39] : memref<1x64xf32, #tpu.memory_space<vmem>>, vector<1x64xf32>
    %86 = vector.broadcast %85 : vector<1x64xf32> to vector<8x64xf32>
    %87 = arith.addf %84, %86 : vector<8x64xf32>
    %88 = arith.addf %87, %4 : vector<8x64xf32>
    %c0_40 = arith.constant 0 : index
    %c0_41 = arith.constant 0 : index
    %89 = vector.load %arg15[%c0_40, %c0_41] : memref<1x64xf32, #tpu.memory_space<vmem>>, vector<1x64xf32>
    %c0_42 = arith.constant 0 : index
    %c0_43 = arith.constant 0 : index
    %90 = vector.load %arg16[%c0_42, %c0_43] : memref<1x64xf32, #tpu.memory_space<vmem>>, vector<1x64xf32>
    %cst_44 = arith.constant dense<0.000000e+00> : vector<8xf32>
    %91 = vector.multi_reduction <add>, %88, %cst_44 [1] : vector<8x64xf32> to vector<8xf32>
    %92 = vector.shape_cast %91 : vector<8xf32> to vector<8x1xf32>
    %cst_45 = arith.constant 6.400000e+01 : f32
    %93 = vector.broadcast %cst_45 : f32 to vector<8x1xf32>
    %94 = arith.divf %92, %93 : vector<8x1xf32>
    %95 = vector.broadcast %94 : vector<8x1xf32> to vector<8x64xf32>
    %96 = arith.subf %88, %95 : vector<8x64xf32>
    %97 = arith.mulf %96, %96 : vector<8x64xf32>
    %cst_46 = arith.constant dense<0.000000e+00> : vector<8xf32>
    %98 = vector.multi_reduction <add>, %97, %cst_46 [1] : vector<8x64xf32> to vector<8xf32>
    %99 = vector.shape_cast %98 : vector<8xf32> to vector<8x1xf32>
    %cst_47 = arith.constant 6.400000e+01 : f32
    %100 = vector.broadcast %cst_47 : f32 to vector<8x1xf32>
    %101 = arith.divf %99, %100 : vector<8x1xf32>
    %102 = vector.broadcast %94 : vector<8x1xf32> to vector<8x64xf32>
    %103 = arith.subf %88, %102 : vector<8x64xf32>
    %cst_48 = arith.constant 9.99999997E-7 : f32
    %104 = vector.broadcast %cst_48 : f32 to vector<8x1xf32>
    %105 = arith.addf %101, %104 : vector<8x1xf32>
    %106 = math.rsqrt %105 : vector<8x1xf32>
    %107 = vector.broadcast %106 : vector<8x1xf32> to vector<8x64xf32>
    %108 = arith.mulf %103, %107 : vector<8x64xf32>
    %109 = vector.broadcast %89 : vector<1x64xf32> to vector<8x64xf32>
    %110 = arith.mulf %108, %109 : vector<8x64xf32>
    %111 = vector.broadcast %90 : vector<1x64xf32> to vector<8x64xf32>
    %112 = arith.addf %110, %111 : vector<8x64xf32>
    %113 = arith.truncf %112 : vector<8x64xf32> to vector<8x64xbf16>
    %c0_49 = arith.constant 0 : index
    %c0_50 = arith.constant 0 : index
    %114 = vector.load %arg17[%c0_49, %c0_50] : memref<64x128xbf16, #tpu.memory_space<vmem>>, vector<64x128xbf16>
    %cst_51 = arith.constant dense<0.000000e+00> : vector<8x128xf32>
    %115 = tpu.matmul %113, %114, %cst_51 {dimension_numbers = #tpu.dot_dimension_numbers<[1], [0], [0], [1], [0, 0, 1, 1], [], []>} : vector<8x64xbf16>, vector<64x128xbf16>, vector<8x128xf32> -> vector<8x128xf32>
    %c0_52 = arith.constant 0 : index
    %c0_53 = arith.constant 0 : index
    %116 = vector.load %arg18[%c0_52, %c0_53] : memref<1x128xf32, #tpu.memory_space<vmem>>, vector<1x128xf32>
    %117 = vector.broadcast %116 : vector<1x128xf32> to vector<8x128xf32>
    %118 = arith.addf %115, %117 : vector<8x128xf32>
    %cst_54 = arith.constant 5.000000e-01 : f32
    %119 = vector.broadcast %cst_54 : f32 to vector<8x128xf32>
    %120 = arith.mulf %119, %118 : vector<8x128xf32>
    %cst_55 = arith.constant 4.471500e-02 : f32
    %121 = vector.broadcast %cst_55 : f32 to vector<8x128xf32>
    %122 = arith.mulf %121, %118 : vector<8x128xf32>
    %123 = arith.mulf %122, %118 : vector<8x128xf32>
    %124 = arith.mulf %123, %118 : vector<8x128xf32>
    %125 = arith.addf %118, %124 : vector<8x128xf32>
    %cst_56 = arith.constant 0.797884583 : f32
    %126 = vector.broadcast %cst_56 : f32 to vector<8x128xf32>
    %127 = arith.mulf %126, %125 : vector<8x128xf32>
    %128 = math.tanh %127 : vector<8x128xf32>
    %cst_57 = arith.constant 1.000000e+00 : f32
    %129 = vector.broadcast %cst_57 : f32 to vector<8x128xf32>
    %130 = arith.addf %129, %128 : vector<8x128xf32>
    %131 = arith.mulf %120, %130 : vector<8x128xf32>
    %132 = arith.truncf %131 : vector<8x128xf32> to vector<8x128xbf16>
    %c0_58 = arith.constant 0 : index
    %c0_59 = arith.constant 0 : index
    %133 = vector.load %arg19[%c0_58, %c0_59] : memref<128x64xbf16, #tpu.memory_space<vmem>>, vector<128x64xbf16>
    %cst_60 = arith.constant dense<0.000000e+00> : vector<8x64xf32>
    %134 = tpu.matmul %132, %133, %cst_60 {dimension_numbers = #tpu.dot_dimension_numbers<[1], [0], [0], [1], [0, 0, 1, 1], [], []>} : vector<8x128xbf16>, vector<128x64xbf16>, vector<8x64xf32> -> vector<8x64xf32>
    %c0_61 = arith.constant 0 : index
    %c0_62 = arith.constant 0 : index
    %135 = vector.load %arg20[%c0_61, %c0_62] : memref<1x64xf32, #tpu.memory_space<vmem>>, vector<1x64xf32>
    %136 = vector.broadcast %135 : vector<1x64xf32> to vector<8x64xf32>
    %137 = arith.addf %134, %136 : vector<8x64xf32>
    %138 = arith.addf %137, %88 : vector<8x64xf32>
    %c0_63 = arith.constant 0 : index
    %c0_64 = arith.constant 0 : index
    %c0_65 = arith.constant 0 : index
    %139 = vector.load %arg21[%c0_63, %c0_64, %c0_65] : memref<1x8x64xf32, #tpu.memory_space<vmem>>, vector<1x8x64xf32>
    %140 = vector.shape_cast %139 : vector<1x8x64xf32> to vector<8x64xf32>
    %141 = vector.shape_cast %138 : vector<8x64xf32> to vector<1x8x64xf32>
    tpu.vector_store %arg21[%c0_63, %c0_64, %c0_65], %141 {strides = array<i32>} : memref<1x8x64xf32, #tpu.memory_space<vmem>>, vector<1x8x64xf32>,
    return
  }
  func.func @transform_0(%arg0: i32, %arg1: i32) -> (i32, i32, i32) {
    %c0_i32 = arith.constant 0 : i32
    %c0_i32_0 = arith.constant 0 : i32
    %c0_i32_1 = arith.constant 0 : i32
    return %arg0, %c0_i32, %c0_i32_0 : i32, i32, i32
  }
  func.func @transform_1(%arg0: i32, %arg1: i32) -> (i32, i32, i32) {
    %c0_i32 = arith.constant 0 : i32
    %c0_i32_0 = arith.constant 0 : i32
    return %arg0, %arg1, %c0_i32 : i32, i32, i32
  }
  func.func @transform_2(%arg0: i32, %arg1: i32) -> (i32, i32, i32) {
    %c0_i32 = arith.constant 0 : i32
    %c0_i32_0 = arith.constant 0 : i32
    %c0_i32_1 = arith.constant 0 : i32
    return %arg0, %c0_i32, %c0_i32_0 : i32, i32, i32
  }
  func.func @transform_3(%arg0: i32, %arg1: i32) -> (i32, i32) {
    %c0_i32 = arith.constant 0 : i32
    %c0_i32_0 = arith.constant 0 : i32
    %c0_i32_1 = arith.constant 0 : i32
    return %c0_i32, %c0_i32_0 : i32, i32
  }
  func.func @transform_4(%arg0: i32, %arg1: i32) -> (i32, i32) {
    %c0_i32 = arith.constant 0 : i32
    %c0_i32_0 = arith.constant 0 : i32
    %c0_i32_1 = arith.constant 0 : i32
    return %c0_i32, %c0_i32_0 : i32, i32
  }
  func.func @transform_5(%arg0: i32, %arg1: i32) -> (i32, i32) {
    %c0_i32 = arith.constant 0 : i32
    %c0_i32_0 = arith.constant 0 : i32
    %c0_i32_1 = arith.constant 0 : i32
    return %c0_i32, %c0_i32_0 : i32, i32
  }
  func.func @transform_6(%arg0: i32, %arg1: i32) -> (i32, i32) {
    %c0_i32 = arith.constant 0 : i32
    %c0_i32_0 = arith.constant 0 : i32
    %c0_i32_1 = arith.constant 0 : i32
    return %c0_i32, %c0_i32_0 : i32, i32
  }
  func.func @transform_7(%arg0: i32, %arg1: i32) -> (i32, i32) {
    %c0_i32 = arith.constant 0 : i32
    %c0_i32_0 = arith.constant 0 : i32
    %c0_i32_1 = arith.constant 0 : i32
    return %c0_i32, %c0_i32_0 : i32, i32
  }
  func.func @transform_8(%arg0: i32, %arg1: i32) -> (i32, i32) {
    %c0_i32 = arith.constant 0 : i32
    %c0_i32_0 = arith.constant 0 : i32
    %c0_i32_1 = arith.constant 0 : i32
    return %c0_i32, %c0_i32_0 : i32, i32
  }
  func.func @transform_9(%arg0: i32, %arg1: i32) -> (i32, i32) {
    %c0_i32 = arith.constant 0 : i32
    %c0_i32_0 = arith.constant 0 : i32
    %c0_i32_1 = arith.constant 0 : i32
    return %c0_i32, %c0_i32_0 : i32, i32
  }
  func.func @transform_10(%arg0: i32, %arg1: i32) -> (i32, i32) {
    %c0_i32 = arith.constant 0 : i32
    %c0_i32_0 = arith.constant 0 : i32
    %c0_i32_1 = arith.constant 0 : i32
    return %c0_i32, %c0_i32_0 : i32, i32
  }
  func.func @transform_11(%arg0: i32, %arg1: i32) -> (i32, i32) {
    %c0_i32 = arith.constant 0 : i32
    %c0_i32_0 = arith.constant 0 : i32
    %c0_i32_1 = arith.constant 0 : i32
    return %c0_i32, %c0_i32_0 : i32, i32
  }
  func.func @transform_12(%arg0: i32, %arg1: i32) -> (i32, i32) {
    %c0_i32 = arith.constant 0 : i32
    %c0_i32_0 = arith.constant 0 : i32
    %c0_i32_1 = arith.constant 0 : i32
    return %c0_i32, %c0_i32_0 : i32, i32
  }
  func.func @transform_13(%arg0: i32, %arg1: i32) -> (i32, i32) {
    %c0_i32 = arith.constant 0 : i32
    %c0_i32_0 = arith.constant 0 : i32
    %c0_i32_1 = arith.constant 0 : i32
    return %c0_i32, %c0_i32_0 : i32, i32
  }
  func.func @transform_14(%arg0: i32, %arg1: i32) -> (i32, i32) {
    %c0_i32 = arith.constant 0 : i32
    %c0_i32_0 = arith.constant 0 : i32
    %c0_i32_1 = arith.constant 0 : i32
    return %c0_i32, %c0_i32_0 : i32, i32
  }
  func.func @transform_15(%arg0: i32, %arg1: i32) -> (i32, i32) {
    %c0_i32 = arith.constant 0 : i32
    %c0_i32_0 = arith.constant 0 : i32
    %c0_i32_1 = arith.constant 0 : i32
    return %c0_i32, %c0_i32_0 : i32, i32
  }
  func.func @transform_16(%arg0: i32, %arg1: i32) -> (i32, i32) {
    %c0_i32 = arith.constant 0 : i32
    %c0_i32_0 = arith.constant 0 : i32
    %c0_i32_1 = arith.constant 0 : i32
    return %c0_i32, %c0_i32_0 : i32, i32
  }
  func.func @transform_17(%arg0: i32, %arg1: i32) -> (i32, i32) {
    %c0_i32 = arith.constant 0 : i32
    %c0_i32_0 = arith.constant 0 : i32
    %c0_i32_1 = arith.constant 0 : i32
    return %c0_i32, %c0_i32_0 : i32, i32
  }
  func.func @transform_18(%arg0: i32, %arg1: i32) -> (i32, i32) {
    %c0_i32 = arith.constant 0 : i32
    %c0_i32_0 = arith.constant 0 : i32
    %c0_i32_1 = arith.constant 0 : i32
    return %c0_i32, %c0_i32_0 : i32, i32
  }
  func.func @transform_19(%arg0: i32, %arg1: i32) -> (i32, i32, i32) {
    %c0_i32 = arith.constant 0 : i32
    %c0_i32_0 = arith.constant 0 : i32
    return %arg0, %arg1, %c0_i32 : i32, i32, i32
  }
}

</mosaic_0001>

<bundles_post_ra>
// kernel: tpu_custom_call.1
= control target key start
LH: loop header
LB: loop body
LE: loop exit
PB: predicated region body
PF: predicated region fallthrough
CT: control target
= control target key end

     0   :  { %s4971_s0 = inlined_call_operand.hbm [shape: bf16[2,16,64], index: 0, kind: input, shape index: {}]   ;;  %s4972_s1 = inlined_call_operand.vmem [shape: f32[2,16,64], index: 1, kind: input, shape index: {}]   ;;  %s4973_s2 = inlined_call_operand.vmem [shape: f32[2,1,16], index: 2, kind: input, shape index: {}]   ;;  %s4974_s3 = inlined_call_operand.vmem [shape: f32[1,64], index: 3, kind: input, shape index: {}]   ;;  %s4975_s4 = inlined_call_operand.vmem [shape: f32[1,64], index: 4, kind: input, shape index: {}]   ;;  %s4976_s5 = inlined_call_operand.vmem [shape: bf16[64,64], index: 5, kind: input, shape index: {}]   ;;  %s4977_s6 = inlined_call_operand.vmem [shape: f32[1,64], index: 6, kind: input, shape index: {}]   ;;  %s4978_s7 = inlined_call_operand.vmem [shape: bf16[64,64], index: 7, kind: input, shape index: {}]   ;;  %s4979_s8 = inlined_call_operand.vmem [shape: f32[1,64], index: 8, kind: input, shape index: {}]   ;;  %s4980_s9 = inlined_call_operand.hbm [shape: bf16[64,64], index: 9, kind: input, shape index: {}]   ;;  %s4981_s10 = inlined_call_operand.vmem [shape: f32[1,64], index: 10, kind: input, shape index: {}]   ;;  %s4982_s11 = inlined_call_operand.hbm [shape: bf16[64,64], index: 11, kind: input, shape index: {}]   ;;  %s4983_s12 = inlined_call_operand.vmem [shape: f32[1,64], index: 12, kind: input, shape index: {}]   ;;  %s4984_s13 = inlined_call_operand.vmem [shape: f32[1,64], index: 13, kind: input, shape index: {}]   ;;  %s4985_s14 = inlined_call_operand.vmem [shape: f32[1,64], index: 14, kind: input, shape index: {}]   ;;  %s4986_s15 = inlined_call_operand.hbm [shape: bf16[64,128], index: 15, kind: input, shape index: {}]   ;;  %s4987_s16 = inlined_call_operand.vmem [shape: f32[1,128], index: 16, kind: input, shape index: {}]   ;;  %s4988_s17 = inlined_call_operand.vmem [shape: bf16[128,64], index: 17, kind: input, shape index: {}]   ;;  %s4989_s18 = inlined_call_operand.vmem [shape: f32[1,64], index: 18, kind: input, shape index: {}]   ;;  %s4990_s19 = inlined_call_operand.hbm [shape: f32[2,16,64], index: 19, kind: output, shape index: {}]  }
   0x1   :  { %5005 = sst [smem:[#allocation24_spill]] %s4971_s0 }
   0x2   :  { %5006 = sst [smem:[#allocation25_spill]] %s4972_s1 }
   0x3   :  { %5007 = sst [smem:[#allocation26_spill]] %s4973_s2 }
   0x4   :  { %5008 = sst [smem:[#allocation27_spill]] %s4976_s5 }
   0x5   :  { %5009 = sst [smem:[#allocation28_spill]] %s4977_s6 }
   0x6   :  { %5010 = sst [smem:[#allocation29_spill]] %s4980_s9 }
   0x7   :  { %5011 = sst [smem:[#allocation30_spill]] %s4981_s10 }
   0x8   :  { %5012 = sst [smem:[#allocation31_spill]] %s4982_s11 }
   0x9   :  { %5013 = sst [smem:[#allocation32_spill]] %s4983_s12 }
   0xa   :  { %5014 = sst [smem:[#allocation33_spill]] %s4984_s13 }
   0xb   :  { %5015 = sst [smem:[#allocation34_spill]] %s4985_s14 }
   0xc   :  { %5016 = sst [smem:[#allocation35_spill]] %s4986_s15 }
   0xd   :  { %5017 = sst [smem:[#allocation36_spill]] %s4987_s16 }
   0xe   :  { %5018 = sst [smem:[#allocation37_spill]] %s4988_s17 }
   0xf   :  { %5019 = sst [smem:[#allocation38_spill]] %s4989_s18 }
  0x10   :  { %5020 = sst [smem:[#allocation39_spill]] %s4990_s19 }
  0x11   :  { %24 = vsyncpa [#allocation6], 0 }
  0x12   :  { %26 = vsyncpa [#allocation6 + $0x1], 0 }
  0x13   :  { %27 = vsyncpa [#allocation9], 0 }
  0x14   :  { %28 = vsyncpa [#allocation12], 0 }
  0x15   :  { %29 = vsyncpa [#allocation7], 0 }
  0x16   :  { %31 = vsyncpa [#allocation7 + $0x1], 0  ;;  %s4233_s28 = smov 0   ;;  %s4235_s0 = smov 0  }
  0x17   :  { %s4237_s29 = smov 0   ;;  %s4239_s30 = smov 0  }
  0x18   :  { %s4241_s20 = smov 0   ;;  %s4243_s1 = smov 0  }
  0x19   :  { %s4245_s21 = smov 0   ;;  %s4247_s2 = smov 0  }
  0x1a   :  { %s4249_s22 = smov 0   ;;  %s4251_s23 = smov 0  }
  0x1b   :  { %s4253_s24 = smov 0  }
  0x1c LB: > { %5021 = sst [smem:[#allocation18_spill]] %s4064_s28  ;;  %s3296_s25 = sadd.s32 4294967295, %s4104_s24   ;;  %s4104_s24 = sphi %s4253_s24, %s37_s24   ;;  %s4100_s23 = sphi %s4251_s23, %s5071_s23   ;;  %s4096_s22 = sphi %s4249_s22, %s5062_s22   ;;  %s4092_s2 = sphi %s4247_s2, %s5070_s2   ;;  %s4088_s21 = sphi %s4245_s21, %s5061_s21   ;;  %s4084_s1 = sphi %s4243_s1, %s5069_s1   ;;  %s4080_s20 = sphi %s4241_s20, %s5068_s20   ;;  %s4076_s30 = sphi %s4239_s30, %s5067_s30   ;;  %s4072_s29 = sphi %s4237_s29, %s5066_s29   ;;  %s4068_s0 = sphi %s4235_s0, %s5065_s0   ;;  %s4064_s28 = sphi %s4233_s28, %s5064_s28  }
  0x1d   : > { %5022 = sst [smem:[#allocation19_spill]] %s4096_s22  ;;  %s3297_s3 = sadd.s32 4294967294, %s4104_s24  }
  0x1e   : > { %p69_p0 = scmp.ne.s32.totalorder %s4080_s20, %s4076_s30  ;;  %p4289_p1 = scmp.eq.s32.totalorder %s3296_s25, 0 }
  0x1f   : > { %p484_p2 = scmp.ne.s32.totalorder %s4072_s29, %s4068_s0  ;;  %p485_p4 = scmp.eq.s32.totalorder %s3296_s25, 3 }
  0x20   : > { %p4298_p3 = por %p4289_p1, %p69_p0  ;;  %p490_p5 = scmp.ne.s32.totalorder %s4068_s0, %s4064_s28 }
  0x21   : > { %p491_p6 = scmp.eq.s32.totalorder %s3297_s3, 3  ;;  %p4304_p7 = por %p485_p4, %p484_p2 }
  0x22   : > { %p3298_p8 = scmp.ge.s32.totalorder %s4104_s24, 1  ;;  %p498_p10 = scmp.lt.s32.totalorder %s4104_s24, 5 }
  0x23   : > { %s5025_s19 = scalar_select %p4304_p7, 1, 0 }
  0x24   : > { %p4309_p9 = por %p491_p6, %p490_p5  ;;  %p4314_p11 = pnand %p3298_p8, %p498_p10 }
  0x25   : > { %5026 = sst [smem:[#allocation20_spill]] %s5025_s19  ;;  %s4106_s18 = smov [#allocation8]  }
  0x26   : > { %s5027_s30 = scalar_select %p4309_p9, 1, 0 }
  0x27   : > { %s528_s16 = sshll.u32 %s4106_s18, 4  ;;  %p3657_p12 = pneg %p4314_p11  ;;  %s529_s16 = int_to_ptr.vmem [resolvable:$true] %s528_s16 }
  0x28   : > { %5028 = sst [smem:[#allocation21_spill]] %s5027_s30  ;;  %s4107_s3 = smov [#allocation10]  }
  0x29   : > { %p4322_p13 = pnand %p3657_p12, %p4289_p1  ;;  %s544_s30 = sshll.u32 %s4107_s3, 4  ;;  %s545_s30 = int_to_ptr.vmem [resolvable:$true] %s544_s30 }
  0x2a   : > { %s4108_s28 = smov [#allocation11]   ;;  %s3881_s17 = scalar_lea.vmem %s529_s16, 512 }
  0x2b   : > { %s566_s19 = sshll.u32 %s4108_s28, 4  ;;  %p3872_p0 = pneg %p4322_p13  ;;  %s567_s19 = int_to_ptr.vmem [resolvable:$true] %s566_s19 }
  0x2c   : > { %p3882_p2 = scmp.ne.s32.totalorder %s529_s16, %s3881_s17  ;;  %p3889_p6 = scmp.lt.s32.totalorder %s529_s16, %s529_s16 }
  0x2d   : > { %p3890_p8 = scmp.lt.s32.totalorder %s3881_s17, %s3881_s17 }
  0x2e   : > { %p3884_p4 = pnand %p3882_p2, %p3872_p0 }
  0x2f   : > { %p3891_p10 = por %p3890_p8, %p3889_p6 }
  0x30   : > { %p3885_p5 = pneg %p3884_p4 }
  0x32   : > { %p3892_p12 = pnand %p3891_p10, %p3885_p5 }
  0x34   : > { %3895 = shalt.err (!%p3892_p12)
}
  0x35   : > { %s4997_s18 = smov 64   ;;  %s4998_s3 = smov 4  }
  0x36   : > { %s5031_s9 = sld [smem:[#allocation29_spill]]  ;;  %s3907_s13 = scalar_lea.vmem %s545_s30, 512 }
  0x37   : > { %p3908_p2 = scmp.ne.s32.totalorder %s545_s30, %s3907_s13  ;;  %p3915_p5 = scmp.lt.s32.totalorder %s545_s30, %s545_s30 }
  0x38   : > { %p3916_p8 = scmp.lt.s32.totalorder %s3907_s13, %s3907_s13 }
  0x39   : > { %p3910_p4 = pnand %p3908_p2, %p3872_p0 }
  0x3a   : > { %p3917_p10 = por %p3916_p8, %p3915_p5 }
  0x3b   : > { %p3911_p6 = pneg %p3910_p4 }
  0x3c   : > { %3660 = dma.hbm_to_vmem [thread:$0]  (!%p4322_p13), %s5031_s9, 512, %s529_s16, [#allocation9], %s4997_s18, %s4997_s18, %s4998_s3  }
  0x3d   : > { %p3918_p12 = pnand %p3917_p10, %p3911_p6 }
  0x3f   : > { %3921 = shalt.err (!%p3918_p12)
}
  0x40   : > { %s5032_s11 = sld [smem:[#allocation31_spill]]  ;;  %s3933_s14 = scalar_lea.vmem %s567_s19, 512 }
  0x41   : > { %p3934_p9 = scmp.ne.s32.totalorder %s567_s19, %s3933_s14  ;;  %p3941_p5 = scmp.lt.s32.totalorder %s567_s19, %s567_s19 }
  0x42   : > { %p3942_p6 = scmp.lt.s32.totalorder %s3933_s14, %s3933_s14 }
  0x43   : > { %p3936_p2 = pnand %p3934_p9, %p3872_p0 }
  0x44   : > { %p3943_p8 = por %p3942_p6, %p3941_p5 }
  0x45   : > { %p3937_p4 = pneg %p3936_p2 }
  0x46   : > { %3663 = dma.hbm_to_vmem [thread:$0]  (!%p4322_p13), %s5032_s11, 512, %s545_s30, [#allocation9], %s4997_s18, %s4997_s18, %s4998_s3  }
  0x47   : > { %p3944_p10 = pnand %p3943_p8, %p3937_p4 }
  0x49   : > { %3947 = shalt.err (!%p3944_p10)
}
  0x4a   : > { %s5033_s15 = sld [smem:[#allocation35_spill]]  ;;  %s46_s16 = sadd.s32 1, %s4096_s22 }
  0x4b   : > { %p47_p9 = scmp.ge.s32.totalorder %s46_s16, 2  ;;  %s49_s30 = sadd.s32 1, %s4100_s23 }
  0x4c   : > { %s56_s25 = sadd.s32 1, %s4084_s1  ;;  %p63_p0 = scmp.ne.s32.totalorder %s4084_s1, %s4080_s20 }
  0x4d   : > { %s5073_s16 = smov (%p47_p9, %s46_s16), 0  ;;  %s5075_s30 = smov (!%p47_p9, %s49_s30), %s4100_s23 }
  0x4e   : > { %5034 = sst [smem:[#allocation22_spill]] %s5073_s16  ;;  %p64_p12 = scmp.eq.s32.totalorder %s4104_s24, 0 }
  0x4f   : > { %s470_s28 = ssub.s32 %s4096_s22, %s5073_s16  ;;  %p51_p2 = scmp.ge.s32.totalorder %s5075_s30, 2 }
  0x50   : > { %3666 = dma.hbm_to_vmem [thread:$0]  (!%p4322_p13), %s5033_s15, 512, %s567_s19, [#allocation12], %s4997_s18, %s4997_s18, %s4998_s3  }
  0x51   : > { %p3678_p4 = scmp.lt.s32.totalorder %s4104_s24, 4  ;;  %p4373_p13 = por %p64_p12, %p63_p0 }
  0x52   : > { %s589_s17 = sand.u32 1, %s4084_s1   ;;  %s5077_s30 = smov (%p51_p2, %s5075_s30), 0 }
  0x53   : > { %5036 = sst [smem:[#allocation23_spill]] %s5077_s30  ;;  %s3303_s14 = sshll.u32 %s589_s17, 3 }
  0x54   : > { %s53_s12 = ssub.s32 %s4100_s23, %s5077_s30  ;;  %s3398_s18 = sshll.u32 %s4100_s23, 7 }
  0x55   : > { %p54_p5 = scmp.eq.s32.totalorder %s53_s12, 0  ;;  %s471_s13 = sor.u32 %s470_s28, %s53_s12 }
  0x56   : > { %p472_p6 = scmp.eq.s32.totalorder %s471_s13, 0  ;;  %s5037_s9 = sadd.s32 1, %s4072_s29 }
  0x57   : > { %s4384_s3 = scalar_select %p54_p5, %s4084_s1, %s56_s25  }
  0x58   : > { %s4389_s11 = scalar_select %p472_p6, %s4072_s29, %s5037_s9  }
  0x59   : > { %s5038_s22 = sld [smem:[#allocation24_spill]]  ;;  %s593_s5 = scalar_lea.vmem [#allocation5], %s3303_s14 }
  0x5a   : > { %s600_s10 = sshll.u32 %s593_s5, 4  ;;  %p4398_p8 = pnand %p3678_p4, %p4373_p13  ;;  %s601_s10 = int_to_ptr.vmem [resolvable:$true] %s600_s10 }
  0x5b   : > { %s590_s28 = scalar_lea.sflag [#allocation6], %s589_s17  ;;  %s3961_s25 = scalar_lea.vmem %s601_s10, 128 }
  0x5c   : > { %p3950_p10 = pneg %p4398_p8  ;;  %p3962_p9 = scmp.ne.s32.totalorder %s601_s10, %s3961_s25 }
  0x5d   : > { %s4111_s9 = smov [#allocation5]  }
  0x5e   : > { %p3964_p0 = pnand %p3962_p9, %p3950_p10  ;;  %s3966_s15 = sshll.u32 %s4111_s9, 4  ;;  %s3967_s15 = int_to_ptr.vmem [resolvable:$false] %s3966_s15 }
  0x5f   : > { %s599_s6 = scalar_lea.hbm %s5038_s22, %s3398_s18  ;;  %s3968_s22 = scalar_lea.vmem %s3967_s15, 256 }
  0x60   : > { %p3965_p12 = pneg %p3964_p0  ;;  %p3969_p2 = scmp.lt.s32.totalorder %s601_s10, %s3967_s15 }
  0x61   : > { %p3970_p5 = scmp.lt.s32.totalorder %s3968_s22, %s3961_s25 }
  0x63   : > { %p3971_p6 = por %p3970_p5, %p3969_p2 }
  0x65   : > { %p3972_p7 = pnand %p3971_p6, %p3965_p12 }
  0x67   : > { %3975 = shalt.err (!%p3972_p7)
}
  0x68   : > { %s5040_s5 = smov 4   ;;  %s5041_s18 = smov 64  }
  0x69   : > { %3670 = dma.hbm_to_vmem [thread:$0]  (!%p4398_p8), %s599_s6, 128, %s601_s10, %s590_s28, %s5041_s18, %s5041_s18, %s5040_s5  }
  0x6a   : > { %629 = sbr.rel (%p4314_p11) target bundleno = 2901 (0xb55), region = 96  ;;  %s631_s16 = sand.u32 (!%p4314_p11), 1, %s4080_s20  }
  0x6b   : > { %s4412_s19 = sshll.u32 (!%p4314_p11), %s631_s16, 3  ;;  %s632_s17 = scalar_lea.sflag (!%p4314_p11), [#allocation6], %s631_s16 }
  0x6c   : > { %s635_s14 = scalar_lea.vmem (!%p4314_p11), [#allocation5], %s4412_s19 }
  0x6f   : > { %4047 = dma.done.wait (%p4298_p3), %s632_s17, 128  }
  0x70   : > { %4049 = vsyncadd (%p4298_p3), %s632_s17, 4294967168 }
  0x71   : > { %4051 = dma.done.wait (%p4289_p1), [#allocation9], 1024  }
  0x72   : > { %4053 = vsyncadd (%p4289_p1), [#allocation9], 4294966272 }
  0x73   : > { %4055 = dma.done.wait (%p4289_p1), [#allocation12], 512  }
  0x74   : > { %4057 = vsyncadd (%p4289_p1), [#allocation12], 4294966784  ;;  %s5004_s6 = sand.u32 1, %s4068_s0   ;;  %p713_p3 = scmp.lt.s32.totalorder %s4092_s2, 1 }
  0x75   : > { %s4431_s10 = sshll.u32 %s5004_s6, 3  ;;  %p715_p7 = scmp.lt.s32.totalorder %s4088_s21, 1 }
  0x76   : > { %s4435_s27 = scalar_select %p713_p3, %s4092_s2, 1 }
  0x77   : > { %s716_s4 = scalar_select %p715_p7, %s4088_s21, 1 }
  0x78   : > { %s3312_s26 = sshll.u32 %s4435_s27, 1  ;;  %s5042_s13 = sld [smem:[#allocation26_spill]] }
  0x79   : > { %s718_s25 = sadd.s32 %s3312_s26, %s716_s4  ;;  %s5043_s5 = sld [smem:[#allocation25_spill]] }
  0x7a   : > { %s3313_s9 = sshll.u32 %s718_s25, 3  ;;  %s712_s16 = scalar_lea.vmem [#allocation13], %s4431_s10 }
  0x7b   : > { %p3314_p1 = scmp.ne.s32.totalorder %s4088_s21, 0 }
  0x7c   : > { %s4114_s19 = smov (!%p3314_p1), 80   ;;  %s4116_s17 = smov (!%p3314_p1), 96  }
  0x7d   : > { %728 = sbr.rel (%p3314_p1) target bundleno = 515 (0x203), region = 116  ;;  %s4117_s30 = smov (!%p3314_p1), 120  }
  0x7e   : > { %s723_s28 = scalar_lea.vmem %s5042_s13, %s4435_s27 }
  0x7f   : > { %s4446_s18 = scalar_lea.vmem %s5043_s5, %s3313_s9  ;;  %s5044_s5 = sld [smem:[#allocation30_spill]] (!%p3314_p1) }
  0x82   : > { %v3796_v0 = vld [vmem:[%s4978_s7 + $0x18] sm:$0xff]   ;;  %v4112_v1 = vmov 0.0   ;;  %v3797_v2 = vld [vmem:[#allocation8 + $0x18] sm:$0xff]   ;;  %vm4113_vm0 = vmmov 0   ;;  %v3799_v4 = vld [vmem:[#allocation8 + $0x10] sm:$0xff]   ;;  %vm775_vm1 = vcmask 523264   ;;  %v934_v20 = vlaneseq }
  0x83   : > { %3465 = vmatprep.subr.bf16.mxu0 %v4112_v1  ;;  %3477 = vmatprep.subr.bf16.mxu1 %v4112_v1  ;;  %v3798_v3 = vld [vmem:[%s4978_s7 + $0x10] sm:$0xff]   ;;  %v3800_v5 = vld [vmem:[%s4978_s7 + $0x8] sm:$0xff]   ;;  %v3801_v6 = vld [vmem:[#allocation8 + $0x8] sm:$0xff]   ;;  %vm1460_vm2 = vcmask 57344   ;;  %v4118_v31 = vmov 1983009808  }
  0x84   : > { %3466 = vmatpush3.bf16.msra.mxu0 %v3796_v0  ;;  %3473 = vmatprep.mubr.msk.bf16.mxu0 %vm4113_vm0, %v4112_v1  ;;  %v3802_v7 = vld [vmem:[%s4978_s7] sm:$0xff]   ;;  %v3803_v8 = vld [vmem:[#allocation8] sm:$0xff]   ;;  %v935_v26 = vshrl.u32 %v934_v20, 7  ;;  %v932_v32 = vunpack.c.l.s4 %v4118_v31  ;;  %v4119_v33 = vmov 1934713408   ;;  %v4120_v36 = vmov 0  }
  0x85   : > { %3478 = vmatpush3.bf16.msra.mxu1 %v3797_v2  ;;  %3467 = vmatprep.subr.bf16.mxu0 %v4112_v1  ;;  %v3804_v9 = vld [vmem:[%s635_s14] sm:$0xff]   ;;  %v3315_v12 = vld [vmem:[%s4979_s8] ss:$0 sm:$0xff]  ;;  %s4115_s14 = smov 112   ;;  %v963_v34 = vunpack.c.l.s4 %v4119_v33  ;;  %v4476_v37 = vpack.i.b16 %v4120_v36, %v4120_v36  ;;  %vm1451_vm3 = vcmask 125952  }
  0x86   : > { %3479 = vmatprep.subr.bf16.mxu1 %v4112_v1  ;;  %3485 = vmatprep.mubr.msk.bf16.mxu1 %vm4113_vm0, %v4112_v1  ;;  %v3322_v15 = vld [vmem:[%s5044_s5] ss:$0 sm:$0xff]  ;;  %v1499_v28 = vsub.s32 0, %v935_v26  ;;  %v933_v35 = vunpack.c.0.s8 %v932_v32 }
  0x87   : > { %v1450_v29 = vld [vmem:[%s723_s28] sm:$0x1]  ;;  %v964_v38 = vunpack.c.0.s8 %v963_v34 }
  0x88   : > { %3468 = vmatpush3.bf16.msra.mxu0 %v3798_v3  ;;  %v1500_v30 = vrot.slane %v1450_v29, %v1499_v28  ;;  %1461 = vst.msk [vmem:[#allocation4] sm:$0x1] %vm1460_vm2, %v1450_v29  ;;  %v4478_v41 = vsub.s32 %v933_v35, %v935_v26 }
  0x89   : > { %3480 = vmatpush3.bf16.msra.mxu1 %v3799_v4  ;;  %3469 = vmatprep.subr.bf16.mxu0 %v4112_v1  ;;  %v4481_v47 = vsub.s32 %v964_v38, %v935_v26 }
  0x8a   : > { %3481 = vmatprep.subr.bf16.mxu1 %v4112_v1 }
  0x8c   : > { %3470 = vmatpush3.bf16.msra.mxu0 %v3800_v5 }
  0x8d   : > { %3482 = vmatpush3.bf16.msra.mxu1 %v3801_v6  ;;  %3471 = vmatprep.subr.bf16.mxu0 %v4112_v1 }
  0x8e   : > { %3483 = vmatprep.subr.bf16.mxu1 %v4112_v1 }
  0x90   : > { %3472 = vmatpush3.bf16.msra.mxu0 %v3802_v7 }
  0x91   : > { %3484 = vmatpush3.bf16.msra.mxu1 %v3803_v8 }
  0x93   : > { %3474 = vmatmul.mubr.msk.bf16.vlgmr.msra.gmra.mxu0 %vm775_vm1, %v3804_v9 }
  0x94   : > { %3486 = vmatmul.mubr.msk.bf16.vlgmr.msra.gmra.mxu1 %vm775_vm1, %v3804_v9 }
 0x153   : > { %v813_v10 = vpop.f32.mrf.mxu0 }
 0x154   : > { %v893_v11 = vpop.f32.mrf.mxu1  ;;  %v814_v17 = vadd.f32 %v3315_v12, %v813_v10 }
 0x155   : > { %v3475_v13 = vpop.f32.mrf.mxu0  ;;  %v894_v22 = vadd.f32 %v3322_v15, %v893_v11 }
 0x156   : > { %v3487_v14 = vpop.f32.mrf.mxu1 }
 0x157   : > { %v816_v16 = vpop.f32.mrf.mxu0 }
 0x158   : > { %v817_v18 = vadd.f32 %v3315_v12, %v816_v16  ;;  %v896_v19 = vpop.f32.mrf.mxu1 }
 0x159   : > { %v3476_v21 = vpop.f32.mrf.mxu0  ;;  %v897_v24 = vadd.f32 %v3322_v15, %v896_v19 }
 0x15a   : > { %v900_v23 = vpack.c.bf16 %v817_v18, %v814_v17  ;;  %v3488_v25 = vpop.f32.mrf.mxu1 }
 0x15b   : > { %v1178_v27 = vpack.c.bf16 %v897_v24, %v894_v22 }
 0x15c   : > { %906 = vrot.lane.b32.xlu1 %v900_v23, %s4114_s19  ;;  %902 = vrot.lane.b32.xlu0 %v900_v23, %s4115_s14  ;;  %v912_v43 = vshrl.u32 %v900_v23, 16 }
 0x15d   : > { %v1190_v48 = vshrl.u32 %v1178_v27, 16 }
 0x160   : > { %1180 = vrot.lane.b32.xlu1 %v1178_v27, %s4115_s14  ;;  %904 = vrot.lane.b32.xlu0 %v900_v23, %s4116_s17 }
 0x164   : > { %1184 = vrot.lane.b32.xlu1 %v1178_v27, %s4114_s19  ;;  %1182 = vrot.lane.b32.xlu0 %v1178_v27, %s4116_s17 }
 0x168   : > { %1501 = vrot.lane.b32.xlu0 %v1500_v30, %s4117_s30 }
 0x1ce   : > { %v907_v39 = vpop.permute.xlu1 %906  ;;  %v903_v40 = vpop.permute.xlu0 %902 }
 0x1cf   : > { %v910_v42 = vpack.i.b16 %v903_v40, %v900_v23  ;;  %v913_v44 = vshrl.u32 %v903_v40, 16  ;;  %v921_v51 = vshrl.u32 %v907_v39, 16 }
 0x1d1   : > { %v914_v45 = vpack.i.b16 %v913_v44, %v912_v43  ;;  %v930_v46 = vcombine.high %v910_v42, %v4476_v37  ;;  %v937_v52 = vrot.slane %v910_v42, %v4478_v41 }
 0x1d2   : > { %v1181_v49 = vpop.permute.xlu1 %1180  ;;  %v905_v50 = vpop.permute.xlu0 %904 }
 0x1d3   : > { %v996_v53 = vcombine.high %v914_v45, %v4476_v37  ;;  %v1188_v54 = vpack.i.b16 %v1181_v49, %v1178_v27  ;;  %v944_v55 = vrot.slane %v930_v46, %v4478_v41  ;;  %v1191_v56 = vshrl.u32 %v1181_v49, 16 }
 0x1d4   : > { %v918_v57 = vpack.i.b16 %v907_v39, %v905_v50  ;;  %v920_v58 = vshrl.u32 %v905_v50, 16  ;;  %v1003_v59 = vrot.slane %v914_v45, %v4478_v41 }
 0x1d5   : > { %v1010_v60 = vrot.slane %v996_v53, %v4478_v41  ;;  %v1202_v61 = vcombine.high %v1188_v54, %v4476_v37  ;;  %v4490_v62 = vrot.slane %v1188_v54, %v4478_v41  ;;  %v1192_v63 = vpack.i.b16 %v1191_v56, %v1190_v48 }
 0x1d6   : > { %v922_v0 = vpack.i.b16 %v921_v51, %v920_v58  ;;  %v945_v1 = vcombine.high %v918_v57, %v4476_v37  ;;  %v952_v2 = vrot.slane %v918_v57, %v4478_v41  ;;  %v1185_v3 = vpop.permute.xlu1 %1184  ;;  %v1183_v4 = vpop.permute.xlu0 %1182 }
 0x1d7   : > { %v4495_v5 = vrot.slane %v1202_v61, %v4478_v41  ;;  %v1199_v6 = vshrl.u32 %v1185_v3, 16  ;;  %v1196_v7 = vpack.i.b16 %v1185_v3, %v1183_v4  ;;  %v1198_v8 = vshrl.u32 %v1183_v4, 16 }
 0x1d8   : > { %v1268_v9 = vcombine.high %v1192_v63, %v4476_v37  ;;  %v4499_v10 = vrot.slane %v1192_v63, %v4478_v41  ;;  %v959_v11 = vrot.slane %v945_v1, %v4478_v41  ;;  %v960_v12 = vcombine.low %v937_v52, %v952_v2 }
 0x1d9   : > { %v961_v13 = vcombine.high %v937_v52, %v952_v2  ;;  %v1011_v14 = vcombine.high %v922_v0, %v4476_v37  ;;  %v1018_v15 = vrot.slane %v922_v0, %v4478_v41  ;;  %v4504_v16 = vpack.i.b16 %v1199_v6, %v1198_v8 }
 0x1da   : > { %v4507_v17 = vrot.slane %v1268_v9, %v4478_v41  ;;  %v968_v18 = vrot.slane %v960_v12, %v4481_v47  ;;  %v976_v19 = vcombine.low %v944_v55, %v959_v11  ;;  %v977_v20 = vcombine.high %v944_v55, %v959_v11  ;;  %v1502_v21 = vpop.permute.xlu0 %1501 }
 0x1db   : > { %v975_v22 = vrot.slane %v961_v13, %v4481_v47  ;;  %v1025_v23 = vrot.slane %v1011_v14, %v4478_v41  ;;  %v1026_v24 = vcombine.low %v1003_v59, %v1018_v15  ;;  %v1027_v25 = vcombine.high %v1003_v59, %v1018_v15  ;;  %1505 = vst.msk [vmem:[#allocation4 + $0x1] sm:$0x1] %vm1460_vm2, %v1502_v21 }
 0x1dc   : > { %v984_v26 = vrot.slane %v976_v19, %v4481_v47  ;;  %v991_v27 = vrot.slane %v977_v20, %v4481_v47  ;;  %v1217_v28 = vcombine.high %v1196_v7, %v4476_v37  ;;  %v1224_v29 = vrot.slane %v1196_v7, %v4478_v41 }
 0x1dd   : > { %v1034_v30 = vrot.slane %v1026_v24, %v4481_v47  ;;  %v1041_v31 = vrot.slane %v1027_v25, %v4481_v47  ;;  %v1042_v32 = vcombine.low %v1010_v60, %v1025_v23  ;;  %v1043_v33 = vcombine.high %v1010_v60, %v1025_v23 }
 0x1de   : > { %v1062_v34 = vcombine.low %v968_v18, %v975_v22  ;;  %v3328_v35 = vcombine.high %v968_v18, %v975_v22  ;;  %v1078_v36 = vcombine.low %v984_v26, %v991_v27  ;;  %v3329_v38 = vcombine.high %v984_v26, %v991_v27 }
 0x1df   : > { %v1050_v39 = vrot.slane %v1042_v32, %v4481_v47  ;;  %v1057_v40 = vrot.slane %v1043_v33, %v4481_v47  ;;  %v1112_v42 = vcombine.low %v1034_v30, %v1041_v31  ;;  %v3330_v43 = vcombine.high %v1034_v30, %v1041_v31 }
 0x1e0   : > { %v1069_v44 = vrot.slane %v1062_v34, %v4478_v41  ;;  %v1077_v45 = vrot.slane %v3328_v35, %v4478_v41  ;;  %v1085_v46 = vrot.slane %v1078_v36, %v4478_v41  ;;  %v1093_v48 = vrot.slane %v3329_v38, %v4478_v41 }
 0x1e1   : > { %v1119_v49 = vrot.slane %v1112_v42, %v4478_v41  ;;  %v1127_v50 = vrot.slane %v3330_v43, %v4478_v41  ;;  %v1128_v51 = vcombine.low %v1050_v39, %v1057_v40  ;;  %v3331_v52 = vcombine.high %v1050_v39, %v1057_v40 }
 0x1e2   : > { %v1094_v53 = vcombine.low %v1069_v44, %v1077_v45  ;;  %v1102_v54 = vcombine.low %v1085_v46, %v1093_v48  ;;  %v1231_v55 = vrot.slane %v1217_v28, %v4478_v41  ;;  %v1232_v56 = vcombine.low %v4490_v62, %v1224_v29 }
 0x1e3   : > { %v1135_v57 = vrot.slane %v1128_v51, %v4478_v41  ;;  %v1143_v58 = vrot.slane %v3331_v52, %v4478_v41  ;;  %v1144_v59 = vcombine.low %v1119_v49, %v1127_v50  ;;  %v1233_v60 = vcombine.high %v4490_v62, %v1224_v29 }
 0x1e4   : > { %v1101_v61 = vrot.slane %v1094_v53, %v4481_v47  ;;  %v1109_v63 = vrot.slane %v1102_v54, %v4481_v47  ;;  %v1240_v0 = vrot.slane %v1232_v56, %v4481_v47  ;;  %v1248_v1 = vcombine.low %v4495_v5, %v1231_v55 }
 0x1e5   : > { %v1151_v2 = vrot.slane %v1144_v59, %v4481_v47  ;;  %v1152_v3 = vcombine.low %v1135_v57, %v1143_v58  ;;  %v1247_v4 = vrot.slane %v1233_v60, %v4481_v47  ;;  %v1249_v6 = vcombine.high %v4495_v5, %v1231_v55 }
 0x1e6   : > { %v1110_v7 = vcombine.low %v1101_v61, %v1109_v63  ;;  %v1111_v8 = vcombine.high %v1101_v61, %v1109_v63  ;;  %v1256_v9 = vrot.slane %v1248_v1, %v4481_v47  ;;  %v1283_v62 = vcombine.high %v4504_v16, %v4476_v37 }
 0x1e7   : > { %v1159_v11 = vrot.slane %v1152_v3, %v4481_v47  ;;  %v1263_v12 = vrot.slane %v1249_v6, %v4481_v47  ;;  %v1290_v13 = vrot.slane %v4504_v16, %v4478_v41  ;;  %v1334_v14 = vcombine.low %v1240_v0, %v1247_v4 }
 0x1e8   : > { %v1166_v15 = vshrl.u32 %v1110_v7, 16  ;;  %v1174_v18 = vshrl.u32 %v1111_v8, 16  ;;  %v1297_v19 = vrot.slane %v1283_v62, %v4478_v41  ;;  %v3332_v5 = vcombine.high %v1240_v0, %v1247_v4 }
 0x1e9   : > { %v1160_v20 = vcombine.low %v1151_v2, %v1159_v11  ;;  %v1161_v21 = vcombine.high %v1151_v2, %v1159_v11  ;;  %v1298_v22 = vcombine.low %v4499_v10, %v1290_v13  ;;  %v1299_v23 = vcombine.high %v4499_v10, %v1290_v13 }
 0x1ea   : > { %v1314_v37 = vcombine.low %v4507_v17, %v1297_v19  ;;  %v1315_v24 = vcombine.high %v4507_v17, %v1297_v19  ;;  %v1341_v25 = vrot.slane %v1334_v14, %v4478_v41  ;;  %v1349_v16 = vrot.slane %v3332_v5, %v4478_v41 }
 0x1eb   : > { %v1164_v26 = vpack.i.b16 %v1160_v20, %v1110_v7  ;;  %v1167_v27 = vshrl.u32 %v1160_v20, 16  ;;  %v1172_v28 = vpack.i.b16 %v1161_v21, %v1111_v8  ;;  %v1175_v29 = vshrl.u32 %v1161_v21, 16 }
 0x1ec   : > { %v1306_v30 = vrot.slane %v1298_v22, %v4481_v47  ;;  %v1313_v31 = vrot.slane %v1299_v23, %v4481_v47  ;;  %v1322_v32 = vrot.slane %v1314_v37, %v4481_v47  ;;  %v1329_v10 = vrot.slane %v1315_v24, %v4481_v47 }
 0x1ed   : > { %v1168_v33 = vpack.i.b16 %v1167_v27, %v1166_v15  ;;  %v1176_v34 = vpack.i.b16 %v1175_v29, %v1174_v18  ;;  %1452 = vst.msk [vmem:[#allocation2] sm:$0xf] %vm1451_vm3, %v1164_v26  ;;  %1454 = vst.msk [vmem:[#allocation2 + $0x8] sm:$0xf] %vm1451_vm3, %v1172_v28  ;;  %v3336_v17 = vcombine.high %v1164_v26, %v1164_v26 }
 0x1ee   : > { %v3338_v35 = vcombine.high %v1172_v28, %v1172_v28  ;;  %v1350_v36 = vcombine.low %v1256_v9, %v1263_v12  ;;  %v3333_v38 = vcombine.high %v1256_v9, %v1263_v12  ;;  %v1384_v39 = vcombine.low %v1306_v30, %v1313_v31 }
 0x1ef   : > { %1453 = vst.msk [vmem:[#allocation2 + $0x4] sm:$0xf] %vm1451_vm3, %v1168_v33  ;;  %1455 = vst.msk [vmem:[#allocation2 + $0xc] sm:$0xf] %vm1451_vm3, %v1176_v34  ;;  %v3337_v40 = vcombine.high %v1168_v33, %v1168_v33  ;;  %v3339_v42 = vcombine.high %v1176_v34, %v1176_v34  ;;  %v3334_v43 = vcombine.high %v1306_v30, %v1313_v31 }
 0x1f0   : > { %1475 = vst.msk [vmem:[#allocation2 + $0x10] sm:$0xf] %vm1451_vm3, %v3336_v17  ;;  %1477 = vst.msk [vmem:[#allocation2 + $0x18] sm:$0xf] %vm1451_vm3, %v3338_v35  ;;  %v1400_v44 = vcombine.low %v1322_v32, %v1329_v10  ;;  %v1357_v45 = vrot.slane %v1350_v36, %v4478_v41  ;;  %v1365_v46 = vrot.slane %v3333_v38, %v4478_v41 }
 0x1f1   : > { %v1366_v48 = vcombine.low %v1341_v25, %v1349_v16  ;;  %v1391_v49 = vrot.slane %v1384_v39, %v4478_v41  ;;  %1476 = vst.msk [vmem:[#allocation2 + $0x14] sm:$0xf] %vm1451_vm3, %v3337_v40  ;;  %1478 = vst.msk [vmem:[#allocation2 + $0x1c] sm:$0xf] %vm1451_vm3, %v3339_v42  ;;  %v1399_v50 = vrot.slane %v3334_v43, %v4478_v41 }
 0x1f2   : > { %v1407_v51 = vrot.slane %v1400_v44, %v4478_v41  ;;  %v3335_v52 = vcombine.high %v1322_v32, %v1329_v10  ;;  %v1374_v53 = vcombine.low %v1357_v45, %v1365_v46 }
 0x1f3   : > { %v1416_v55 = vcombine.low %v1391_v49, %v1399_v50  ;;  %v1373_v56 = vrot.slane %v1366_v48, %v4481_v47 }
 0x1f4   : > { %v1415_v54 = vrot.slane %v3335_v52, %v4478_v41  ;;  %v1381_v57 = vrot.slane %v1374_v53, %v4481_v47 }
 0x1f5   : > { %v1423_v61 = vrot.slane %v1416_v55, %v4481_v47 }
 0x1f6   : > { %v1424_v58 = vcombine.low %v1407_v51, %v1415_v54  ;;  %v1382_v59 = vcombine.low %v1373_v56, %v1381_v57  ;;  %v1383_v60 = vcombine.high %v1373_v56, %v1381_v57 }
 0x1f8   : > { %v1431_v63 = vrot.slane %v1424_v58, %v4481_v47  ;;  %v1438_v2 = vshrl.u32 %v1382_v59, 16  ;;  %v1446_v3 = vshrl.u32 %v1383_v60, 16 }
 0x1fa   : > { %v1432_v0 = vcombine.low %v1423_v61, %v1431_v63  ;;  %v1433_v1 = vcombine.high %v1423_v61, %v1431_v63 }
 0x1fc   : > { %v1436_v4 = vpack.i.b16 %v1432_v0, %v1382_v59  ;;  %v1439_v6 = vshrl.u32 %v1432_v0, 16  ;;  %v1444_v7 = vpack.i.b16 %v1433_v1, %v1383_v60  ;;  %v1447_v41 = vshrl.u32 %v1433_v1, 16 }
 0x1fe   : > { %v1440_v8 = vpack.i.b16 %v1439_v6, %v1438_v2  ;;  %v1448_v9 = vpack.i.b16 %v1447_v41, %v1446_v3  ;;  %1456 = vst.msk [vmem:[#allocation3] sm:$0xf] %vm1451_vm3, %v1436_v4  ;;  %1458 = vst.msk [vmem:[#allocation3 + $0x8] sm:$0xf] %vm1451_vm3, %v1444_v7  ;;  %v3340_v62 = vcombine.high %v1436_v4, %v1436_v4 }
 0x1ff   : > { %v3342_v11 = vcombine.high %v1444_v7, %v1444_v7 }
 0x200   : > { %1457 = vst.msk [vmem:[#allocation3 + $0x4] sm:$0xf] %vm1451_vm3, %v1440_v8  ;;  %1459 = vst.msk [vmem:[#allocation3 + $0xc] sm:$0xf] %vm1451_vm3, %v1448_v9  ;;  %v3341_v47 = vcombine.high %v1440_v8, %v1440_v8  ;;  %v3343_v12 = vcombine.high %v1448_v9, %v1448_v9 }
 0x201   : > { %1492 = vst.msk [vmem:[#allocation3 + $0x10] sm:$0xf] %vm1451_vm3, %v3340_v62  ;;  %1494 = vst.msk [vmem:[#allocation3 + $0x18] sm:$0xf] %vm1451_vm3, %v3342_v11 }
 0x202   : > { %1493 = vst.msk [vmem:[#allocation3 + $0x14] sm:$0xf] %vm1451_vm3, %v3341_v47  ;;  %1495 = vst.msk [vmem:[#allocation3 + $0x1c] sm:$0xf] %vm1451_vm3, %v3343_v12 }
 0x203 PF: > { %s5046_s12 = sld [smem:[#allocation27_spill]]  ;;  %v4121_v14 = vmov 0.0   ;;  %vm4122_vm4 = vmmov 0   ;;  %vm1547_vm5 = vcmask 523264   ;;  %v1506_v5 = vld [vmem:[%s4446_s18] sm:$0xff]  ;;  %s4123_s4 = smov 80   ;;  %v1602_v32 = vlaneseq }
 0x204   : > { %3489 = vmatprep.subr.bf16.mxu1 %v4121_v14  ;;  %3513 = vmatprep.subr.bf16.mxu0 %v4121_v14  ;;  %v1507_v20 = vpack.c.bf16 %v1506_v5, %v1506_v5  ;;  %s5047_s17 = sld [smem:[#allocation28_spill]]  ;;  %s4124_s26 = smov 112   ;;  %v1760_v26 = vld [vmem:[#allocation2] sm:$0xf]  ;;  %vm1775_vm6 = vcmask 130048   ;;  %v4128_v54 = vmov 0  }
 0x205   : > { %3497 = vmatprep.mubr.msk.bf16.mxu1 %vm4122_vm4, %v4121_v14  ;;  %3515 = vmatprep.mubr.msk.bf16.mxu0 %vm4122_vm4, %v4121_v14  ;;  %s4125_s6 = smov 96   ;;  %v1780_v27 = vsel %vm1775_vm6, %v1760_v26, 0  ;;  %v1762_v28 = vld [vmem:[#allocation2 + $0x8] sm:$0xf]  ;;  %v4126_v30 = vmov 1983009808  }
 0x206   : > { %v1872_v29 = vsel %vm1775_vm6, %v1762_v28, 0  ;;  %v1600_v31 = vunpack.c.l.s4 %v4126_v30  ;;  %v4127_v10 = vmov 1934713408   ;;  %v1603_v17 = vshrl.u32 %v1602_v32, 7  ;;  %v1763_v32 = vld [vmem:[#allocation2 + $0xc] sm:$0xf] }
 0x207   : > { %3514 = vmatpush3.bf16.xpose.msra.mxu0 %v1872_v29  ;;  %v1617_v33 = vunpack.c.l.s4 %v4127_v10  ;;  %vm1960_vm7 = vcmask 64512   ;;  %vm2028_vm8 = vcmask 1043456   ;;  %s4129_s30 = smov 32   ;;  %s4130_s27 = smov 16   ;;  %vm2817_vm9 = vcmask 261120  }
 0x208   : > { %3525 = vmatprep.subr.bf16.mxu0 %v4121_v14  ;;  %v1601_v34 = vunpack.c.0.s8 %v1600_v31  ;;  %s4131_s28 = smov 48   ;;  %vm2819_vm10 = vcmask 392192   ;;  %s5048_s9 = sld [smem:[#allocation32_spill]] }
 0x209   : > { %v3805_v13 = vld [vmem:[%s5046_s12 + $0x18] sm:$0xff]   ;;  %v3806_v15 = vld [vmem:[%s5046_s12 + $0x10] sm:$0xff]   ;;  %v3807_v18 = vld [vmem:[%s5046_s12 + $0x8] sm:$0xff]   ;;  %v1618_v35 = vunpack.c.0.s8 %v1617_v33  ;;  %s5049_s22 = sld [smem:[#allocation33_spill]] }
 0x20a   : > { %3490 = vmatpush3.bf16.msra.mxu1 %v3805_v13  ;;  %v3808_v19 = vld [vmem:[%s5046_s12] sm:$0xff]   ;;  %v4616_v36 = vsub.s32 %v1601_v34, %v1603_v17  ;;  %v1918_v34 = vsel %vm1775_vm6, %v1763_v32, 0  ;;  %s5050_s14 = sld [smem:[#allocation34_spill]] }
 0x20b   : > { %3491 = vmatprep.subr.bf16.mxu1 %v4121_v14  ;;  %v3344_v21 = vld [vmem:[%s5047_s17] ss:$0 sm:$0xff]  ;;  %v4619_v42 = vsub.s32 %v1618_v35, %v1603_v17 }
 0x20e   : > { %3492 = vmatpush3.bf16.msra.mxu1 %v3806_v15 }
 0x20f   : > { %3493 = vmatprep.subr.bf16.mxu1 %v4121_v14 }
 0x212   : > { %3494 = vmatpush3.bf16.msra.mxu1 %v3807_v18 }
 0x213   : > { %3495 = vmatprep.subr.bf16.mxu1 %v4121_v14 }
 0x216   : > { %3496 = vmatpush3.bf16.msra.mxu1 %v3808_v19 }
 0x217   : > { %3501 = vmatprep.subr.bf16.mxu1 %v4121_v14 }
 0x219   : > { %3498 = vmatmul.mubr.msk.bf16.vlgmr.msra.gmra.mxu1 %vm1547_vm5, %v1507_v20 }
 0x21a   : > { %3503 = vmatprep.mubr.msk.bf16.mxu1 %vm4122_vm4, %v4121_v14  ;;  %3502 = vmatpush3.bf16.xpose.msra.mxu1 %v1780_v27 }
 0x21b   : > { %3507 = vmatprep.subr.bf16.mxu1 %v4121_v14 }
 0x2d9   : > { %v1585_v22 = vpop.f32.mrf.mxu1 }
 0x2da   : > { %v1586_v23 = vadd.f32 %v3344_v21, %v1585_v22 }
 0x2db   : > { %v3499_v37 = vpop.f32.mrf.mxu1 }
 0x2dc   : > { %v1591_v24 = vpack.c.bf16 %v1586_v23, %v1586_v23 }
 0x2dd   : > { %v1588_v25 = vpop.f32.mrf.mxu1 }
 0x2de   : > { %1597 = vrot.lane.b32.xlu1 %v1591_v24, %s4123_s4  ;;  %1593 = vrot.lane.b32.xlu0 %v1591_v24, %s4124_s26  ;;  %v1605_v50 = vrot.slane %v1591_v24, %v4616_v36  ;;  %v1761_v25 = vld [vmem:[#allocation2 + $0x4] sm:$0xf]  ;;  %s5051_s26 = sld [smem:[#allocation37_spill]] }
 0x2df   : > { %v3500_v16 = vpop.f32.mrf.mxu1  ;;  %v1826_v27 = vsel %vm1775_vm6, %v1761_v25, 0 }
 0x2e2   : > { %1595 = vrot.lane.b32.xlu0 %v1591_v24, %s4125_s6  ;;  %s4132_s6 = smov [#allocation13]  }
 0x350   : > { %v1598_v38 = vpop.permute.xlu1 %1597  ;;  %v1594_v39 = vpop.permute.xlu0 %1593 }
 0x351   : > { %v1647_v40 = vrot.slane %v1598_v38, %v4616_v36  ;;  %v1639_v43 = vrot.slane %v1594_v39, %v4616_v36  ;;  %v3350_v39 = vld [vmem:[#allocation4] ss:$0 sm:$0xff] }
 0x353   : > { %v1648_v44 = vcombine.low %v1639_v43, %v1647_v40  ;;  %v1649_v45 = vcombine.high %v1639_v43, %v1647_v40 }
 0x354   : > { %v1596_v46 = vpop.permute.xlu0 %1595 }
 0x355   : > { %v1656_v48 = vrot.slane %v1648_v44, %v4619_v42  ;;  %v1613_v49 = vrot.slane %v1596_v46, %v4616_v36  ;;  %v1663_v51 = vrot.slane %v1649_v45, %v4619_v42 }
 0x357   : > { %v1614_v52 = vcombine.low %v1605_v50, %v1613_v49  ;;  %v1615_v53 = vcombine.high %v1605_v50, %v1613_v49  ;;  %v1664_v55 = vcombine.high %v1656_v48, %v4128_v54  ;;  %v1665_v58 = vcombine.high %v1663_v51, %v4128_v54 }
 0x358   : > { %v1671_v59 = vshrl.u32 %v1656_v48, 16  ;;  %v1687_v2 = vshrl.u32 %v1663_v51, 16 }
 0x359   : > { %v1622_v56 = vrot.slane %v1614_v52, %v4619_v42  ;;  %v1629_v57 = vrot.slane %v1615_v53, %v4619_v42  ;;  %v1679_v1 = vshrl.u32 %v1664_v55, 16  ;;  %v1695_v9 = vshrl.u32 %v1665_v58, 16 }
 0x35b   : > { %v1630_v60 = vcombine.high %v1622_v56, %v4128_v54  ;;  %v1631_v61 = vcombine.high %v1629_v57, %v4128_v54  ;;  %v1668_v63 = vpack.i.b16 %v1656_v48, %v1622_v56  ;;  %v1670_v0 = vshrl.u32 %v1622_v56, 16 }
 0x35c   : > { %v1684_v3 = vpack.i.b16 %v1663_v51, %v1629_v57  ;;  %v1686_v4 = vshrl.u32 %v1629_v57, 16 }
 0x35d   : > { %v1672_v6 = vpack.i.b16 %v1671_v59, %v1670_v0  ;;  %v1676_v7 = vpack.i.b16 %v1664_v55, %v1630_v60  ;;  %v1678_v41 = vshrl.u32 %v1630_v60, 16  ;;  %v1692_v8 = vpack.i.b16 %v1665_v58, %v1631_v61 }
 0x35e   : > { %v1688_v62 = vpack.i.b16 %v1687_v2, %v1686_v4  ;;  %v1694_v11 = vshrl.u32 %v1631_v61, 16  ;;  %v1698_v47 = vcombine.low %v1668_v63, %v1684_v3  ;;  %v1764_v4 = vld [vmem:[#allocation3] sm:$0xf] }
 0x35f   : > { %v1680_v12 = vpack.i.b16 %v1679_v1, %v1678_v41  ;;  %v1706_v13 = vcombine.low %v1676_v7, %v1692_v8  ;;  %v1765_v7 = vld [vmem:[#allocation3 + $0x4] sm:$0xf] }
 0x360   : > { %v1696_v15 = vpack.i.b16 %v1695_v9, %v1694_v11  ;;  %v1723_v18 = vcombine.low %v1672_v6, %v1688_v62  ;;  %v1705_v19 = vrot.slane %v1698_v47, %v4616_v36  ;;  %v2030_v6 = vsel %vm2028_vm8, %v1764_v4, 0 }
 0x361   : > { %v1713_v5 = vrot.slane %v1706_v13, %v4616_v36  ;;  %v2076_v41 = vsel %vm2028_vm8, %v1765_v7, 0 }
 0x362   : > { %v1731_v20 = vcombine.low %v1680_v12, %v1696_v15  ;;  %v1730_v22 = vrot.slane %v1723_v18, %v4616_v36 }
 0x363   : > { %v1714_v21 = vcombine.low %v1705_v19, %v1713_v5 }
 0x364   : > { %v1738_v23 = vrot.slane %v1731_v20, %v4616_v36 }
 0x365   : > { %v1721_v24 = vrot.slane %v1714_v21, %v4619_v42 }
 0x366   : > { %v1739_v37 = vcombine.low %v1730_v22, %v1738_v23  ;;  %v1766_v23 = vld [vmem:[#allocation3 + $0x8] sm:$0xf] }
 0x367   : > { %v1722_v28 = vcombine.high %v1721_v24, %v4128_v54  ;;  %v1751_v10 = vshrl.u32 %v1721_v24, 16 }
 0x368   : > { %v1746_v16 = vrot.slane %v1739_v37, %v4619_v42 }
 0x369   : > { %v1757_v35 = vshrl.u32 %v1722_v28, 16 }
 0x36a   : > { %v4634_v26 = vpack.i.b16 %v1746_v16, %v1721_v24  ;;  %v1747_v29 = vcombine.high %v1746_v16, %v4128_v54  ;;  %v1752_v31 = vshrl.u32 %v1746_v16, 16 }
 0x36c   : > { %3504 = vmatmul.mubr.msk.bf16.vlgmr.msra.gmra.mxu1 %vm1775_vm6, %v4634_v26  ;;  %v4639_v30 = vpack.i.b16 %v1747_v29, %v1722_v28  ;;  %v4648_v33 = vpack.i.b16 %v1752_v31, %v1751_v10  ;;  %v1758_v17 = vshrl.u32 %v1747_v29, 16  ;;  %v1767_v28 = vld [vmem:[#allocation3 + $0xc] sm:$0xf]  ;;  %v2215_v10 = vld [vmem:[#allocation2 + $0x10] sm:$0xf] }
 0x36d   : > { %3508 = vmatpush3.bf16.xpose.msra.mxu1 %v1826_v27  ;;  %3509 = vmatprep.mubr.msk.bf16.mxu1 %vm4122_vm4, %v4121_v14  ;;  %v2122_v27 = vsel %vm2028_vm8, %v1766_v23, 0  ;;  %v2168_v32 = vsel %vm2028_vm8, %v1767_v28, 0 }
 0x36e   : > { %3516 = vmatmul.mubr.msk.bf16.vlgmr.msra.gmra.mxu0 %vm1775_vm6, %v4639_v30  ;;  %3519 = vmatprep.subr.bf16.mxu1 %v4121_v14  ;;  %v4656_v38 = vpack.i.b16 %v1758_v17, %v1757_v35  ;;  %v2233_v35 = vsel %vm1775_vm6, %v2215_v10, 0 }
 0x36f   : > { %3527 = vmatprep.mubr.msk.bf16.mxu0 %vm4122_vm4, %v4121_v14  ;;  %3526 = vmatpush3.bf16.msra.mxu0 %v2030_v6 }
 0x370   : > { %3537 = vmatprep.subr.bf16.mxu0 %v4121_v14 }
 0x374   : > { %3510 = vmatmul.mubr.msk.bf16.vlgmr.msra.gmra.mxu1 %vm1775_vm6, %v4648_v33 }
 0x375   : > { %3520 = vmatpush3.bf16.xpose.msra.mxu1 %v1918_v34  ;;  %3521 = vmatprep.mubr.msk.bf16.mxu1 %vm4122_vm4, %v4121_v14 }
 0x376   : > { %3531 = vmatprep.subr.bf16.mxu1 %v4121_v14 }
 0x37c   : > { %3522 = vmatmul.mubr.msk.bf16.vlgmr.msra.gmra.mxu1 %vm1775_vm6, %v4656_v38 }
 0x37d   : > { %3533 = vmatprep.mubr.msk.bf16.mxu1 %vm4122_vm4, %v4121_v14  ;;  %3532 = vmatpush3.bf16.msra.mxu1 %v2076_v41 }
 0x37e   : > { %3543 = vmatprep.subr.bf16.mxu1 %v4121_v14 }
 0x42c   : > { %v1816_v40 = vpop.f32.mrf.mxu1 }
 0x42d   : > { %v1817_v43 = vadd.f32 %v3350_v39, %v1816_v40 }
 0x42e   : > { %v3505_v44 = vpop.f32.mrf.mxu1  ;;  %v1908_v45 = vpop.f32.mrf.mxu0 }
 0x42f   : > { %v1961_v46 = vsel %vm1960_vm7, %v1817_v43, -inf  ;;  %v1909_v56 = vadd.f32 %v3350_v39, %v1908_v45  ;;  %v2217_v45 = vld [vmem:[#allocation2 + $0x18] sm:$0xf] }
 0x430   : > { %v3517_v48 = vpop.f32.mrf.mxu0  ;;  %1962 = vmax.xlane.f32.xlu1 %v1961_v46  ;;  %v1819_v49 = vpop.f32.mrf.mxu1  ;;  %v2319_v46 = vsel %vm1775_vm6, %v2217_v45, 0 }
 0x431   : > { %v1967_v60 = vsel %vm1960_vm7, %v1909_v56, -inf  ;;  %v2218_v48 = vld [vmem:[#allocation2 + $0x1c] sm:$0xf] }
 0x432   : > { %v3506_v50 = vpop.f32.mrf.mxu1  ;;  %v1911_v51 = vpop.f32.mrf.mxu0  ;;  %v2362_v49 = vsel %vm1775_vm6, %v2218_v48, 0 }
 0x434   : > { %v1862_v52 = vpop.f32.mrf.mxu1  ;;  %v3518_v53 = vpop.f32.mrf.mxu0 }
 0x435   : > { %v1863_v54 = vadd.f32 %v3350_v39, %v1862_v52 }
 0x436   : > { %v3511_v55 = vpop.f32.mrf.mxu1 }
 0x437   : > { %v1964_v57 = vsel %vm1960_vm7, %v1863_v54, -inf }
 0x438   : > { %1965 = vmax.xlane.f32.xlu0 %v1964_v57  ;;  %v1865_v58 = vpop.f32.mrf.mxu1 }
 0x43a   : > { %v3512_v59 = vpop.f32.mrf.mxu1 }
 0x43c   : > { %1968 = vmax.xlane.f32.xlu0 %v1967_v60  ;;  %v1954_v61 = vpop.f32.mrf.mxu1  ;;  %v3359_v60 = vld [vmem:[#allocation4 + $0x1] ss:$0 sm:$0xff] }
 0x43d   : > { %v1955_v63 = vadd.f32 %v3350_v39, %v1954_v61  ;;  %v2216_v39 = vld [vmem:[#allocation2 + $0x14] sm:$0xf] }
 0x43e   : > { %v3523_v0 = vpop.f32.mrf.mxu1  ;;  %v2276_v44 = vsel %vm1775_vm6, %v2216_v39, 0  ;;  %v2221_v39 = vld [vmem:[#allocation3 + $0x14] sm:$0xf] }
 0x43f   : > { %v1970_v1 = vsel %vm1960_vm7, %v1955_v63, -inf }
 0x440   : > { %1971 = vmax.xlane.f32.xlu1 %v1970_v1  ;;  %v1957_v2 = vpop.f32.mrf.mxu1 }
 0x442   : > { %v3524_v3 = vpop.f32.mrf.mxu1 }
 0x4b9   : > { %v1963_v8 = vpop.xlane.xlu1 %1962 }
 0x4ba   : > { %v4670_v9 = vmax.f32 %v1963_v8, -1e+30 }
 0x4bc   : > { %v1989_v62 = vsub.f32 %v1817_v43, %v4670_v9 }
 0x4be   : > { %v1993_v11 = vmul.f32 1.442695, %v1989_v62 }
 0x4c0   : > { %3825 = vpow2.f32 %v1993_v11 }
 0x4c1   : > { %v1966_v47 = vpop.xlane.xlu0 %1965 }
 0x4c2   : > { %v4673_v12 = vmax.f32 %v1966_v47, -1e+30 }
 0x4c4   : > { %v1990_v13 = vsub.f32 %v1863_v54, %v4673_v12 }
 0x4c5   : > { %v1969_v15 = vpop.xlane.xlu0 %1968 }
 0x4c6   : > { %v1995_v18 = vmul.f32 1.442695, %v1990_v13  ;;  %v4676_v19 = vmax.f32 %v1969_v15, -1e+30 }
 0x4c8   : > { %3827 = vpow2.f32 %v1995_v18  ;;  %v1991_v5 = vsub.f32 %v1909_v56, %v4676_v19 }
 0x4c9   : > { %v1972_v20 = vpop.xlane.xlu1 %1971 }
 0x4ca   : > { %v1997_v21 = vmul.f32 1.442695, %v1991_v5  ;;  %v4679_v22 = vmax.f32 %v1972_v20, -1e+30 }
 0x4cc   : > { %3829 = vpow2.f32 %v1997_v21  ;;  %v1992_v37 = vsub.f32 %v1955_v63, %v4679_v22 }
 0x4cd   : > { %v4682_v24 = vpop.eup %3825 }
 0x4ce   : > { %v1999_v25 = vmul.f32 1.442695, %v1992_v37  ;;  %v2021_v16 = vpack.c.bf16 %v4682_v24, %v4682_v24 }
 0x4d0   : > { %3831 = vpow2.f32 %v1999_v25  ;;  %3528 = vmatmul.mubr.msk.bf16.vlgmr.msra.gmra.mxu0 %vm1960_vm7, %v2021_v16  ;;  %v2005_v16 = vsel %vm1960_vm7, %v4682_v24, 0.0  ;;  %v2220_v24 = vld [vmem:[#allocation3 + $0x10] sm:$0xf] }
 0x4d1   : > { %3538 = vmatpush3.bf16.msra.mxu0 %v2122_v27  ;;  %3539 = vmatprep.mubr.msk.bf16.mxu0 %vm4122_vm4, %v4121_v14 }
 0x4d2   : > { %3549 = vmatprep.subr.bf16.mxu0 %v4121_v14 }
 0x4d5   : > { %v4691_v29 = vpop.eup %3827 }
 0x4d6   : > { %v2022_v31 = vpack.c.bf16 %v4691_v29, %v4691_v29  ;;  %v2008_v10 = vsel %vm1960_vm7, %v4691_v29, 0.0  ;;  %v1977_v29 = vsub.f32 -1e+30, %v4670_v9 }
 0x4d8   : > { %3534 = vmatmul.mubr.msk.bf16.vlgmr.msra.gmra.mxu1 %vm1960_vm7, %v2022_v31 }
 0x4d9   : > { %v4697_v34 = vpop.eup %3829  ;;  %3544 = vmatpush3.bf16.msra.mxu1 %v2168_v32  ;;  %3545 = vmatprep.mubr.msk.bf16.mxu1 %vm4122_vm4, %v4121_v14 }
 0x4da   : > { %v2023_v17 = vpack.c.bf16 %v4697_v34, %v4697_v34  ;;  %3555 = vmatprep.subr.bf16.mxu1 %v4121_v14  ;;  %v2011_v32 = vsel %vm1960_vm7, %v4697_v34, 0.0  ;;  %v1978_v34 = vsub.f32 -1e+30, %v4673_v12 }
 0x4dc   : > { %3540 = vmatmul.mubr.msk.bf16.vlgmr.msra.gmra.mxu0 %vm1960_vm7, %v2023_v17  ;;  %v1983_v45 = vmul.f32 1.442695, %v1978_v34 }
 0x4dd   : > { %v4706_v40 = vpop.eup %3831  ;;  %3550 = vmatpush3.bf16.xpose.msra.mxu0 %v2233_v35  ;;  %3551 = vmatprep.mubr.msk.bf16.mxu0 %vm4122_vm4, %v4121_v14  ;;  %v2476_v35 = vsel %vm2028_vm8, %v2220_v24, 0 }
 0x4de   : > { %v2024_v43 = vpack.c.bf16 %v4706_v40, %v4706_v40  ;;  %3561 = vmatprep.subr.bf16.mxu0 %v4121_v14  ;;  %v2014_v17 = vsel %vm1960_vm7, %v4706_v40, 0.0  ;;  %v1979_v40 = vsub.f32 -1e+30, %v4676_v19 }
 0x4e0   : > { %3546 = vmatmul.mubr.msk.bf16.vlgmr.msra.gmra.mxu1 %vm1960_vm7, %v2024_v43  ;;  %v2522_v43 = vsel %vm2028_vm8, %v2221_v39, 0 }
 0x4e1   : > { %3556 = vmatpush3.bf16.xpose.msra.mxu1 %v2276_v44  ;;  %3557 = vmatprep.mubr.msk.bf16.mxu1 %vm4122_vm4, %v4121_v14  ;;  %v1981_v44 = vmul.f32 1.442695, %v1977_v29 }
 0x4e2   : > { %3567 = vmatprep.subr.bf16.mxu1 %v4121_v14 }
 0x4e3   : > { %3833 = vpow2.f32 %v1981_v44 }
 0x4e4   : > { %3552 = vmatmul.mubr.msk.bf16.vlgmr.msra.gmra.mxu0 %vm1775_vm6, %v4634_v26  ;;  %3835 = vpow2.f32 %v1983_v45 }
 0x4e5   : > { %3562 = vmatpush3.bf16.xpose.msra.mxu0 %v2319_v46  ;;  %3563 = vmatprep.mubr.msk.bf16.mxu0 %vm4122_vm4, %v4121_v14 }
 0x4e6   : > { %3573 = vmatprep.subr.bf16.mxu0 %v4121_v14 }
 0x4e8   : > { %3558 = vmatmul.mubr.msk.bf16.vlgmr.msra.gmra.mxu1 %vm1775_vm6, %v4648_v33 }
 0x4e9   : > { %3568 = vmatpush3.bf16.xpose.msra.mxu1 %v2362_v49  ;;  %3569 = vmatprep.mubr.msk.bf16.mxu1 %vm4122_vm4, %v4121_v14  ;;  %v1985_v49 = vmul.f32 1.442695, %v1979_v40 }
 0x4ea   : > { %3579 = vmatprep.subr.bf16.mxu1 %v4121_v14 }
 0x4eb   : > { %3837 = vpow2.f32 %v1985_v49 }
 0x4ec   : > { %3564 = vmatmul.mubr.msk.bf16.vlgmr.msra.gmra.mxu0 %vm1775_vm6, %v4639_v30 }
 0x4ed   : > { %3575 = vmatprep.mubr.msk.bf16.mxu0 %vm4122_vm4, %v4121_v14  ;;  %3574 = vmatpush3.bf16.msra.mxu0 %v2476_v35 }
 0x4ee   : > { %3585 = vmatprep.subr.bf16.mxu0 %v4121_v14 }
 0x4f0   : > { %3570 = vmatmul.mubr.msk.bf16.vlgmr.msra.gmra.mxu1 %vm1775_vm6, %v4656_v38 }
 0x4f1   : > { %3581 = vmatprep.mubr.msk.bf16.mxu1 %vm4122_vm4, %v4121_v14  ;;  %3580 = vmatpush3.bf16.msra.mxu1 %v2522_v43 }
 0x4f2   : > { %3591 = vmatprep.subr.bf16.mxu1 %v4121_v14 }
 0x590   : > { %v4738_v26 = vpop.f32.mrf.mxu0 }
 0x592   : > { %v3529_v33 = vpop.f32.mrf.mxu0 }
 0x594   : > { %v2069_v50 = vpop.f32.mrf.mxu0 }
 0x596   : > { %v3530_v51 = vpop.f32.mrf.mxu0 }
 0x598   : > { %v4740_v52 = vpop.f32.mrf.mxu1 }
 0x59a   : > { %v3535_v53 = vpop.f32.mrf.mxu1 }
 0x59b   : > { %v1980_v53 = vsub.f32 -1e+30, %v4679_v22 }
 0x59c   : > { %v2115_v54 = vpop.f32.mrf.mxu1  ;;  %v4742_v55 = vpop.f32.mrf.mxu0 }
 0x59e   : > { %v3536_v30 = vpop.f32.mrf.mxu1  ;;  %v3541_v56 = vpop.f32.mrf.mxu0 }
 0x5a0   : > { %v2161_v57 = vpop.f32.mrf.mxu0  ;;  %v4744_v58 = vpop.f32.mrf.mxu1 }
 0x5a2   : > { %v3542_v38 = vpop.f32.mrf.mxu0  ;;  %v3547_v59 = vpop.f32.mrf.mxu1 }
 0x5a4   : > { %v2207_v61 = vpop.f32.mrf.mxu1  ;;  %v2269_v63 = vpop.f32.mrf.mxu0 }
 0x5a5   : > { %v2270_v0 = vadd.f32 %v3359_v60, %v2269_v63 }
 0x5a6   : > { %v3548_v1 = vpop.f32.mrf.mxu1  ;;  %v3553_v2 = vpop.f32.mrf.mxu0 }
 0x5a7   : > { %v2404_v3 = vsel %vm1960_vm7, %v2270_v0, -inf }
 0x5a8   : > { %2405 = vmax.xlane.f32.xlu0 %v2404_v3  ;;  %v2272_v4 = vpop.f32.mrf.mxu0  ;;  %v2312_v6 = vpop.f32.mrf.mxu1 }
 0x5a9   : > { %v2313_v7 = vadd.f32 %v3359_v60, %v2312_v6  ;;  %v3834_v6 = vpop.eup %3833 }
 0x5aa   : > { %v3554_v41 = vpop.f32.mrf.mxu0  ;;  %v3559_v8 = vpop.f32.mrf.mxu1 }
 0x5ab   : > { %v2407_v62 = vsel %vm1960_vm7, %v2313_v7, -inf  ;;  %v3836_v8 = vpop.eup %3835 }
 0x5ac   : > { %v2355_v11 = vpop.f32.mrf.mxu0  ;;  %2408 = vmax.xlane.f32.xlu1 %v2407_v62  ;;  %v2315_v47 = vpop.f32.mrf.mxu1  ;;  %v4782_v62 = vmul.f32 0.0, %v3834_v6 }
 0x5ad   : > { %v4748_v13 = vadd.f32 %v3359_v60, %v2355_v11  ;;  %v3838_v47 = vpop.eup %3837 }
 0x5ae   : > { %v3560_v15 = vpop.f32.mrf.mxu1  ;;  %v3565_v18 = vpop.f32.mrf.mxu0 }
 0x5af   : > { %v2410_v5 = vsel %vm1960_vm7, %v4748_v13, -inf  ;;  %v2222_v15 = vld [vmem:[#allocation3 + $0x18] sm:$0xf] }
 0x5b0   : > { %2411 = vmax.xlane.f32.xlu0 %v2410_v5  ;;  %v2358_v20 = vpop.f32.mrf.mxu0  ;;  %v2398_v21 = vpop.f32.mrf.mxu1 }
 0x5b1   : > { %v4752_v23 = vadd.f32 %v3359_v60, %v2398_v21  ;;  %v1987_v60 = vmul.f32 1.442695, %v1980_v53  ;;  %v2002_v20 = vmul.f32 0.0, %v3836_v8 }
 0x5b2   : > { %v3566_v37 = vpop.f32.mrf.mxu0  ;;  %v3571_v25 = vpop.f32.mrf.mxu1 }
 0x5b3   : > { %v2413_v27 = vsel %vm1960_vm7, %v4752_v23, -inf  ;;  %v2568_v37 = vsel %vm2028_vm8, %v2222_v15, 0  ;;  %v2211_v25 = vadd.f32 %v4740_v52, %v2002_v20 }
 0x5b4   : > { %2006 = vadd.xlane.f32.xlu0 %v2005_v16  ;;  %2414 = vmax.xlane.f32.xlu1 %v2413_v27  ;;  %v2401_v28 = vpop.f32.mrf.mxu1  ;;  %v2223_v16 = vld [vmem:[#allocation3 + $0x1c] sm:$0xf] }
 0x5b5   : > { %v2003_v28 = vmul.f32 0.0, %v3838_v47  ;;  %v2614_v24 = vsel %vm2028_vm8, %v2223_v16, 0 }
 0x5b6   : > { %v3572_v31 = vpop.f32.mrf.mxu1 }
 0x5b7   : > { %v2212_v52 = vadd.f32 %v4742_v55, %v2003_v28 }
 0x5b8   : > { %2012 = vadd.xlane.f32.xlu0 %v2011_v32  ;;  %2009 = vadd.xlane.f32.xlu1 %v2008_v10 }
 0x5bc   : > { %2015 = vadd.xlane.f32.xlu1 %v2014_v17 }
 0x631   : > { %v2406_v46 = vpop.xlane.xlu0 %2405 }
 0x632   : > { %v2416_v48 = vmax.f32 %v4670_v9, %v2406_v46 }
 0x634   : > { %v2420_v33 = vsub.f32 %v4670_v9, %v2416_v48  ;;  %v2432_v50 = vsub.f32 %v2270_v0, %v2416_v48 }
 0x635   : > { %v2409_v51 = vpop.xlane.xlu1 %2408 }
 0x636   : > { %v2424_v54 = vmul.f32 1.442695, %v2420_v33  ;;  %v2436_v30 = vmul.f32 1.442695, %v2432_v50  ;;  %v2417_v56 = vmax.f32 %v4673_v12, %v2409_v51  ;;  %v3809_v33 = vld [vmem:[#allocation10 + $0x18] sm:$0xff]  }
 0x638   : > { %3839 = vpow2.f32 %v2424_v54  ;;  %v2421_v57 = vsub.f32 %v4673_v12, %v2417_v56  ;;  %v2433_v38 = vsub.f32 %v2313_v7, %v2417_v56 }
 0x639   : > { %3841 = vpow2.f32 %v2436_v30  ;;  %v2412_v59 = vpop.xlane.xlu0 %2411 }
 0x63a   : > { %v2426_v61 = vmul.f32 1.442695, %v2421_v57  ;;  %v2438_v63 = vmul.f32 1.442695, %v2433_v38  ;;  %v2418_v9 = vmax.f32 %v4676_v19, %v2412_v59 }
 0x63c   : > { %3843 = vpow2.f32 %v2426_v61  ;;  %v2422_v0 = vsub.f32 %v4676_v19, %v2418_v9  ;;  %v2434_v1 = vsub.f32 %v4748_v13, %v2418_v9  ;;  %v2210_v13 = vadd.f32 %v4738_v26, %v4782_v62 }
 0x63d   : > { %3845 = vpow2.f32 %v2438_v63  ;;  %v2415_v2 = vpop.xlane.xlu1 %2414  ;;  %v2007_v50 = vpop.xlane.xlu0 %2006 }
 0x63e   : > { %3847 = vpow2.f32 %v1987_v60  ;;  %v2428_v3 = vmul.f32 1.442695, %v2422_v0  ;;  %v2440_v4 = vmul.f32 1.442695, %v2434_v1  ;;  %v2419_v12 = vmax.f32 %v4679_v22, %v2415_v2 }
 0x63f   : > { %v2017_v54 = vadd.f32 %v2007_v50, %v4782_v62 }
 0x640   : > { %3849 = vpow2.f32 %v2428_v3  ;;  %v2423_v7 = vsub.f32 %v4679_v22, %v2419_v12  ;;  %v2435_v41 = vsub.f32 %v4752_v23, %v2419_v12 }
 0x641   : > { %3851 = vpow2.f32 %v2440_v4  ;;  %v2010_v51 = vpop.xlane.xlu1 %2009  ;;  %v2013_v53 = vpop.xlane.xlu0 %2012 }
 0x642   : > { %v2430_v19 = vmul.f32 1.442695, %v2423_v7  ;;  %v2442_v11 = vmul.f32 1.442695, %v2435_v41  ;;  %v2018_v38 = vadd.f32 %v2010_v51, %v2002_v20  ;;  %v2019_v63 = vadd.f32 %v2013_v53, %v2003_v28 }
 0x644   : > { %3853 = vpow2.f32 %v2430_v19 }
 0x645   : > { %v3840_v18 = vpop.eup %3839  ;;  %3855 = vpow2.f32 %v2442_v11  ;;  %v2016_v30 = vpop.xlane.xlu1 %2015 }
 0x646   : > { %v3842_v5 = vpop.eup %3841  ;;  %v4786_v21 = vmul.f32 %v3840_v18, %v2210_v13  ;;  %v2444_v57 = vmul.f32 %v3840_v18, %v2017_v54 }
 0x647   : > { %v2448_v22 = vsel %vm1960_vm7, %v3842_v5, 0.0  ;;  %v2468_v23 = vpack.c.bf16 %v3842_v5, %v3842_v5 }
 0x648   : > { %2449 = vadd.xlane.f32.xlu0 %v2448_v22 }
 0x649   : > { %v3844_v27 = vpop.eup %3843  ;;  %3576 = vmatmul.mubr.msk.bf16.vlgmr.msra.gmra.mxu0 %vm1960_vm7, %v2468_v23 }
 0x64a   : > { %v3846_v26 = vpop.eup %3845  ;;  %3586 = vmatpush3.bf16.msra.mxu0 %v2568_v37  ;;  %3587 = vmatprep.mubr.msk.bf16.mxu0 %vm4122_vm4, %v4121_v14  ;;  %v4794_v31 = vmul.f32 %v3844_v27, %v2211_v25  ;;  %v2445_v61 = vmul.f32 %v3844_v27, %v2018_v38 }
 0x64b   : > { %v3848_v32 = vpop.eup %3847  ;;  %v2451_v10 = vsel %vm1960_vm7, %v3846_v26, 0.0  ;;  %v2469_v17 = vpack.c.bf16 %v3846_v26, %v3846_v26  ;;  %3597 = vmatprep.subr.bf16.mxu0 %v4121_v14 }
 0x64c   : > { %2452 = vadd.xlane.f32.xlu1 %v2451_v10  ;;  %v2004_v43 = vmul.f32 0.0, %v3848_v32 }
 0x64d   : > { %v3850_v35 = vpop.eup %3849  ;;  %3582 = vmatmul.mubr.msk.bf16.vlgmr.msra.gmra.mxu1 %vm1960_vm7, %v2469_v17 }
 0x64e   : > { %v3852_v39 = vpop.eup %3851  ;;  %3592 = vmatpush3.bf16.msra.mxu1 %v2614_v24  ;;  %3593 = vmatprep.mubr.msk.bf16.mxu1 %vm4122_vm4, %v4121_v14  ;;  %v2466_v29 = vmul.f32 %v3850_v35, %v2212_v52  ;;  %v2213_v40 = vadd.f32 %v4744_v58, %v2004_v43  ;;  %v3810_v58 = vld [vmem:[#allocation10 + $0x10] sm:$0xff]   ;;  %v2446_v1 = vmul.f32 %v3850_v35, %v2019_v63 }
 0x64f   : > { %v2454_v34 = vsel %vm1960_vm7, %v3852_v39, 0.0  ;;  %v2470_v44 = vpack.c.bf16 %v3852_v39, %v3852_v39  ;;  %3609 = vmatprep.subr.bf16.mxu1 %v4121_v14  ;;  %v2020_v2 = vadd.f32 %v2016_v30, %v2004_v43  ;;  %v3812_v30 = vld [vmem:[#allocation10] sm:$0xff]  }
 0x650   : > { %2455 = vadd.xlane.f32.xlu0 %v2454_v34 }
 0x651   : > { %v3854_v55 = vpop.eup %3853  ;;  %3588 = vmatmul.mubr.msk.bf16.vlgmr.msra.gmra.mxu0 %vm1960_vm7, %v2470_v44 }
 0x652   : > { %v3856_v45 = vpop.eup %3855  ;;  %v2467_v46 = vmul.f32 %v3854_v55, %v2213_v40  ;;  %3605 = vmatprep.mubr.msk.bf16.mxu0 %vm4122_vm4, %v4121_v14  ;;  %3598 = vmatpush3.bf16.msra.mxu0 %v3809_v33  ;;  %v2447_v12 = vmul.f32 %v3854_v55, %v2020_v2 }
 0x653   : > { %v2457_v48 = vsel %vm1960_vm7, %v3856_v45, 0.0  ;;  %v2471_v49 = vpack.c.bf16 %v3856_v45, %v3856_v45  ;;  %3599 = vmatprep.subr.bf16.mxu0 %v4121_v14 }
 0x654   : > { %2458 = vadd.xlane.f32.xlu1 %v2457_v48  ;;  %v3811_v48 = vld [vmem:[#allocation10 + $0x8] sm:$0xff]  }
 0x655   : > { %3594 = vmatmul.mubr.msk.bf16.vlgmr.msra.gmra.mxu1 %vm1960_vm7, %v2471_v49 }
 0x656   : > { %3617 = vmatprep.mubr.msk.bf16.mxu1 %vm4122_vm4, %v4121_v14  ;;  %3600 = vmatpush3.bf16.msra.mxu0 %v3810_v58 }
 0x657   : > { %3601 = vmatprep.subr.bf16.mxu0 %v4121_v14 }
 0x65a   : > { %3602 = vmatpush3.bf16.msra.mxu0 %v3811_v48 }
 0x65b   : > { %3603 = vmatprep.subr.bf16.mxu0 %v4121_v14 }
 0x65e   : > { %3604 = vmatpush3.bf16.msra.mxu0 %v3812_v30  ;;  %v3824_v30 = vld [vmem:[%s5051_s26] sm:$0xff]  }
 0x65f   : > { %3621 = vmatprep.subr.bf16.mxu0 %v4121_v14 }
 0x6d1   : > { %v2450_v56 = vpop.xlane.xlu0 %2449 }
 0x6d2   : > { %v2460_v59 = vadd.f32 %v2450_v56, %v2444_v57 }
 0x6d4   : > { %3857 = vrcp.f32 %v2460_v59 }
 0x6d5   : > { %v2453_v60 = vpop.xlane.xlu1 %2452 }
 0x6d6   : > { %v2461_v9 = vadd.f32 %v2453_v60, %v2445_v61 }
 0x6d8   : > { %3859 = vrcp.f32 %v2461_v9 }
 0x6d9   : > { %v2456_v0 = vpop.xlane.xlu0 %2455 }
 0x6da   : > { %v2462_v3 = vadd.f32 %v2456_v0, %v2446_v1 }
 0x6dc   : > { %3861 = vrcp.f32 %v2462_v3 }
 0x6dd   : > { %v2459_v4 = vpop.xlane.xlu1 %2458 }
 0x6de   : > { %v2463_v6 = vadd.f32 %v2459_v4, %v2447_v12 }
 0x6e0   : > { %3863 = vrcp.f32 %v2463_v6 }
 0x6e1   : > { %v3858_v8 = vpop.eup %3857 }
 0x6e5   : > { %v3860_v15 = vpop.eup %3859 }
 0x6e9   : > { %v3862_v25 = vpop.eup %3861 }
 0x6ed   : > { %v3864_v24 = vpop.eup %3863 }
 0x709   : > { %v2512_v7 = vpop.f32.mrf.mxu0 }
 0x70a   : > { %v2656_v41 = vadd.f32 %v2512_v7, %v4786_v21 }
 0x70b   : > { %v3577_v62 = vpop.f32.mrf.mxu0 }
 0x70c   : > { %v2664_v19 = vmul.f32 %v3858_v8, %v2656_v41 }
 0x70d   : > { %v2515_v11 = vpop.f32.mrf.mxu0  ;;  %v2558_v47 = vpop.f32.mrf.mxu1 }
 0x70e   : > { %v2657_v13 = vadd.f32 %v2558_v47, %v4794_v31 }
 0x70f   : > { %v3578_v18 = vpop.f32.mrf.mxu0  ;;  %v3583_v5 = vpop.f32.mrf.mxu1 }
 0x710   : > { %v2665_v20 = vmul.f32 %v3860_v15, %v2657_v13  ;;  %v3370_v5 = vld [vmem:[%s5048_s9] ss:$0 sm:$0xff]  ;;  %s5053_s9 = sld [smem:[#allocation38_spill]] }
 0x711   : > { %v2561_v22 = vpop.f32.mrf.mxu1  ;;  %v2604_v23 = vpop.f32.mrf.mxu0 }
 0x712   : > { %v2658_v37 = vadd.f32 %v2604_v23, %v2466_v29 }
 0x713   : > { %v3584_v16 = vpop.f32.mrf.mxu1  ;;  %v3589_v27 = vpop.f32.mrf.mxu0 }
 0x714   : > { %v2666_v26 = vmul.f32 %v3862_v25, %v2658_v37  ;;  %v3869_v37 = vld [vmem:[%s4446_s18] sm:$0xff]  ;;  %s5054_s18 = sld [smem:[#allocation20_spill]] }
 0x715   : > { %v2607_v28 = vpop.f32.mrf.mxu0  ;;  %v2650_v21 = vpop.f32.mrf.mxu1 }
 0x716   : > { %v2668_v32 = vcombine.low %v2664_v19, %v2666_v26  ;;  %v2669_v10 = vcombine.high %v2664_v19, %v2666_v26  ;;  %v2659_v17 = vadd.f32 %v2650_v21, %v2467_v46 }
 0x717   : > { %v3590_v52 = vpop.f32.mrf.mxu0  ;;  %v3595_v35 = vpop.f32.mrf.mxu1 }
 0x718   : > { %v2667_v31 = vmul.f32 %v3864_v24, %v2659_v17  ;;  %v2676_v40 = vrot.slane %v2668_v32, %v4616_v36  ;;  %v2683_v29 = vrot.slane %v2669_v10, %v4616_v36  ;;  %v3813_v24 = vld [vmem:[#allocation11 + $0x18] sm:$0xff]   ;;  %v3814_v52 = vld [vmem:[#allocation11 + $0x10] sm:$0xff]   ;;  %v3815_v35 = vld [vmem:[#allocation11 + $0x8] sm:$0xff]  }
 0x719   : > { %v2653_v39 = vpop.f32.mrf.mxu1  ;;  %3610 = vmatpush3.bf16.msra.mxu1 %v3813_v24 }
 0x71a   : > { %v2684_v43 = vcombine.low %v2665_v20, %v2667_v31  ;;  %v2685_v34 = vcombine.high %v2665_v20, %v2667_v31  ;;  %3611 = vmatprep.subr.bf16.mxu1 %v4121_v14  ;;  %v3816_v31 = vld [vmem:[#allocation11] sm:$0xff]   ;;  %p5057_p4 = scmp.ne.s32.totalorder %s5054_s18, 0 }
 0x71b   : > { %v3596_v44 = vpop.f32.mrf.mxu1 }
 0x71c   : > { %v2692_v55 = vrot.slane %v2684_v43, %v4616_v36  ;;  %v2699_v45 = vrot.slane %v2685_v34, %v4616_v36 }
 0x71d   : > { %3612 = vmatpush3.bf16.msra.mxu1 %v3814_v52 }
 0x71e   : > { %v2700_v49 = vcombine.low %v2676_v40, %v2692_v55  ;;  %v2701_v33 = vcombine.high %v2676_v40, %v2692_v55  ;;  %v2716_v46 = vcombine.low %v2683_v29, %v2699_v45  ;;  %v2717_v58 = vcombine.high %v2683_v29, %v2699_v45  ;;  %3613 = vmatprep.subr.bf16.mxu1 %v4121_v14  ;;  %v3376_v40 = vld [vmem:[%s5049_s22] ss:$0 sm:$0xff]  ;;  %s3157_s22 = sshll.u32 %s712_s16, 4  ;;  %s4907_s22 = int_to_ptr.vmem [resolvable:$true] %s3157_s22 }
 0x71f   : > { %v3377_v55 = vld [vmem:[%s5050_s14] ss:$0 sm:$0xff]  ;;  %s5055_s14 = sld [smem:[#allocation39_spill]]  ;;  %s3976_s4 = scalar_lea.vmem %s4907_s22, 128 }
 0x720   : > { %v2708_v50 = vrot.slane %v2700_v49, %v4619_v42  ;;  %v2715_v51 = vrot.slane %v2701_v33, %v4619_v42  ;;  %v2724_v53 = vrot.slane %v2716_v46, %v4619_v42  ;;  %v2731_v54 = vrot.slane %v2717_v58, %v4619_v42  ;;  %v3817_v33 = vld [vmem:[%s5051_s26 + $0x38] sm:$0xff]   ;;  %v3818_v46 = vld [vmem:[%s5051_s26 + $0x30] sm:$0xff]   ;;  %v3819_v58 = vld [vmem:[%s5051_s26 + $0x28] sm:$0xff]   ;;  %p3977_p11 = scmp.ne.s32.totalorder %s4907_s22, %s3976_s4 }
 0x721   : > { %3614 = vmatpush3.bf16.msra.mxu1 %v3815_v35 }
 0x722   : > { %v2736_v56 = vcombine.low %v2708_v50, %v2715_v51  ;;  %v3368_v57 = vcombine.high %v2708_v50, %v2715_v51  ;;  %v2752_v38 = vcombine.low %v2724_v53, %v2731_v54  ;;  %v3369_v59 = vcombine.high %v2724_v53, %v2731_v54  ;;  %3615 = vmatprep.subr.bf16.mxu1 %v4121_v14  ;;  %v3820_v50 = vld [vmem:[%s5051_s26 + $0x20] sm:$0xff]   ;;  %v3821_v51 = vld [vmem:[%s5051_s26 + $0x18] sm:$0xff]   ;;  %v3822_v53 = vld [vmem:[%s5051_s26 + $0x10] sm:$0xff]   ;;  %p3978_p13 = pnand %p3977_p11, %p5057_p4 }
 0x723   : > { %v3823_v54 = vld [vmem:[%s5051_s26 + $0x8] sm:$0xff]  }
 0x724   : > { %v2743_v60 = vrot.slane %v2736_v56, %v4616_v36  ;;  %v2751_v61 = vrot.slane %v3368_v57, %v4616_v36  ;;  %v2759_v63 = vrot.slane %v2752_v38, %v4616_v36  ;;  %v2767_v9 = vrot.slane %v3369_v59, %v4616_v36  ;;  %p3979_p8 = pneg %p3978_p13 }
 0x725   : > { %3616 = vmatpush3.bf16.msra.mxu1 %v3816_v31 }
 0x726   : > { %v2769_v0 = vcombine.high %v2743_v60, %v2751_v61  ;;  %v2785_v1 = vcombine.high %v2759_v63, %v2767_v9  ;;  %v2768_v2 = vcombine.low %v2743_v60, %v2751_v61  ;;  %v2784_v3 = vcombine.low %v2759_v63, %v2767_v9 }
 0x728   : > { %v2783_v4 = vrot.slane %v2769_v0, %v4619_v42  ;;  %v2799_v12 = vrot.slane %v2785_v1, %v4619_v42  ;;  %v2776_v6 = vrot.slane %v2768_v2, %v4619_v42  ;;  %v2792_v7 = vrot.slane %v2784_v3, %v4619_v42 }
 0x72a   : > { %v2802_v41 = vcombine.low %v2783_v4, %v2799_v12  ;;  %v2801_v8 = vcombine.high %v2776_v6, %v2792_v7  ;;  %v2803_v62 = vcombine.high %v2783_v4, %v2799_v12  ;;  %v2800_v19 = vcombine.low %v2776_v6, %v2792_v7  ;;  %v3384_v7 = vld [vmem:[%s5053_s9] ss:$0 sm:$0xff] }
 0x72c   : > { %2809 = vrot.lane.b32.xlu1 %v2802_v41, %s4129_s30  ;;  %2805 = vrot.lane.b32.xlu0 %v2801_v8, %s4130_s27  ;;  %s5052_s30 = sld [smem:[#allocation36_spill]]  ;;  %s3394_s27 = sshll.u32 %s4092_s2, 1 }
 0x730   : > { %2813 = vrot.lane.b32.xlu1 %v2803_v62, %s4131_s28  ;;  %s3153_s28 = sadd.s32 %s4088_s21, %s3394_s27  ;;  %s5056_s21 = sand.u32 1, %s4068_s0  }
 0x731   : > { %s3395_s15 = sshll.u32 %s3153_s28, 7  ;;  %s3142_s2 = scalar_lea.sflag [#allocation7], %s5056_s21 }
 0x732   : > { %v3378_v56 = vld [vmem:[%s5052_s30] ss:$0 sm:$0xff]  ;;  %s4905_s17 = scalar_lea.hbm %s5055_s14, %s3395_s15  ;;  %s3980_s30 = sshll.u32 %s4132_s6, 4  ;;  %s3981_s30 = int_to_ptr.vmem [resolvable:$false] %s3980_s30 }
 0x733   : > { %s3982_s27 = scalar_lea.vmem %s3981_s30, 256  ;;  %p3983_p10 = scmp.lt.s32.totalorder %s4907_s22, %s3981_s30 }
 0x734   : > { %p3984_p9 = scmp.lt.s32.totalorder %s3982_s27, %s3976_s4 }
 0x736   : > { %p3985_p0 = por %p3984_p9, %p3983_p10 }
 0x738   : > { %p3986_p12 = pnand %p3985_p0, %p3979_p8 }
 0x79e   : > { %v2810_v36 = vpop.permute.xlu1 %2809  ;;  %v2806_v11 = vpop.permute.xlu0 %2805 }
 0x79f   : > { %v2816_v47 = vsel %vm1775_vm6, %v2800_v19, %v2806_v11 }
 0x7a0   : > { %v2818_v15 = vsel %vm2817_vm9, %v2816_v47, %v2810_v36 }
 0x7a2   : > { %v2814_v13 = vpop.permute.xlu1 %2813 }
 0x7a3   : > { %v2820_v42 = vsel %vm2819_vm10, %v2818_v15, %v2814_v13 }
 0x7a4   : > { %v2821_v18 = vpack.c.bf16 %v2820_v42, %v2820_v42 }
 0x7a6   : > { %3606 = vmatmul.mubr.msk.bf16.vlgmr.msra.gmra.mxu0 %vm1547_vm5, %v2821_v18 }
 0x7a7   : > { %3637 = vmatprep.mubr.msk.bf16.mxu0 %vm4122_vm4, %v4121_v14  ;;  %3622 = vmatpush3.bf16.msra.mxu0 %v3817_v33 }
 0x7a8   : > { %3623 = vmatprep.subr.bf16.mxu0 %v4121_v14 }
 0x7ab   : > { %3624 = vmatpush3.bf16.msra.mxu0 %v3818_v46 }
 0x7ac   : > { %3625 = vmatprep.subr.bf16.mxu0 %v4121_v14 }
 0x7af   : > { %3626 = vmatpush3.bf16.msra.mxu0 %v3819_v58 }
 0x7b0   : > { %3627 = vmatprep.subr.bf16.mxu0 %v4121_v14 }
 0x7b3   : > { %3628 = vmatpush3.bf16.msra.mxu0 %v3820_v50 }
 0x7b4   : > { %3629 = vmatprep.subr.bf16.mxu0 %v4121_v14 }
 0x7b7   : > { %3630 = vmatpush3.bf16.msra.mxu0 %v3821_v51 }
 0x7b8   : > { %3631 = vmatprep.subr.bf16.mxu0 %v4121_v14 }
 0x7bb   : > { %3632 = vmatpush3.bf16.msra.mxu0 %v3822_v53 }
 0x7bc   : > { %3633 = vmatprep.subr.bf16.mxu0 %v4121_v14 }
 0x7bf   : > { %3634 = vmatpush3.bf16.msra.mxu0 %v3823_v54 }
 0x7c0   : > { %3635 = vmatprep.subr.bf16.mxu0 %v4121_v14 }
 0x7c3   : > { %3636 = vmatpush3.bf16.msra.mxu0 %v3824_v30 }
 0x866   : > { %v2898_v20 = vpop.f32.mrf.mxu0 }
 0x867   : > { %v2899_v22 = vadd.f32 %v3370_v5, %v2898_v20 }
 0x868   : > { %v3607_v23 = vpop.f32.mrf.mxu0 }
 0x869   : > { %v4844_v25 = vadd.f32 %v3869_v37, %v2899_v22 }
 0x86a   : > { %v2901_v16 = vpop.f32.mrf.mxu0 }
 0x86b   : > { %v2907_v27 = vsel %vm1547_vm5, %v4844_v25, 0.0 }
 0x86c   : > { %2908 = vadd.xlane.f32.xlu0 %v2907_v27  ;;  %v3608_v26 = vpop.f32.mrf.mxu0 }
 0x8f5   : > { %v2909_v28 = vpop.xlane.xlu0 %2908 }
 0x8f6   : > { %v2911_v21 = vmul.f32 0.015625, %v2909_v28 }
 0x8f8   : > { %v2912_v32 = vsub.f32 %v4844_v25, %v2911_v21 }
 0x8fa   : > { %v2913_v10 = vmul.f32 %v2912_v32, %v2912_v32 }
 0x8fc   : > { %v2914_v17 = vsel %vm1547_vm5, %v2913_v10, 0.0 }
 0x8fd   : > { %2915 = vadd.xlane.f32.xlu1 %v2914_v17 }
 0x986   : > { %v2916_v39 = vpop.xlane.xlu1 %2915 }
 0x987   : > { %v2917_v43 = vmul.f32 0.015625, %v2916_v39 }
 0x989   : > { %v2918_v34 = vadd.f32 1e-06, %v2917_v43 }
 0x98b   : > { %3865 = vrsqrt.f32 %v2918_v34 }
 0x998   : > { %v3866_v44 = vpop.eup %3865 }
 0x999   : > { %v2920_v29 = vmul.f32 %v3866_v44, %v2912_v32 }
 0x99b   : > { %v2927_v45 = vmul.f32 %v3376_v40, %v2920_v29 }
 0x99d   : > { %v2934_v48 = vadd.f32 %v3377_v55, %v2927_v45 }
 0x99f   : > { %v2935_v49 = vpack.c.bf16 %v2934_v48, %v2934_v48 }
 0x9a1   : > { %3618 = vmatmul.mubr.msk.bf16.vlgmr.msra.gmra.mxu1 %vm1547_vm5, %v2935_v49 }
 0xa61   : > { %v3012_v57 = vpop.f32.mrf.mxu1 }
 0xa62   : > { %v3013_v38 = vadd.f32 %v3378_v56, %v3012_v57 }
 0xa63   : > { %v3619_v59 = vpop.f32.mrf.mxu1 }
 0xa64   : > { %v3019_v60 = vmul.f32 0.044715, %v3013_v38  ;;  %v3018_v3 = vmul.f32 0.5, %v3013_v38 }
 0xa65   : > { %v3015_v61 = vpop.f32.mrf.mxu1 }
 0xa66   : > { %v3020_v63 = vmul.f32 %v3019_v60, %v3013_v38 }
 0xa67   : > { %v3620_v9 = vpop.f32.mrf.mxu1 }
 0xa68   : > { %v3021_v0 = vmul.f32 %v3020_v63, %v3013_v38 }
 0xa6a   : > { %v3022_v1 = vadd.f32 %v3021_v0, %v3013_v38 }
 0xa6c   : > { %v3023_v2 = vmul.f32 0.7978846, %v3022_v1 }
 0xa6e   : > { %3867 = vtanh.f32 %v3023_v2 }
 0xa7b   : > { %v3868_v14 = vpop.eup %3867 }
 0xa7c   : > { %v3025_v4 = vadd.f32 1.0, %v3868_v14 }
 0xa7e   : > { %v3026_v12 = vmul.f32 %v3025_v4, %v3018_v3 }
 0xa80   : > { %v3027_v6 = vpack.c.bf16 %v3026_v12, %v3026_v12 }
 0xa82   : > { %3638 = vmatmul.mubr.bf16.vlgmr.msra.gmra.mxu0 %v3027_v6 }
 0xb42   : > { %v3133_v41 = vpop.f32.mrf.mxu0 }
 0xb43   : > { %v3134_v8 = vadd.f32 %v3384_v7, %v3133_v41 }
 0xb44   : > { %v3639_v62 = vpop.f32.mrf.mxu0 }
 0xb45   : > { %v3139_v19 = vadd.f32 %v3134_v8, %v4844_v25 }
 0xb46   : > { %v3136_v36 = vpop.f32.mrf.mxu0 }
 0xb47   : > { %3140 = vst.msk [vmem:[%s712_s16] sm:$0xff] %vm1547_vm5, %v3139_v19 }
 0xb48   : > { %v3640_v11 = vpop.f32.mrf.mxu0 }
 0xb49   : > { %3989 = shalt.err (!%p3986_p12)
}
 0xb4a   : > { %s3990_s10 = scalar_lea.hbm %s4905_s17, 128  ;;  %s3994_s13 = scalar_lea.hbm %s5055_s14, 512 }
 0xb4b   : > { %p3991_p2 = scmp.ne.s32.totalorder %s4905_s17, %s3990_s10  ;;  %p3995_p3 = scmp.lt.s32.totalorder %s4905_s17, %s5055_s14 }
 0xb4c   : > { %p3996_p7 = scmp.lt.s32.totalorder %s3994_s13, %s3990_s10 }
 0xb4d   : > { %p3992_p5 = pnand %p3991_p2, %p5057_p4 }
 0xb4e   : > { %p3997_p1 = por %p3996_p7, %p3995_p3 }
 0xb4f   : > { %p3993_p6 = pneg %p3992_p5 }
 0xb51   : > { %p3998_p11 = pnand %p3997_p1, %p3993_p6 }
 0xb53   : > { %4001 = shalt.err (!%p3998_p11)
}
 0xb54   : > { %3655 = dma.vmem_to_hbm [thread:$0]  (%p5057_p4), %s4907_s22, 128, %s4905_s17, %s3142_s2  }
 0xb55 PF: > { %s5058_s15 = sld [smem:[#allocation18_spill]]  ;;  %p3682_p13 = scmp.ge.s32.totalorder %s4104_s24, 2 }
 0xb56   : > { %s5059_s5 = sld [smem:[#allocation21_spill]] }
 0xb5b   : > { %s3169_s19 = sand.u32 1, %s5058_s15  }
 0xb5c   : > { %p5060_p8 = scmp.ne.s32.totalorder %s5059_s5, 0  ;;  %s3170_s21 = scalar_lea.sflag [#allocation7], %s3169_s19 }
 0xb5e   : > { %p3672_p10 = pnand %p3682_p13, %p5060_p8 }
 0xb60   : > { %p3673_p9 = pneg %p3672_p10 }
 0xb62   : > { %4059 = dma.done.wait (%p3673_p9), %s3170_s21, 128  }
 0xb63   : > { %4061 = vsyncadd (%p3673_p9), %s3170_s21, 4294967168  ;;  %s37_s24 = sadd.s32 1, %s4104_s24   ;;  %s5061_s21 = sld [smem:[#allocation19_spill]] }
 0xb64   : > { %p34_p0 = scmp.ge.s32.totalorder %s37_s24, 6   ;;  %s5062_s22 = sld [smem:[#allocation22_spill]] }
 0xb65   : > { %s5063_s18 = sld [smem:[#allocation23_spill]]  ;;  %s5064_s28 = smov %s4068_s0 }
 0xb66   : > { %s5065_s0 = smov %s4072_s29  ;;  %s5066_s29 = smov %s4389_s11 }
 0xb67   : > { %s5067_s30 = smov %s4080_s20  ;;  %s5068_s20 = smov %s4084_s1 }
 0xb68   : > { %s5069_s1 = smov %s4384_s3  ;;  %s5070_s2 = smov %s4100_s23 }
 0xb69   :  { %36 = sbr.rel (!%p34_p0) target bundleno = 28 (0x1c), region = 169 }
 0xb6b   : > { %s5071_s23 = smov %s5063_s18 }
 0xb6e   :  { %3175 = vsyncpa [#allocation6], 1 }
 0xb6f   :  { %3177 = vsyncpa [#allocation6 + $0x1], 1 }
 0xb70   :  { %3178 = vsyncpa [#allocation9], 1 }
 0xb71   :  { %3179 = vsyncpa [#allocation12], 1 }
 0xb72   :  { %3180 = vsyncpa [#allocation7], 1 }
 0xb73   :  { %3182 = vsyncpa [#allocation7 + $0x1], 1 }

// kernel: tpu_custom_call.1
= control target key start
LH: loop header
LB: loop body
LE: loop exit
PB: predicated region body
PF: predicated region fallthrough
CT: control target
= control target key end

     0   :  { %s4971_s0 = inlined_call_operand.hbm [shape: bf16[2,16,64], index: 0, kind: input, shape index: {}]   ;;  %s4972_s1 = inlined_call_operand.vmem [shape: f32[2,16,64], index: 1, kind: input, shape index: {}]   ;;  %s4973_s2 = inlined_call_operand.vmem [shape: f32[2,1,16], index: 2, kind: input, shape index: {}]   ;;  %s4974_s3 = inlined_call_operand.vmem [shape: f32[1,64], index: 3, kind: input, shape index: {}]   ;;  %s4975_s4 = inlined_call_operand.vmem [shape: f32[1,64], index: 4, kind: input, shape index: {}]   ;;  %s4976_s5 = inlined_call_operand.vmem [shape: bf16[64,64], index: 5, kind: input, shape index: {}]   ;;  %s4977_s6 = inlined_call_operand.vmem [shape: f32[1,64], index: 6, kind: input, shape index: {}]   ;;  %s4978_s7 = inlined_call_operand.vmem [shape: bf16[64,64], index: 7, kind: input, shape index: {}]   ;;  %s4979_s8 = inlined_call_operand.vmem [shape: f32[1,64], index: 8, kind: input, shape index: {}]   ;;  %s4980_s9 = inlined_call_operand.hbm [shape: bf16[64,64], index: 9, kind: input, shape index: {}]   ;;  %s4981_s10 = inlined_call_operand.vmem [shape: f32[1,64], index: 10, kind: input, shape index: {}]   ;;  %s4982_s11 = inlined_call_operand.hbm [shape: bf16[64,64], index: 11, kind: input, shape index: {}]   ;;  %s4983_s12 = inlined_call_operand.vmem [shape: f32[1,64], index: 12, kind: input, shape index: {}]   ;;  %s4984_s13 = inlined_call_operand.vmem [shape: f32[1,64], index: 13, kind: input, shape index: {}]   ;;  %s4985_s14 = inlined_call_operand.vmem [shape: f32[1,64], index: 14, kind: input, shape index: {}]   ;;  %s4986_s15 = inlined_call_operand.hbm [shape: bf16[64,128], index: 15, kind: input, shape index: {}]   ;;  %s4987_s16 = inlined_call_operand.vmem [shape: f32[1,128], index: 16, kind: input, shape index: {}]   ;;  %s4988_s17 = inlined_call_operand.vmem [shape: bf16[128,64], index: 17, kind: input, shape index: {}]   ;;  %s4989_s18 = inlined_call_operand.vmem [shape: f32[1,64], index: 18, kind: input, shape index: {}]   ;;  %s4990_s19 = inlined_call_operand.hbm [shape: f32[2,16,64], index: 19, kind: output, shape index: {}]  }
   0x1   :  { %5005 = sst [smem:[#allocation24_spill]] %s4971_s0 }
   0x2   :  { %5006 = sst [smem:[#allocation25_spill]] %s4972_s1 }
   0x3   :  { %5007 = sst [smem:[#allocation26_spill]] %s4973_s2 }
   0x4   :  { %5008 = sst [smem:[#allocation27_spill]] %s4976_s5 }
   0x5   :  { %5009 = sst [smem:[#allocation28_spill]] %s4977_s6 }
   0x6   :  { %5010 = sst [smem:[#allocation29_spill]] %s4980_s9 }
   0x7   :  { %5011 = sst [smem:[#allocation30_spill]] %s4981_s10 }
   0x8   :  { %5012 = sst [smem:[#allocation31_spill]] %s4982_s11 }
   0x9   :  { %5013 = sst [smem:[#allocation32_spill]] %s4983_s12 }
   0xa   :  { %5014 = sst [smem:[#allocation33_spill]] %s4984_s13 }
   0xb   :  { %5015 = sst [smem:[#allocation34_spill]] %s4985_s14 }
   0xc   :  { %5016 = sst [smem:[#allocation35_spill]] %s4986_s15 }
   0xd   :  { %5017 = sst [smem:[#allocation36_spill]] %s4987_s16 }
   0xe   :  { %5018 = sst [smem:[#allocation37_spill]] %s4988_s17 }
   0xf   :  { %5019 = sst [smem:[#allocation38_spill]] %s4989_s18 }
  0x10   :  { %5020 = sst [smem:[#allocation39_spill]] %s4990_s19 }
  0x11   :  { %24 = vsyncpa [#allocation6], 0 }
  0x12   :  { %26 = vsyncpa [#allocation6 + $0x1], 0 }
  0x13   :  { %27 = vsyncpa [#allocation9], 0 }
  0x14   :  { %28 = vsyncpa [#allocation12], 0 }
  0x15   :  { %29 = vsyncpa [#allocation7], 0 }
  0x16   :  { %31 = vsyncpa [#allocation7 + $0x1], 0  ;;  %s4233_s28 = smov 0   ;;  %s4235_s0 = smov 0  }
  0x17   :  { %s4237_s29 = smov 0   ;;  %s4239_s30 = smov 0  }
  0x18   :  { %s4241_s20 = smov 0   ;;  %s4243_s1 = smov 0  }
  0x19   :  { %s4245_s21 = smov 0   ;;  %s4247_s2 = smov 0  }
  0x1a   :  { %s4249_s22 = smov 0   ;;  %s4251_s23 = smov 0  }
  0x1b   :  { %s4253_s24 = smov 0  }
  0x1c LB: > { %5021 = sst [smem:[#allocation18_spill]] %s4064_s28  ;;  %s3296_s25 = sadd.s32 4294967295, %s4104_s24   ;;  %s4104_s24 = sphi %s4253_s24, %s37_s24   ;;  %s4100_s23 = sphi %s4251_s23, %s5071_s23   ;;  %s4096_s22 = sphi %s4249_s22, %s5062_s22   ;;  %s4092_s2 = sphi %s4247_s2, %s5070_s2   ;;  %s4088_s21 = sphi %s4245_s21, %s5061_s21   ;;  %s4084_s1 = sphi %s4243_s1, %s5069_s1   ;;  %s4080_s20 = sphi %s4241_s20, %s5068_s20   ;;  %s4076_s30 = sphi %s4239_s30, %s5067_s30   ;;  %s4072_s29 = sphi %s4237_s29, %s5066_s29   ;;  %s4068_s0 = sphi %s4235_s0, %s5065_s0   ;;  %s4064_s28 = sphi %s4233_s28, %s5064_s28  }
  0x1d   : > { %5022 = sst [smem:[#allocation19_spill]] %s4096_s22  ;;  %s3297_s3 = sadd.s32 4294967294, %s4104_s24  }
  0x1e   : > { %p69_p0 = scmp.ne.s32.totalorder %s4080_s20, %s4076_s30  ;;  %p4289_p1 = scmp.eq.s32.totalorder %s3296_s25, 0 }
  0x1f   : > { %p484_p2 = scmp.ne.s32.totalorder %s4072_s29, %s4068_s0  ;;  %p485_p4 = scmp.eq.s32.totalorder %s3296_s25, 3 }
  0x20   : > { %p4298_p3 = por %p4289_p1, %p69_p0  ;;  %p490_p5 = scmp.ne.s32.totalorder %s4068_s0, %s4064_s28 }
  0x21   : > { %p491_p6 = scmp.eq.s32.totalorder %s3297_s3, 3  ;;  %p4304_p7 = por %p485_p4, %p484_p2 }
  0x22   : > { %p3298_p8 = scmp.ge.s32.totalorder %s4104_s24, 1  ;;  %p498_p10 = scmp.lt.s32.totalorder %s4104_s24, 5 }
  0x23   : > { %s5025_s19 = scalar_select %p4304_p7, 1, 0 }
  0x24   : > { %p4309_p9 = por %p491_p6, %p490_p5  ;;  %p4314_p11 = pnand %p3298_p8, %p498_p10 }
  0x25   : > { %5026 = sst [smem:[#allocation20_spill]] %s5025_s19  ;;  %s4106_s18 = smov [#allocation8]  }
  0x26   : > { %s5027_s30 = scalar_select %p4309_p9, 1, 0 }
  0x27   : > { %s528_s16 = sshll.u32 %s4106_s18, 4  ;;  %p3657_p12 = pneg %p4314_p11  ;;  %s529_s16 = int_to_ptr.vmem [resolvable:$true] %s528_s16 }
  0x28   : > { %5028 = sst [smem:[#allocation21_spill]] %s5027_s30  ;;  %s4107_s3 = smov [#allocation10]  }
  0x29   : > { %p4322_p13 = pnand %p3657_p12, %p4289_p1  ;;  %s544_s30 = sshll.u32 %s4107_s3, 4  ;;  %s545_s30 = int_to_ptr.vmem [resolvable:$true] %s544_s30 }
  0x2a   : > { %s4108_s28 = smov [#allocation11]   ;;  %s3881_s17 = scalar_lea.vmem %s529_s16, 512 }
  0x2b   : > { %s566_s19 = sshll.u32 %s4108_s28, 4  ;;  %p3872_p0 = pneg %p4322_p13  ;;  %s567_s19 = int_to_ptr.vmem [resolvable:$true] %s566_s19 }
  0x2c   : > { %p3882_p2 = scmp.ne.s32.totalorder %s529_s16, %s3881_s17  ;;  %p3889_p6 = scmp.lt.s32.totalorder %s529_s16, %s529_s16 }
  0x2d   : > { %p3890_p8 = scmp.lt.s32.totalorder %s3881_s17, %s3881_s17 }
  0x2e   : > { %p3884_p4 = pnand %p3882_p2, %p3872_p0 }
  0x2f   : > { %p3891_p10 = por %p3890_p8, %p3889_p6 }
  0x30   : > { %p3885_p5 = pneg %p3884_p4 }
  0x32   : > { %p3892_p12 = pnand %p3891_p10, %p3885_p5 }
  0x34   : > { %3895 = shalt.err (!%p3892_p12)
}
  0x35   : > { %s4997_s18 = smov 64   ;;  %s4998_s3 = smov 4  }
  0x36   : > { %s5031_s9 = sld [smem:[#allocation29_spill]]  ;;  %s3907_s13 = scalar_lea.vmem %s545_s30, 512 }
  0x37   : > { %p3908_p2 = scmp.ne.s32.totalorder %s545_s30, %s3907_s13  ;;  %p3915_p5 = scmp.lt.s32.totalorder %s545_s30, %s545_s30 }
  0x38   : > { %p3916_p8 = scmp.lt.s32.totalorder %s3907_s13, %s3907_s13 }
  0x39   : > { %p3910_p4 = pnand %p3908_p2, %p3872_p0 }
  0x3a   : > { %p3917_p10 = por %p3916_p8, %p3915_p5 }
  0x3b   : > { %p3911_p6 = pneg %p3910_p4 }
  0x3c   : > { %3660 = dma.hbm_to_vmem [thread:$0]  (!%p4322_p13), %s5031_s9, 512, %s529_s16, [#allocation9], %s4997_s18, %s4997_s18, %s4998_s3  }
  0x3d   : > { %p3918_p12 = pnand %p3917_p10, %p3911_p6 }
  0x3f   : > { %3921 = shalt.err (!%p3918_p12)
}
  0x40   : > { %s5032_s11 = sld [smem:[#allocation31_spill]]  ;;  %s3933_s14 = scalar_lea.vmem %s567_s19, 512 }
  0x41   : > { %p3934_p9 = scmp.ne.s32.totalorder %s567_s19, %s3933_s14  ;;  %p3941_p5 = scmp.lt.s32.totalorder %s567_s19, %s567_s19 }
  0x42   : > { %p3942_p6 = scmp.lt.s32.totalorder %s3933_s14, %s3933_s14 }
  0x43   : > { %p3936_p2 = pnand %p3934_p9, %p3872_p0 }
  0x44   : > { %p3943_p8 = por %p3942_p6, %p3941_p5 }
  0x45   : > { %p3937_p4 = pneg %p3936_p2 }
  0x46   : > { %3663 = dma.hbm_to_vmem [thread:$0]  (!%p4322_p13), %s5032_s11, 512, %s545_s30, [#allocation9], %s4997_s18, %s4997_s18, %s4998_s3  }
  0x47   : > { %p3944_p10 = pnand %p3943_p8, %p3937_p4 }
  0x49   : > { %3947 = shalt.err (!%p3944_p10)
}
  0x4a   : > { %s5033_s15 = sld [smem:[#allocation35_spill]]  ;;  %s46_s16 = sadd.s32 1, %s4096_s22 }
  0x4b   : > { %p47_p9 = scmp.ge.s32.totalorder %s46_s16, 2  ;;  %s49_s30 = sadd.s32 1, %s4100_s23 }
  0x4c   : > { %s56_s25 = sadd.s32 1, %s4084_s1  ;;  %p63_p0 = scmp.ne.s32.totalorder %s4084_s1, %s4080_s20 }
  0x4d   : > { %s5073_s16 = smov (%p47_p9, %s46_s16), 0  ;;  %s5075_s30 = smov (!%p47_p9, %s49_s30), %s4100_s23 }
  0x4e   : > { %5034 = sst [smem:[#allocation22_spill]] %s5073_s16  ;;  %p64_p12 = scmp.eq.s32.totalorder %s4104_s24, 0 }
  0x4f   : > { %s470_s28 = ssub.s32 %s4096_s22, %s5073_s16  ;;  %p51_p2 = scmp.ge.s32.totalorder %s5075_s30, 2 }
  0x50   : > { %3666 = dma.hbm_to_vmem [thread:$0]  (!%p4322_p13), %s5033_s15, 512, %s567_s19, [#allocation12], %s4997_s18, %s4997_s18, %s4998_s3  }
  0x51   : > { %p3678_p4 = scmp.lt.s32.totalorder %s4104_s24, 4  ;;  %p4373_p13 = por %p64_p12, %p63_p0 }
  0x52   : > { %s589_s17 = sand.u32 1, %s4084_s1   ;;  %s5077_s30 = smov (%p51_p2, %s5075_s30), 0 }
  0x53   : > { %5036 = sst [smem:[#allocation23_spill]] %s5077_s30  ;;  %s3303_s14 = sshll.u32 %s589_s17, 3 }
  0x54   : > { %s53_s12 = ssub.s32 %s4100_s23, %s5077_s30  ;;  %s3398_s18 = sshll.u32 %s4100_s23, 7 }
  0x55   : > { %p54_p5 = scmp.eq.s32.totalorder %s53_s12, 0  ;;  %s471_s13 = sor.u32 %s470_s28, %s53_s12 }
  0x56   : > { %p472_p6 = scmp.eq.s32.totalorder %s471_s13, 0  ;;  %s5037_s9 = sadd.s32 1, %s4072_s29 }
  0x57   : > { %s4384_s3 = scalar_select %p54_p5, %s4084_s1, %s56_s25  }
  0x58   : > { %s4389_s11 = scalar_select %p472_p6, %s4072_s29, %s5037_s9  }
  0x59   : > { %s5038_s22 = sld [smem:[#allocation24_spill]]  ;;  %s593_s5 = scalar_lea.vmem [#allocation5], %s3303_s14 }
  0x5a   : > { %s600_s10 = sshll.u32 %s593_s5, 4  ;;  %p4398_p8 = pnand %p3678_p4, %p4373_p13  ;;  %s601_s10 = int_to_ptr.vmem [resolvable:$true] %s600_s10 }
  0x5b   : > { %s590_s28 = scalar_lea.sflag [#allocation6], %s589_s17  ;;  %s3961_s25 = scalar_lea.vmem %s601_s10, 128 }
  0x5c   : > { %p3950_p10 = pneg %p4398_p8  ;;  %p3962_p9 = scmp.ne.s32.totalorder %s601_s10, %s3961_s25 }
  0x5d   : > { %s4111_s9 = smov [#allocation5]  }
  0x5e   : > { %p3964_p0 = pnand %p3962_p9, %p3950_p10  ;;  %s3966_s15 = sshll.u32 %s4111_s9, 4  ;;  %s3967_s15 = int_to_ptr.vmem [resolvable:$false] %s3966_s15 }
  0x5f   : > { %s599_s6 = scalar_lea.hbm %s5038_s22, %s3398_s18  ;;  %s3968_s22 = scalar_lea.vmem %s3967_s15, 256 }
  0x60   : > { %p3965_p12 = pneg %p3964_p0  ;;  %p3969_p2 = scmp.lt.s32.totalorder %s601_s10, %s3967_s15 }
  0x61   : > { %p3970_p5 = scmp.lt.s32.totalorder %s3968_s22, %s3961_s25 }
  0x63   : > { %p3971_p6 = por %p3970_p5, %p3969_p2 }
  0x65   : > { %p3972_p7 = pnand %p3971_p6, %p3965_p12 }
  0x67   : > { %3975 = shalt.err (!%p3972_p7)
}
  0x68   : > { %s5040_s5 = smov 4   ;;  %s5041_s18 = smov 64  }
  0x69   : > { %3670 = dma.hbm_to_vmem [thread:$0]  (!%p4398_p8), %s599_s6, 128, %s601_s10, %s590_s28, %s5041_s18, %s5041_s18, %s5040_s5  }
  0x6a   : > { %629 = sbr.rel (%p4314_p11) target bundleno = 2901 (0xb55), region = 96  ;;  %s631_s16 = sand.u32 (!%p4314_p11), 1, %s4080_s20  }
  0x6b   : > { %s4412_s19 = sshll.u32 (!%p4314_p11), %s631_s16, 3  ;;  %s632_s17 = scalar_lea.sflag (!%p4314_p11), [#allocation6], %s631_s16 }
  0x6c   : > { %s635_s14 = scalar_lea.vmem (!%p4314_p11), [#allocation5], %s4412_s19 }
  0x6f   : > { %4047 = dma.done.wait (%p4298_p3), %s632_s17, 128  }
  0x70   : > { %4049 = vsyncadd (%p4298_p3), %s632_s17, 4294967168 }
  0x71   : > { %4051 = dma.done.wait (%p4289_p1), [#allocation9], 1024  }
  0x72   : > { %4053 = vsyncadd (%p4289_p1), [#allocation9], 4294966272 }
  0x73   : > { %4055 = dma.done.wait (%p4289_p1), [#allocation12], 512  }
  0x74   : > { %4057 = vsyncadd (%p4289_p1), [#allocation12], 4294966784  ;;  %s5004_s6 = sand.u32 1, %s4068_s0   ;;  %p713_p3 = scmp.lt.s32.totalorder %s4092_s2, 1 }
  0x75   : > { %s4431_s10 = sshll.u32 %s5004_s6, 3  ;;  %p715_p7 = scmp.lt.s32.totalorder %s4088_s21, 1 }
  0x76   : > { %s4435_s27 = scalar_select %p713_p3, %s4092_s2, 1 }
  0x77   : > { %s716_s4 = scalar_select %p715_p7, %s4088_s21, 1 }
  0x78   : > { %s3312_s26 = sshll.u32 %s4435_s27, 1  ;;  %s5042_s13 = sld [smem:[#allocation26_spill]] }
  0x79   : > { %s718_s25 = sadd.s32 %s3312_s26, %s716_s4  ;;  %s5043_s5 = sld [smem:[#allocation25_spill]] }
  0x7a   : > { %s3313_s9 = sshll.u32 %s718_s25, 3  ;;  %s712_s16 = scalar_lea.vmem [#allocation13], %s4431_s10 }
  0x7b   : > { %p3314_p1 = scmp.ne.s32.totalorder %s4088_s21, 0 }
  0x7c   : > { %s4114_s19 = smov (!%p3314_p1), 80   ;;  %s4116_s17 = smov (!%p3314_p1), 96  }
  0x7d   : > { %728 = sbr.rel (%p3314_p1) target bundleno = 515 (0x203), region = 116  ;;  %s4117_s30 = smov (!%p3314_p1), 120  }
  0x7e   : > { %s723_s28 = scalar_lea.vmem %s5042_s13, %s4435_s27 }
  0x7f   : > { %s4446_s18 = scalar_lea.vmem %s5043_s5, %s3313_s9  ;;  %s5044_s5 = sld [smem:[#allocation30_spill]] (!%p3314_p1) }
  0x82   : > { %v3796_v0 = vld [vmem:[%s4978_s7 + $0x18] sm:$0xff]   ;;  %v4112_v1 = vmov 0.0   ;;  %v3797_v2 = vld [vmem:[#allocation8 + $0x18] sm:$0xff]   ;;  %vm4113_vm0 = vmmov 0   ;;  %v3799_v4 = vld [vmem:[#allocation8 + $0x10] sm:$0xff]   ;;  %vm775_vm1 = vcmask 523264   ;;  %v934_v20 = vlaneseq }
  0x83   : > { %3465 = vmatprep.subr.bf16.mxu0 %v4112_v1  ;;  %3477 = vmatprep.subr.bf16.mxu1 %v4112_v1  ;;  %v3798_v3 = vld [vmem:[%s4978_s7 + $0x10] sm:$0xff]   ;;  %v3800_v5 = vld [vmem:[%s4978_s7 + $0x8] sm:$0xff]   ;;  %v3801_v6 = vld [vmem:[#allocation8 + $0x8] sm:$0xff]   ;;  %vm1460_vm2 = vcmask 57344   ;;  %v4118_v31 = vmov 1983009808  }
  0x84   : > { %3466 = vmatpush3.bf16.msra.mxu0 %v3796_v0  ;;  %3473 = vmatprep.mubr.msk.bf16.mxu0 %vm4113_vm0, %v4112_v1  ;;  %v3802_v7 = vld [vmem:[%s4978_s7] sm:$0xff]   ;;  %v3803_v8 = vld [vmem:[#allocation8] sm:$0xff]   ;;  %v935_v26 = vshrl.u32 %v934_v20, 7  ;;  %v932_v32 = vunpack.c.l.s4 %v4118_v31  ;;  %v4119_v33 = vmov 1934713408   ;;  %v4120_v36 = vmov 0  }
  0x85   : > { %3478 = vmatpush3.bf16.msra.mxu1 %v3797_v2  ;;  %3467 = vmatprep.subr.bf16.mxu0 %v4112_v1  ;;  %v3804_v9 = vld [vmem:[%s635_s14] sm:$0xff]   ;;  %v3315_v12 = vld [vmem:[%s4979_s8] ss:$0 sm:$0xff]  ;;  %s4115_s14 = smov 112   ;;  %v963_v34 = vunpack.c.l.s4 %v4119_v33  ;;  %v4476_v37 = vpack.i.b16 %v4120_v36, %v4120_v36  ;;  %vm1451_vm3 = vcmask 125952  }
  0x86   : > { %3479 = vmatprep.subr.bf16.mxu1 %v4112_v1  ;;  %3485 = vmatprep.mubr.msk.bf16.mxu1 %vm4113_vm0, %v4112_v1  ;;  %v3322_v15 = vld [vmem:[%s5044_s5] ss:$0 sm:$0xff]  ;;  %v1499_v28 = vsub.s32 0, %v935_v26  ;;  %v933_v35 = vunpack.c.0.s8 %v932_v32 }
  0x87   : > { %v1450_v29 = vld [vmem:[%s723_s28] sm:$0x1]  ;;  %v964_v38 = vunpack.c.0.s8 %v963_v34 }
  0x88   : > { %3468 = vmatpush3.bf16.msra.mxu0 %v3798_v3  ;;  %v1500_v30 = vrot.slane %v1450_v29, %v1499_v28  ;;  %1461 = vst.msk [vmem:[#allocation4] sm:$0x1] %vm1460_vm2, %v1450_v29  ;;  %v4478_v41 = vsub.s32 %v933_v35, %v935_v26 }
  0x89   : > { %3480 = vmatpush3.bf16.msra.mxu1 %v3799_v4  ;;  %3469 = vmatprep.subr.bf16.mxu0 %v4112_v1  ;;  %v4481_v47 = vsub.s32 %v964_v38, %v935_v26 }
  0x8a   : > { %3481 = vmatprep.subr.bf16.mxu1 %v4112_v1 }
  0x8c   : > { %3470 = vmatpush3.bf16.msra.mxu0 %v3800_v5 }
  0x8d   : > { %3482 = vmatpush3.bf16.msra.mxu1 %v3801_v6  ;;  %3471 = vmatprep.subr.bf16.mxu0 %v4112_v1 }
  0x8e   : > { %3483 = vmatprep.subr.bf16.mxu1 %v4112_v1 }
  0x90   : > { %3472 = vmatpush3.bf16.msra.mxu0 %v3802_v7 }
  0x91   : > { %3484 = vmatpush3.bf16.msra.mxu1 %v3803_v8 }
  0x93   : > { %3474 = vmatmul.mubr.msk.bf16.vlgmr.msra.gmra.mxu0 %vm775_vm1, %v3804_v9 }
  0x94   : > { %3486 = vmatmul.mubr.msk.bf16.vlgmr.msra.gmra.mxu1 %vm775_vm1, %v3804_v9 }
 0x153   : > { %v813_v10 = vpop.f32.mrf.mxu0 }
 0x154   : > { %v893_v11 = vpop.f32.mrf.mxu1  ;;  %v814_v17 = vadd.f32 %v3315_v12, %v813_v10 }
 0x155   : > { %v3475_v13 = vpop.f32.mrf.mxu0  ;;  %v894_v22 = vadd.f32 %v3322_v15, %v893_v11 }
 0x156   : > { %v3487_v14 = vpop.f32.mrf.mxu1 }
 0x157   : > { %v816_v16 = vpop.f32.mrf.mxu0 }
 0x158   : > { %v817_v18 = vadd.f32 %v3315_v12, %v816_v16  ;;  %v896_v19 = vpop.f32.mrf.mxu1 }
 0x159   : > { %v3476_v21 = vpop.f32.mrf.mxu0  ;;  %v897_v24 = vadd.f32 %v3322_v15, %v896_v19 }
 0x15a   : > { %v900_v23 = vpack.c.bf16 %v817_v18, %v814_v17  ;;  %v3488_v25 = vpop.f32.mrf.mxu1 }
 0x15b   : > { %v1178_v27 = vpack.c.bf16 %v897_v24, %v894_v22 }
 0x15c   : > { %906 = vrot.lane.b32.xlu1 %v900_v23, %s4114_s19  ;;  %902 = vrot.lane.b32.xlu0 %v900_v23, %s4115_s14  ;;  %v912_v43 = vshrl.u32 %v900_v23, 16 }
 0x15d   : > { %v1190_v48 = vshrl.u32 %v1178_v27, 16 }
 0x160   : > { %1180 = vrot.lane.b32.xlu1 %v1178_v27, %s4115_s14  ;;  %904 = vrot.lane.b32.xlu0 %v900_v23, %s4116_s17 }
 0x164   : > { %1184 = vrot.lane.b32.xlu1 %v1178_v27, %s4114_s19  ;;  %1182 = vrot.lane.b32.xlu0 %v1178_v27, %s4116_s17 }
 0x168   : > { %1501 = vrot.lane.b32.xlu0 %v1500_v30, %s4117_s30 }
 0x1ce   : > { %v907_v39 = vpop.permute.xlu1 %906  ;;  %v903_v40 = vpop.permute.xlu0 %902 }
 0x1cf   : > { %v910_v42 = vpack.i.b16 %v903_v40, %v900_v23  ;;  %v913_v44 = vshrl.u32 %v903_v40, 16  ;;  %v921_v51 = vshrl.u32 %v907_v39, 16 }
 0x1d1   : > { %v914_v45 = vpack.i.b16 %v913_v44, %v912_v43  ;;  %v930_v46 = vcombine.high %v910_v42, %v4476_v37  ;;  %v937_v52 = vrot.slane %v910_v42, %v4478_v41 }
 0x1d2   : > { %v1181_v49 = vpop.permute.xlu1 %1180  ;;  %v905_v50 = vpop.permute.xlu0 %904 }
 0x1d3   : > { %v996_v53 = vcombine.high %v914_v45, %v4476_v37  ;;  %v1188_v54 = vpack.i.b16 %v1181_v49, %v1178_v27  ;;  %v944_v55 = vrot.slane %v930_v46, %v4478_v41  ;;  %v1191_v56 = vshrl.u32 %v1181_v49, 16 }
 0x1d4   : > { %v918_v57 = vpack.i.b16 %v907_v39, %v905_v50  ;;  %v920_v58 = vshrl.u32 %v905_v50, 16  ;;  %v1003_v59 = vrot.slane %v914_v45, %v4478_v41 }
 0x1d5   : > { %v1010_v60 = vrot.slane %v996_v53, %v4478_v41  ;;  %v1202_v61 = vcombine.high %v1188_v54, %v4476_v37  ;;  %v4490_v62 = vrot.slane %v1188_v54, %v4478_v41  ;;  %v1192_v63 = vpack.i.b16 %v1191_v56, %v1190_v48 }
 0x1d6   : > { %v922_v0 = vpack.i.b16 %v921_v51, %v920_v58  ;;  %v945_v1 = vcombine.high %v918_v57, %v4476_v37  ;;  %v952_v2 = vrot.slane %v918_v57, %v4478_v41  ;;  %v1185_v3 = vpop.permute.xlu1 %1184  ;;  %v1183_v4 = vpop.permute.xlu0 %1182 }
 0x1d7   : > { %v4495_v5 = vrot.slane %v1202_v61, %v4478_v41  ;;  %v1199_v6 = vshrl.u32 %v1185_v3, 16  ;;  %v1196_v7 = vpack.i.b16 %v1185_v3, %v1183_v4  ;;  %v1198_v8 = vshrl.u32 %v1183_v4, 16 }
 0x1d8   : > { %v1268_v9 = vcombine.high %v1192_v63, %v4476_v37  ;;  %v4499_v10 = vrot.slane %v1192_v63, %v4478_v41  ;;  %v959_v11 = vrot.slane %v945_v1, %v4478_v41  ;;  %v960_v12 = vcombine.low %v937_v52, %v952_v2 }
 0x1d9   : > { %v961_v13 = vcombine.high %v937_v52, %v952_v2  ;;  %v1011_v14 = vcombine.high %v922_v0, %v4476_v37  ;;  %v1018_v15 = vrot.slane %v922_v0, %v4478_v41  ;;  %v4504_v16 = vpack.i.b16 %v1199_v6, %v1198_v8 }
 0x1da   : > { %v4507_v17 = vrot.slane %v1268_v9, %v4478_v41  ;;  %v968_v18 = vrot.slane %v960_v12, %v4481_v47  ;;  %v976_v19 = vcombine.low %v944_v55, %v959_v11  ;;  %v977_v20 = vcombine.high %v944_v55, %v959_v11  ;;  %v1502_v21 = vpop.permute.xlu0 %1501 }
 0x1db   : > { %v975_v22 = vrot.slane %v961_v13, %v4481_v47  ;;  %v1025_v23 = vrot.slane %v1011_v14, %v4478_v41  ;;  %v1026_v24 = vcombine.low %v1003_v59, %v1018_v15  ;;  %v1027_v25 = vcombine.high %v1003_v59, %v1018_v15  ;;  %1505 = vst.msk [vmem:[#allocation4 + $0x1] sm:$0x1] %vm1460_vm2, %v1502_v21 }
 0x1dc   : > { %v984_v26 = vrot.slane %v976_v19, %v4481_v47  ;;  %v991_v27 = vrot.slane %v977_v20, %v4481_v47  ;;  %v1217_v28 = vcombine.high %v1196_v7, %v4476_v37  ;;  %v1224_v29 = vrot.slane %v1196_v7, %v4478_v41 }
 0x1dd   : > { %v1034_v30 = vrot.slane %v1026_v24, %v4481_v47  ;;  %v1041_v31 = vrot.slane %v1027_v25, %v4481_v47  ;;  %v1042_v32 = vcombine.low %v1010_v60, %v1025_v23  ;;  %v1043_v33 = vcombine.high %v1010_v60, %v1025_v23 }
 0x1de   : > { %v1062_v34 = vcombine.low %v968_v18, %v975_v22  ;;  %v3328_v35 = vcombine.high %v968_v18, %v975_v22  ;;  %v1078_v36 = vcombine.low %v984_v26, %v991_v27  ;;  %v3329_v38 = vcombine.high %v984_v26, %v991_v27 }
 0x1df   : > { %v1050_v39 = vrot.slane %v1042_v32, %v4481_v47  ;;  %v1057_v40 = vrot.slane %v1043_v33, %v4481_v47  ;;  %v1112_v42 = vcombine.low %v1034_v30, %v1041_v31  ;;  %v3330_v43 = vcombine.high %v1034_v30, %v1041_v31 }
 0x1e0   : > { %v1069_v44 = vrot.slane %v1062_v34, %v4478_v41  ;;  %v1077_v45 = vrot.slane %v3328_v35, %v4478_v41  ;;  %v1085_v46 = vrot.slane %v1078_v36, %v4478_v41  ;;  %v1093_v48 = vrot.slane %v3329_v38, %v4478_v41 }
 0x1e1   : > { %v1119_v49 = vrot.slane %v1112_v42, %v4478_v41  ;;  %v1127_v50 = vrot.slane %v3330_v43, %v4478_v41  ;;  %v1128_v51 = vcombine.low %v1050_v39, %v1057_v40  ;;  %v3331_v52 = vcombine.high %v1050_v39, %v1057_v40 }
 0x1e2   : > { %v1094_v53 = vcombine.low %v1069_v44, %v1077_v45  ;;  %v1102_v54 = vcombine.low %v1085_v46, %v1093_v48  ;;  %v1231_v55 = vrot.slane %v1217_v28, %v4478_v41  ;;  %v1232_v56 = vcombine.low %v4490_v62, %v1224_v29 }
 0x1e3   : > { %v1135_v57 = vrot.slane %v1128_v51, %v4478_v41  ;;  %v1143_v58 = vrot.slane %v3331_v52, %v4478_v41  ;;  %v1144_v59 = vcombine.low %v1119_v49, %v1127_v50  ;;  %v1233_v60 = vcombine.high %v4490_v62, %v1224_v29 }
 0x1e4   : > { %v1101_v61 = vrot.slane %v1094_v53, %v4481_v47  ;;  %v1109_v63 = vrot.slane %v1102_v54, %v4481_v47  ;;  %v1240_v0 = vrot.slane %v1232_v56, %v4481_v47  ;;  %v1248_v1 = vcombine.low %v4495_v5, %v1231_v55 }
 0x1e5   : > { %v1151_v2 = vrot.slane %v1144_v59, %v4481_v47  ;;  %v1152_v3 = vcombine.low %v1135_v57, %v1143_v58  ;;  %v1247_v4 = vrot.slane %v1233_v60, %v4481_v47  ;;  %v1249_v6 = vcombine.high %v4495_v5, %v1231_v55 }
 0x1e6   : > { %v1110_v7 = vcombine.low %v1101_v61, %v1109_v63  ;;  %v1111_v8 = vcombine.high %v1101_v61, %v1109_v63  ;;  %v1256_v9 = vrot.slane %v1248_v1, %v4481_v47  ;;  %v1283_v62 = vcombine.high %v4504_v16, %v4476_v37 }
 0x1e7   : > { %v1159_v11 = vrot.slane %v1152_v3, %v4481_v47  ;;  %v1263_v12 = vrot.slane %v1249_v6, %v4481_v47  ;;  %v1290_v13 = vrot.slane %v4504_v16, %v4478_v41  ;;  %v1334_v14 = vcombine.low %v1240_v0, %v1247_v4 }
 0x1e8   : > { %v1166_v15 = vshrl.u32 %v1110_v7, 16  ;;  %v1174_v18 = vshrl.u32 %v1111_v8, 16  ;;  %v1297_v19 = vrot.slane %v1283_v62, %v4478_v41  ;;  %v3332_v5 = vcombine.high %v1240_v0, %v1247_v4 }
 0x1e9   : > { %v1160_v20 = vcombine.low %v1151_v2, %v1159_v11  ;;  %v1161_v21 = vcombine.high %v1151_v2, %v1159_v11  ;;  %v1298_v22 = vcombine.low %v4499_v10, %v1290_v13  ;;  %v1299_v23 = vcombine.high %v4499_v10, %v1290_v13 }
 0x1ea   : > { %v1314_v37 = vcombine.low %v4507_v17, %v1297_v19  ;;  %v1315_v24 = vcombine.high %v4507_v17, %v1297_v19  ;;  %v1341_v25 = vrot.slane %v1334_v14, %v4478_v41  ;;  %v1349_v16 = vrot.slane %v3332_v5, %v4478_v41 }
 0x1eb   : > { %v1164_v26 = vpack.i.b16 %v1160_v20, %v1110_v7  ;;  %v1167_v27 = vshrl.u32 %v1160_v20, 16  ;;  %v1172_v28 = vpack.i.b16 %v1161_v21, %v1111_v8  ;;  %v1175_v29 = vshrl.u32 %v1161_v21, 16 }
 0x1ec   : > { %v1306_v30 = vrot.slane %v1298_v22, %v4481_v47  ;;  %v1313_v31 = vrot.slane %v1299_v23, %v4481_v47  ;;  %v1322_v32 = vrot.slane %v1314_v37, %v4481_v47  ;;  %v1329_v10 = vrot.slane %v1315_v24, %v4481_v47 }
 0x1ed   : > { %v1168_v33 = vpack.i.b16 %v1167_v27, %v1166_v15  ;;  %v1176_v34 = vpack.i.b16 %v1175_v29, %v1174_v18  ;;  %1452 = vst.msk [vmem:[#allocation2] sm:$0xf] %vm1451_vm3, %v1164_v26  ;;  %1454 = vst.msk [vmem:[#allocation2 + $0x8] sm:$0xf] %vm1451_vm3, %v1172_v28  ;;  %v3336_v17 = vcombine.high %v1164_v26, %v1164_v26 }
 0x1ee   : > { %v3338_v35 = vcombine.high %v1172_v28, %v1172_v28  ;;  %v1350_v36 = vcombine.low %v1256_v9, %v1263_v12  ;;  %v3333_v38 = vcombine.high %v1256_v9, %v1263_v12  ;;  %v1384_v39 = vcombine.low %v1306_v30, %v1313_v31 }
 0x1ef   : > { %1453 = vst.msk [vmem:[#allocation2 + $0x4] sm:$0xf] %vm1451_vm3, %v1168_v33  ;;  %1455 = vst.msk [vmem:[#allocation2 + $0xc] sm:$0xf] %vm1451_vm3, %v1176_v34  ;;  %v3337_v40 = vcombine.high %v1168_v33, %v1168_v33  ;;  %v3339_v42 = vcombine.high %v1176_v34, %v1176_v34  ;;  %v3334_v43 = vcombine.high %v1306_v30, %v1313_v31 }
 0x1f0   : > { %1475 = vst.msk [vmem:[#allocation2 + $0x10] sm:$0xf] %vm1451_vm3, %v3336_v17  ;;  %1477 = vst.msk [vmem:[#allocation2 + $0x18] sm:$0xf] %vm1451_vm3, %v3338_v35  ;;  %v1400_v44 = vcombine.low %v1322_v32, %v1329_v10  ;;  %v1357_v45 = vrot.slane %v1350_v36, %v4478_v41  ;;  %v1365_v46 = vrot.slane %v3333_v38, %v4478_v41 }
 0x1f1   : > { %v1366_v48 = vcombine.low %v1341_v25, %v1349_v16  ;;  %v1391_v49 = vrot.slane %v1384_v39, %v4478_v41  ;;  %1476 = vst.msk [vmem:[#allocation2 + $0x14] sm:$0xf] %vm1451_vm3, %v3337_v40  ;;  %1478 = vst.msk [vmem:[#allocation2 + $0x1c] sm:$0xf] %vm1451_vm3, %v3339_v42  ;;  %v1399_v50 = vrot.slane %v3334_v43, %v4478_v41 }
 0x1f2   : > { %v1407_v51 = vrot.slane %v1400_v44, %v4478_v41  ;;  %v3335_v52 = vcombine.high %v1322_v32, %v1329_v10  ;;  %v1374_v53 = vcombine.low %v1357_v45, %v1365_v46 }
 0x1f3   : > { %v1416_v55 = vcombine.low %v1391_v49, %v1399_v50  ;;  %v1373_v56 = vrot.slane %v1366_v48, %v4481_v47 }
 0x1f4   : > { %v1415_v54 = vrot.slane %v3335_v52, %v4478_v41  ;;  %v1381_v57 = vrot.slane %v1374_v53, %v4481_v47 }
 0x1f5   : > { %v1423_v61 = vrot.slane %v1416_v55, %v4481_v47 }
 0x1f6   : > { %v1424_v58 = vcombine.low %v1407_v51, %v1415_v54  ;;  %v1382_v59 = vcombine.low %v1373_v56, %v1381_v57  ;;  %v1383_v60 = vcombine.high %v1373_v56, %v1381_v57 }
 0x1f8   : > { %v1431_v63 = vrot.slane %v1424_v58, %v4481_v47  ;;  %v1438_v2 = vshrl.u32 %v1382_v59, 16  ;;  %v1446_v3 = vshrl.u32 %v1383_v60, 16 }
 0x1fa   : > { %v1432_v0 = vcombine.low %v1423_v61, %v1431_v63  ;;  %v1433_v1 = vcombine.high %v1423_v61, %v1431_v63 }
 0x1fc   : > { %v1436_v4 = vpack.i.b16 %v1432_v0, %v1382_v59  ;;  %v1439_v6 = vshrl.u32 %v1432_v0, 16  ;;  %v1444_v7 = vpack.i.b16 %v1433_v1, %v1383_v60  ;;  %v1447_v41 = vshrl.u32 %v1433_v1, 16 }
 0x1fe   : > { %v1440_v8 = vpack.i.b16 %v1439_v6, %v1438_v2  ;;  %v1448_v9 = vpack.i.b16 %v1447_v41, %v1446_v3  ;;  %1456 = vst.msk [vmem:[#allocation3] sm:$0xf] %vm1451_vm3, %v1436_v4  ;;  %1458 = vst.msk [vmem:[#allocation3 + $0x8] sm:$0xf] %vm1451_vm3, %v1444_v7  ;;  %v3340_v62 = vcombine.high %v1436_v4, %v1436_v4 }
 0x1ff   : > { %v3342_v11 = vcombine.high %v1444_v7, %v1444_v7 }
 0x200   : > { %1457 = vst.msk [vmem:[#allocation3 + $0x4] sm:$0xf] %vm1451_vm3, %v1440_v8  ;;  %1459 = vst.msk [vmem:[#allocation3 + $0xc] sm:$0xf] %vm1451_vm3, %v1448_v9  ;;  %v3341_v47 = vcombine.high %v1440_v8, %v1440_v8  ;;  %v3343_v12 = vcombine.high %v1448_v9, %v1448_v9 }
 0x201   : > { %1492 = vst.msk [vmem:[#allocation3 + $0x10] sm:$0xf] %vm1451_vm3, %v3340_v62  ;;  %1494 = vst.msk [vmem:[#allocation3 + $0x18] sm:$0xf] %vm1451_vm3, %v3342_v11 }
 0x202   : > { %1493 = vst.msk [vmem:[#allocation3 + $0x14] sm:$0xf] %vm1451_vm3, %v3341_v47  ;;  %1495 = vst.msk [vmem:[#allocation3 + $0x1c] sm:$0xf] %vm1451_vm3, %v3343_v12 }
 0x203 PF: > { %s5046_s12 = sld [smem:[#allocation27_spill]]  ;;  %v4121_v14 = vmov 0.0   ;;  %vm4122_vm4 = vmmov 0   ;;  %vm1547_vm5 = vcmask 523264   ;;  %v1506_v5 = vld [vmem:[%s4446_s18] sm:$0xff]  ;;  %s4123_s4 = smov 80   ;;  %v1602_v32 = vlaneseq }
 0x204   : > { %3489 = vmatprep.subr.bf16.mxu1 %v4121_v14  ;;  %3513 = vmatprep.subr.bf16.mxu0 %v4121_v14  ;;  %v1507_v20 = vpack.c.bf16 %v1506_v5, %v1506_v5  ;;  %s5047_s17 = sld [smem:[#allocation28_spill]]  ;;  %s4124_s26 = smov 112   ;;  %v1760_v26 = vld [vmem:[#allocation2] sm:$0xf]  ;;  %vm1775_vm6 = vcmask 130048   ;;  %v4128_v54 = vmov 0  }
 0x205   : > { %3497 = vmatprep.mubr.msk.bf16.mxu1 %vm4122_vm4, %v4121_v14  ;;  %3515 = vmatprep.mubr.msk.bf16.mxu0 %vm4122_vm4, %v4121_v14  ;;  %s4125_s6 = smov 96   ;;  %v1780_v27 = vsel %vm1775_vm6, %v1760_v26, 0  ;;  %v1762_v28 = vld [vmem:[#allocation2 + $0x8] sm:$0xf]  ;;  %v4126_v30 = vmov 1983009808  }
 0x206   : > { %v1872_v29 = vsel %vm1775_vm6, %v1762_v28, 0  ;;  %v1600_v31 = vunpack.c.l.s4 %v4126_v30  ;;  %v4127_v10 = vmov 1934713408   ;;  %v1603_v17 = vshrl.u32 %v1602_v32, 7  ;;  %v1763_v32 = vld [vmem:[#allocation2 + $0xc] sm:$0xf] }
 0x207   : > { %3514 = vmatpush3.bf16.xpose.msra.mxu0 %v1872_v29  ;;  %v1617_v33 = vunpack.c.l.s4 %v4127_v10  ;;  %vm1960_vm7 = vcmask 64512   ;;  %vm2028_vm8 = vcmask 1043456   ;;  %s4129_s30 = smov 32   ;;  %s4130_s27 = smov 16   ;;  %vm2817_vm9 = vcmask 261120  }
 0x208   : > { %3525 = vmatprep.subr.bf16.mxu0 %v4121_v14  ;;  %v1601_v34 = vunpack.c.0.s8 %v1600_v31  ;;  %s4131_s28 = smov 48   ;;  %vm2819_vm10 = vcmask 392192   ;;  %s5048_s9 = sld [smem:[#allocation32_spill]] }
 0x209   : > { %v3805_v13 = vld [vmem:[%s5046_s12 + $0x18] sm:$0xff]   ;;  %v3806_v15 = vld [vmem:[%s5046_s12 + $0x10] sm:$0xff]   ;;  %v3807_v18 = vld [vmem:[%s5046_s12 + $0x8] sm:$0xff]   ;;  %v1618_v35 = vunpack.c.0.s8 %v1617_v33  ;;  %s5049_s22 = sld [smem:[#allocation33_spill]] }
 0x20a   : > { %3490 = vmatpush3.bf16.msra.mxu1 %v3805_v13  ;;  %v3808_v19 = vld [vmem:[%s5046_s12] sm:$0xff]   ;;  %v4616_v36 = vsub.s32 %v1601_v34, %v1603_v17  ;;  %v1918_v34 = vsel %vm1775_vm6, %v1763_v32, 0  ;;  %s5050_s14 = sld [smem:[#allocation34_spill]] }
 0x20b   : > { %3491 = vmatprep.subr.bf16.mxu1 %v4121_v14  ;;  %v3344_v21 = vld [vmem:[%s5047_s17] ss:$0 sm:$0xff]  ;;  %v4619_v42 = vsub.s32 %v1618_v35, %v1603_v17 }
 0x20e   : > { %3492 = vmatpush3.bf16.msra.mxu1 %v3806_v15 }
 0x20f   : > { %3493 = vmatprep.subr.bf16.mxu1 %v4121_v14 }
 0x212   : > { %3494 = vmatpush3.bf16.msra.mxu1 %v3807_v18 }
 0x213   : > { %3495 = vmatprep.subr.bf16.mxu1 %v4121_v14 }
 0x216   : > { %3496 = vmatpush3.bf16.msra.mxu1 %v3808_v19 }
 0x217   : > { %3501 = vmatprep.subr.bf16.mxu1 %v4121_v14 }
 0x219   : > { %3498 = vmatmul.mubr.msk.bf16.vlgmr.msra.gmra.mxu1 %vm1547_vm5, %v1507_v20 }
 0x21a   : > { %3503 = vmatprep.mubr.msk.bf16.mxu1 %vm4122_vm4, %v4121_v14  ;;  %3502 = vmatpush3.bf16.xpose.msra.mxu1 %v1780_v27 }
 0x21b   : > { %3507 = vmatprep.subr.bf16.mxu1 %v4121_v14 }
 0x2d9   : > { %v1585_v22 = vpop.f32.mrf.mxu1 }
 0x2da   : > { %v1586_v23 = vadd.f32 %v3344_v21, %v1585_v22 }
 0x2db   : > { %v3499_v37 = vpop.f32.mrf.mxu1 }
 0x2dc   : > { %v1591_v24 = vpack.c.bf16 %v1586_v23, %v1586_v23 }
 0x2dd   : > { %v1588_v25 = vpop.f32.mrf.mxu1 }
 0x2de   : > { %1597 = vrot.lane.b32.xlu1 %v1591_v24, %s4123_s4  ;;  %1593 = vrot.lane.b32.xlu0 %v1591_v24, %s4124_s26  ;;  %v1605_v50 = vrot.slane %v1591_v24, %v4616_v36  ;;  %v1761_v25 = vld [vmem:[#allocation2 + $0x4] sm:$0xf]  ;;  %s5051_s26 = sld [smem:[#allocation37_spill]] }
 0x2df   : > { %v3500_v16 = vpop.f32.mrf.mxu1  ;;  %v1826_v27 = vsel %vm1775_vm6, %v1761_v25, 0 }
 0x2e2   : > { %1595 = vrot.lane.b32.xlu0 %v1591_v24, %s4125_s6  ;;  %s4132_s6 = smov [#allocation13]  }
 0x350   : > { %v1598_v38 = vpop.permute.xlu1 %1597  ;;  %v1594_v39 = vpop.permute.xlu0 %1593 }
 0x351   : > { %v1647_v40 = vrot.slane %v1598_v38, %v4616_v36  ;;  %v1639_v43 = vrot.slane %v1594_v39, %v4616_v36  ;;  %v3350_v39 = vld [vmem:[#allocation4] ss:$0 sm:$0xff] }
 0x353   : > { %v1648_v44 = vcombine.low %v1639_v43, %v1647_v40  ;;  %v1649_v45 = vcombine.high %v1639_v43, %v1647_v40 }
 0x354   : > { %v1596_v46 = vpop.permute.xlu0 %1595 }
 0x355   : > { %v1656_v48 = vrot.slane %v1648_v44, %v4619_v42  ;;  %v1613_v49 = vrot.slane %v1596_v46, %v4616_v36  ;;  %v1663_v51 = vrot.slane %v1649_v45, %v4619_v42 }
 0x357   : > { %v1614_v52 = vcombine.low %v1605_v50, %v1613_v49  ;;  %v1615_v53 = vcombine.high %v1605_v50, %v1613_v49  ;;  %v1664_v55 = vcombine.high %v1656_v48, %v4128_v54  ;;  %v1665_v58 = vcombine.high %v1663_v51, %v4128_v54 }
 0x358   : > { %v1671_v59 = vshrl.u32 %v1656_v48, 16  ;;  %v1687_v2 = vshrl.u32 %v1663_v51, 16 }
 0x359   : > { %v1622_v56 = vrot.slane %v1614_v52, %v4619_v42  ;;  %v1629_v57 = vrot.slane %v1615_v53, %v4619_v42  ;;  %v1679_v1 = vshrl.u32 %v1664_v55, 16  ;;  %v1695_v9 = vshrl.u32 %v1665_v58, 16 }
 0x35b   : > { %v1630_v60 = vcombine.high %v1622_v56, %v4128_v54  ;;  %v1631_v61 = vcombine.high %v1629_v57, %v4128_v54  ;;  %v1668_v63 = vpack.i.b16 %v1656_v48, %v1622_v56  ;;  %v1670_v0 = vshrl.u32 %v1622_v56, 16 }
 0x35c   : > { %v1684_v3 = vpack.i.b16 %v1663_v51, %v1629_v57  ;;  %v1686_v4 = vshrl.u32 %v1629_v57, 16 }
 0x35d   : > { %v1672_v6 = vpack.i.b16 %v1671_v59, %v1670_v0  ;;  %v1676_v7 = vpack.i.b16 %v1664_v55, %v1630_v60  ;;  %v1678_v41 = vshrl.u32 %v1630_v60, 16  ;;  %v1692_v8 = vpack.i.b16 %v1665_v58, %v1631_v61 }
 0x35e   : > { %v1688_v62 = vpack.i.b16 %v1687_v2, %v1686_v4  ;;  %v1694_v11 = vshrl.u32 %v1631_v61, 16  ;;  %v1698_v47 = vcombine.low %v1668_v63, %v1684_v3  ;;  %v1764_v4 = vld [vmem:[#allocation3] sm:$0xf] }
 0x35f   : > { %v1680_v12 = vpack.i.b16 %v1679_v1, %v1678_v41  ;;  %v1706_v13 = vcombine.low %v1676_v7, %v1692_v8  ;;  %v1765_v7 = vld [vmem:[#allocation3 + $0x4] sm:$0xf] }
 0x360   : > { %v1696_v15 = vpack.i.b16 %v1695_v9, %v1694_v11  ;;  %v1723_v18 = vcombine.low %v1672_v6, %v1688_v62  ;;  %v1705_v19 = vrot.slane %v1698_v47, %v4616_v36  ;;  %v2030_v6 = vsel %vm2028_vm8, %v1764_v4, 0 }
 0x361   : > { %v1713_v5 = vrot.slane %v1706_v13, %v4616_v36  ;;  %v2076_v41 = vsel %vm2028_vm8, %v1765_v7, 0 }
 0x362   : > { %v1731_v20 = vcombine.low %v1680_v12, %v1696_v15  ;;  %v1730_v22 = vrot.slane %v1723_v18, %v4616_v36 }
 0x363   : > { %v1714_v21 = vcombine.low %v1705_v19, %v1713_v5 }
 0x364   : > { %v1738_v23 = vrot.slane %v1731_v20, %v4616_v36 }
 0x365   : > { %v1721_v24 = vrot.slane %v1714_v21, %v4619_v42 }
 0x366   : > { %v1739_v37 = vcombine.low %v1730_v22, %v1738_v23  ;;  %v1766_v23 = vld [vmem:[#allocation3 + $0x8] sm:$0xf] }
 0x367   : > { %v1722_v28 = vcombine.high %v1721_v24, %v4128_v54  ;;  %v1751_v10 = vshrl.u32 %v1721_v24, 16 }
 0x368   : > { %v1746_v16 = vrot.slane %v1739_v37, %v4619_v42 }
 0x369   : > { %v1757_v35 = vshrl.u32 %v1722_v28, 16 }
 0x36a   : > { %v4634_v26 = vpack.i.b16 %v1746_v16, %v1721_v24  ;;  %v1747_v29 = vcombine.high %v1746_v16, %v4128_v54  ;;  %v1752_v31 = vshrl.u32 %v1746_v16, 16 }
 0x36c   : > { %3504 = vmatmul.mubr.msk.bf16.vlgmr.msra.gmra.mxu1 %vm1775_vm6, %v4634_v26  ;;  %v4639_v30 = vpack.i.b16 %v1747_v29, %v1722_v28  ;;  %v4648_v33 = vpack.i.b16 %v1752_v31, %v1751_v10  ;;  %v1758_v17 = vshrl.u32 %v1747_v29, 16  ;;  %v1767_v28 = vld [vmem:[#allocation3 + $0xc] sm:$0xf]  ;;  %v2215_v10 = vld [vmem:[#allocation2 + $0x10] sm:$0xf] }
 0x36d   : > { %3508 = vmatpush3.bf16.xpose.msra.mxu1 %v1826_v27  ;;  %3509 = vmatprep.mubr.msk.bf16.mxu1 %vm4122_vm4, %v4121_v14  ;;  %v2122_v27 = vsel %vm2028_vm8, %v1766_v23, 0  ;;  %v2168_v32 = vsel %vm2028_vm8, %v1767_v28, 0 }
 0x36e   : > { %3516 = vmatmul.mubr.msk.bf16.vlgmr.msra.gmra.mxu0 %vm1775_vm6, %v4639_v30  ;;  %3519 = vmatprep.subr.bf16.mxu1 %v4121_v14  ;;  %v4656_v38 = vpack.i.b16 %v1758_v17, %v1757_v35  ;;  %v2233_v35 = vsel %vm1775_vm6, %v2215_v10, 0 }
 0x36f   : > { %3527 = vmatprep.mubr.msk.bf16.mxu0 %vm4122_vm4, %v4121_v14  ;;  %3526 = vmatpush3.bf16.msra.mxu0 %v2030_v6 }
 0x370   : > { %3537 = vmatprep.subr.bf16.mxu0 %v4121_v14 }
 0x374   : > { %3510 = vmatmul.mubr.msk.bf16.vlgmr.msra.gmra.mxu1 %vm1775_vm6, %v4648_v33 }
 0x375   : > { %3520 = vmatpush3.bf16.xpose.msra.mxu1 %v1918_v34  ;;  %3521 = vmatprep.mubr.msk.bf16.mxu1 %vm4122_vm4, %v4121_v14 }
 0x376   : > { %3531 = vmatprep.subr.bf16.mxu1 %v4121_v14 }
 0x37c   : > { %3522 = vmatmul.mubr.msk.bf16.vlgmr.msra.gmra.mxu1 %vm1775_vm6, %v4656_v38 }
 0x37d   : > { %3533 = vmatprep.mubr.msk.bf16.mxu1 %vm4122_vm4, %v4121_v14  ;;  %3532 = vmatpush3.bf16.msra.mxu1 %v2076_v41 }
 0x37e   : > { %3543 = vmatprep.subr.bf16.mxu1 %v4121_v14 }
 0x42c   : > { %v1816_v40 = vpop.f32.mrf.mxu1 }
 0x42d   : > { %v1817_v43 = vadd.f32 %v3350_v39, %v1816_v40 }
 0x42e   : > { %v3505_v44 = vpop.f32.mrf.mxu1  ;;  %v1908_v45 = vpop.f32.mrf.mxu0 }
 0x42f   : > { %v1961_v46 = vsel %vm1960_vm7, %v1817_v43, -inf  ;;  %v1909_v56 = vadd.f32 %v3350_v39, %v1908_v45  ;;  %v2217_v45 = vld [vmem:[#allocation2 + $0x18] sm:$0xf] }
 0x430   : > { %v3517_v48 = vpop.f32.mrf.mxu0  ;;  %1962 = vmax.xlane.f32.xlu1 %v1961_v46  ;;  %v1819_v49 = vpop.f32.mrf.mxu1  ;;  %v2319_v46 = vsel %vm1775_vm6, %v2217_v45, 0 }
 0x431   : > { %v1967_v60 = vsel %vm1960_vm7, %v1909_v56, -inf  ;;  %v2218_v48 = vld [vmem:[#allocation2 + $0x1c] sm:$0xf] }
 0x432   : > { %v3506_v50 = vpop.f32.mrf.mxu1  ;;  %v1911_v51 = vpop.f32.mrf.mxu0  ;;  %v2362_v49 = vsel %vm1775_vm6, %v2218_v48, 0 }
 0x434   : > { %v1862_v52 = vpop.f32.mrf.mxu1  ;;  %v3518_v53 = vpop.f32.mrf.mxu0 }
 0x435   : > { %v1863_v54 = vadd.f32 %v3350_v39, %v1862_v52 }
 0x436   : > { %v3511_v55 = vpop.f32.mrf.mxu1 }
 0x437   : > { %v1964_v57 = vsel %vm1960_vm7, %v1863_v54, -inf }
 0x438   : > { %1965 = vmax.xlane.f32.xlu0 %v1964_v57  ;;  %v1865_v58 = vpop.f32.mrf.mxu1 }
 0x43a   : > { %v3512_v59 = vpop.f32.mrf.mxu1 }
 0x43c   : > { %1968 = vmax.xlane.f32.xlu0 %v1967_v60  ;;  %v1954_v61 = vpop.f32.mrf.mxu1  ;;  %v3359_v60 = vld [vmem:[#allocation4 + $0x1] ss:$0 sm:$0xff] }
 0x43d   : > { %v1955_v63 = vadd.f32 %v3350_v39, %v1954_v61  ;;  %v2216_v39 = vld [vmem:[#allocation2 + $0x14] sm:$0xf] }
 0x43e   : > { %v3523_v0 = vpop.f32.mrf.mxu1  ;;  %v2276_v44 = vsel %vm1775_vm6, %v2216_v39, 0  ;;  %v2221_v39 = vld [vmem:[#allocation3 + $0x14] sm:$0xf] }
 0x43f   : > { %v1970_v1 = vsel %vm1960_vm7, %v1955_v63, -inf }
 0x440   : > { %1971 = vmax.xlane.f32.xlu1 %v1970_v1  ;;  %v1957_v2 = vpop.f32.mrf.mxu1 }
 0x442   : > { %v3524_v3 = vpop.f32.mrf.mxu1 }
 0x4b9   : > { %v1963_v8 = vpop.xlane.xlu1 %1962 }
 0x4ba   : > { %v4670_v9 = vmax.f32 %v1963_v8, -1e+30 }
 0x4bc   : > { %v1989_v62 = vsub.f32 %v1817_v43, %v4670_v9 }
 0x4be   : > { %v1993_v11 = vmul.f32 1.442695, %v1989_v62 }
 0x4c0   : > { %3825 = vpow2.f32 %v1993_v11 }
 0x4c1   : > { %v1966_v47 = vpop.xlane.xlu0 %1965 }
 0x4c2   : > { %v4673_v12 = vmax.f32 %v1966_v47, -1e+30 }
 0x4c4   : > { %v1990_v13 = vsub.f32 %v1863_v54, %v4673_v12 }
 0x4c5   : > { %v1969_v15 = vpop.xlane.xlu0 %1968 }
 0x4c6   : > { %v1995_v18 = vmul.f32 1.442695, %v1990_v13  ;;  %v4676_v19 = vmax.f32 %v1969_v15, -1e+30 }
 0x4c8   : > { %3827 = vpow2.f32 %v1995_v18  ;;  %v1991_v5 = vsub.f32 %v1909_v56, %v4676_v19 }
 0x4c9   : > { %v1972_v20 = vpop.xlane.xlu1 %1971 }
 0x4ca   : > { %v1997_v21 = vmul.f32 1.442695, %v1991_v5  ;;  %v4679_v22 = vmax.f32 %v1972_v20, -1e+30 }
 0x4cc   : > { %3829 = vpow2.f32 %v1997_v21  ;;  %v1992_v37 = vsub.f32 %v1955_v63, %v4679_v22 }
 0x4cd   : > { %v4682_v24 = vpop.eup %3825 }
 0x4ce   : > { %v1999_v25 = vmul.f32 1.442695, %v1992_v37  ;;  %v2021_v16 = vpack.c.bf16 %v4682_v24, %v4682_v24 }
 0x4d0   : > { %3831 = vpow2.f32 %v1999_v25  ;;  %3528 = vmatmul.mubr.msk.bf16.vlgmr.msra.gmra.mxu0 %vm1960_vm7, %v2021_v16  ;;  %v2005_v16 = vsel %vm1960_vm7, %v4682_v24, 0.0  ;;  %v2220_v24 = vld [vmem:[#allocation3 + $0x10] sm:$0xf] }
 0x4d1   : > { %3538 = vmatpush3.bf16.msra.mxu0 %v2122_v27  ;;  %3539 = vmatprep.mubr.msk.bf16.mxu0 %vm4122_vm4, %v4121_v14 }
 0x4d2   : > { %3549 = vmatprep.subr.bf16.mxu0 %v4121_v14 }
 0x4d5   : > { %v4691_v29 = vpop.eup %3827 }
 0x4d6   : > { %v2022_v31 = vpack.c.bf16 %v4691_v29, %v4691_v29  ;;  %v2008_v10 = vsel %vm1960_vm7, %v4691_v29, 0.0  ;;  %v1977_v29 = vsub.f32 -1e+30, %v4670_v9 }
 0x4d8   : > { %3534 = vmatmul.mubr.msk.bf16.vlgmr.msra.gmra.mxu1 %vm1960_vm7, %v2022_v31 }
 0x4d9   : > { %v4697_v34 = vpop.eup %3829  ;;  %3544 = vmatpush3.bf16.msra.mxu1 %v2168_v32  ;;  %3545 = vmatprep.mubr.msk.bf16.mxu1 %vm4122_vm4, %v4121_v14 }
 0x4da   : > { %v2023_v17 = vpack.c.bf16 %v4697_v34, %v4697_v34  ;;  %3555 = vmatprep.subr.bf16.mxu1 %v4121_v14  ;;  %v2011_v32 = vsel %vm1960_vm7, %v4697_v34, 0.0  ;;  %v1978_v34 = vsub.f32 -1e+30, %v4673_v12 }
 0x4dc   : > { %3540 = vmatmul.mubr.msk.bf16.vlgmr.msra.gmra.mxu0 %vm1960_vm7, %v2023_v17  ;;  %v1983_v45 = vmul.f32 1.442695, %v1978_v34 }
 0x4dd   : > { %v4706_v40 = vpop.eup %3831  ;;  %3550 = vmatpush3.bf16.xpose.msra.mxu0 %v2233_v35  ;;  %3551 = vmatprep.mubr.msk.bf16.mxu0 %vm4122_vm4, %v4121_v14  ;;  %v2476_v35 = vsel %vm2028_vm8, %v2220_v24, 0 }
 0x4de   : > { %v2024_v43 = vpack.c.bf16 %v4706_v40, %v4706_v40  ;;  %3561 = vmatprep.subr.bf16.mxu0 %v4121_v14  ;;  %v2014_v17 = vsel %vm1960_vm7, %v4706_v40, 0.0  ;;  %v1979_v40 = vsub.f32 -1e+30, %v4676_v19 }
 0x4e0   : > { %3546 = vmatmul.mubr.msk.bf16.vlgmr.msra.gmra.mxu1 %vm1960_vm7, %v2024_v43  ;;  %v2522_v43 = vsel %vm2028_vm8, %v2221_v39, 0 }
 0x4e1   : > { %3556 = vmatpush3.bf16.xpose.msra.mxu1 %v2276_v44  ;;  %3557 = vmatprep.mubr.msk.bf16.mxu1 %vm4122_vm4, %v4121_v14  ;;  %v1981_v44 = vmul.f32 1.442695, %v1977_v29 }
 0x4e2   : > { %3567 = vmatprep.subr.bf16.mxu1 %v4121_v14 }
 0x4e3   : > { %3833 = vpow2.f32 %v1981_v44 }
 0x4e4   : > { %3552 = vmatmul.mubr.msk.bf16.vlgmr.msra.gmra.mxu0 %vm1775_vm6, %v4634_v26  ;;  %3835 = vpow2.f32 %v1983_v45 }
 0x4e5   : > { %3562 = vmatpush3.bf16.xpose.msra.mxu0 %v2319_v46  ;;  %3563 = vmatprep.mubr.msk.bf16.mxu0 %vm4122_vm4, %v4121_v14 }
 0x4e6   : > { %3573 = vmatprep.subr.bf16.mxu0 %v4121_v14 }
 0x4e8   : > { %3558 = vmatmul.mubr.msk.bf16.vlgmr.msra.gmra.mxu1 %vm1775_vm6, %v4648_v33 }
 0x4e9   : > { %3568 = vmatpush3.bf16.xpose.msra.mxu1 %v2362_v49  ;;  %3569 = vmatprep.mubr.msk.bf16.mxu1 %vm4122_vm4, %v4121_v14  ;;  %v1985_v49 = vmul.f32 1.442695, %v1979_v40 }
 0x4ea   : > { %3579 = vmatprep.subr.bf16.mxu1 %v4121_v14 }
 0x4eb   : > { %3837 = vpow2.f32 %v1985_v49 }
 0x4ec   : > { %3564 = vmatmul.mubr.msk.bf16.vlgmr.msra.gmra.mxu0 %vm1775_vm6, %v4639_v30 }
 0x4ed   : > { %3575 = vmatprep.mubr.msk.bf16.mxu0 %vm4122_vm4, %v4121_v14  ;;  %3574 = vmatpush3.bf16.msra.mxu0 %v2476_v35 }
 0x4ee   : > { %3585 = vmatprep.subr.bf16.mxu0 %v4121_v14 }
 0x4f0   : > { %3570 = vmatmul.mubr.msk.bf16.vlgmr.msra.gmra.mxu1 %vm1775_vm6, %v4656_v38 }
 0x4f1   : > { %3581 = vmatprep.mubr.msk.bf16.mxu1 %vm4122_vm4, %v4121_v14  ;;  %3580 = vmatpush3.bf16.msra.mxu1 %v2522_v43 }
 0x4f2   : > { %3591 = vmatprep.subr.bf16.mxu1 %v4121_v14 }
 0x590   : > { %v4738_v26 = vpop.f32.mrf.mxu0 }
 0x592   : > { %v3529_v33 = vpop.f32.mrf.mxu0 }
 0x594   : > { %v2069_v50 = vpop.f32.mrf.mxu0 }
 0x596   : > { %v3530_v51 = vpop.f32.mrf.mxu0 }
 0x598   : > { %v4740_v52 = vpop.f32.mrf.mxu1 }
 0x59a   : > { %v3535_v53 = vpop.f32.mrf.mxu1 }
 0x59b   : > { %v1980_v53 = vsub.f32 -1e+30, %v4679_v22 }
 0x59c   : > { %v2115_v54 = vpop.f32.mrf.mxu1  ;;  %v4742_v55 = vpop.f32.mrf.mxu0 }
 0x59e   : > { %v3536_v30 = vpop.f32.mrf.mxu1  ;;  %v3541_v56 = vpop.f32.mrf.mxu0 }
 0x5a0   : > { %v2161_v57 = vpop.f32.mrf.mxu0  ;;  %v4744_v58 = vpop.f32.mrf.mxu1 }
 0x5a2   : > { %v3542_v38 = vpop.f32.mrf.mxu0  ;;  %v3547_v59 = vpop.f32.mrf.mxu1 }
 0x5a4   : > { %v2207_v61 = vpop.f32.mrf.mxu1  ;;  %v2269_v63 = vpop.f32.mrf.mxu0 }
 0x5a5   : > { %v2270_v0 = vadd.f32 %v3359_v60, %v2269_v63 }
 0x5a6   : > { %v3548_v1 = vpop.f32.mrf.mxu1  ;;  %v3553_v2 = vpop.f32.mrf.mxu0 }
 0x5a7   : > { %v2404_v3 = vsel %vm1960_vm7, %v2270_v0, -inf }
 0x5a8   : > { %2405 = vmax.xlane.f32.xlu0 %v2404_v3  ;;  %v2272_v4 = vpop.f32.mrf.mxu0  ;;  %v2312_v6 = vpop.f32.mrf.mxu1 }
 0x5a9   : > { %v2313_v7 = vadd.f32 %v3359_v60, %v2312_v6  ;;  %v3834_v6 = vpop.eup %3833 }
 0x5aa   : > { %v3554_v41 = vpop.f32.mrf.mxu0  ;;  %v3559_v8 = vpop.f32.mrf.mxu1 }
 0x5ab   : > { %v2407_v62 = vsel %vm1960_vm7, %v2313_v7, -inf  ;;  %v3836_v8 = vpop.eup %3835 }
 0x5ac   : > { %v2355_v11 = vpop.f32.mrf.mxu0  ;;  %2408 = vmax.xlane.f32.xlu1 %v2407_v62  ;;  %v2315_v47 = vpop.f32.mrf.mxu1  ;;  %v4782_v62 = vmul.f32 0.0, %v3834_v6 }
 0x5ad   : > { %v4748_v13 = vadd.f32 %v3359_v60, %v2355_v11  ;;  %v3838_v47 = vpop.eup %3837 }
 0x5ae   : > { %v3560_v15 = vpop.f32.mrf.mxu1  ;;  %v3565_v18 = vpop.f32.mrf.mxu0 }
 0x5af   : > { %v2410_v5 = vsel %vm1960_vm7, %v4748_v13, -inf  ;;  %v2222_v15 = vld [vmem:[#allocation3 + $0x18] sm:$0xf] }
 0x5b0   : > { %2411 = vmax.xlane.f32.xlu0 %v2410_v5  ;;  %v2358_v20 = vpop.f32.mrf.mxu0  ;;  %v2398_v21 = vpop.f32.mrf.mxu1 }
 0x5b1   : > { %v4752_v23 = vadd.f32 %v3359_v60, %v2398_v21  ;;  %v1987_v60 = vmul.f32 1.442695, %v1980_v53  ;;  %v2002_v20 = vmul.f32 0.0, %v3836_v8 }
 0x5b2   : > { %v3566_v37 = vpop.f32.mrf.mxu0  ;;  %v3571_v25 = vpop.f32.mrf.mxu1 }
 0x5b3   : > { %v2413_v27 = vsel %vm1960_vm7, %v4752_v23, -inf  ;;  %v2568_v37 = vsel %vm2028_vm8, %v2222_v15, 0  ;;  %v2211_v25 = vadd.f32 %v4740_v52, %v2002_v20 }
 0x5b4   : > { %2006 = vadd.xlane.f32.xlu0 %v2005_v16  ;;  %2414 = vmax.xlane.f32.xlu1 %v2413_v27  ;;  %v2401_v28 = vpop.f32.mrf.mxu1  ;;  %v2223_v16 = vld [vmem:[#allocation3 + $0x1c] sm:$0xf] }
 0x5b5   : > { %v2003_v28 = vmul.f32 0.0, %v3838_v47  ;;  %v2614_v24 = vsel %vm2028_vm8, %v2223_v16, 0 }
 0x5b6   : > { %v3572_v31 = vpop.f32.mrf.mxu1 }
 0x5b7   : > { %v2212_v52 = vadd.f32 %v4742_v55, %v2003_v28 }
 0x5b8   : > { %2012 = vadd.xlane.f32.xlu0 %v2011_v32  ;;  %2009 = vadd.xlane.f32.xlu1 %v2008_v10 }
 0x5bc   : > { %2015 = vadd.xlane.f32.xlu1 %v2014_v17 }
 0x631   : > { %v2406_v46 = vpop.xlane.xlu0 %2405 }
 0x632   : > { %v2416_v48 = vmax.f32 %v4670_v9, %v2406_v46 }
 0x634   : > { %v2420_v33 = vsub.f32 %v4670_v9, %v2416_v48  ;;  %v2432_v50 = vsub.f32 %v2270_v0, %v2416_v48 }
 0x635   : > { %v2409_v51 = vpop.xlane.xlu1 %2408 }
 0x636   : > { %v2424_v54 = vmul.f32 1.442695, %v2420_v33  ;;  %v2436_v30 = vmul.f32 1.442695, %v2432_v50  ;;  %v2417_v56 = vmax.f32 %v4673_v12, %v2409_v51  ;;  %v3809_v33 = vld [vmem:[#allocation10 + $0x18] sm:$0xff]  }
 0x638   : > { %3839 = vpow2.f32 %v2424_v54  ;;  %v2421_v57 = vsub.f32 %v4673_v12, %v2417_v56  ;;  %v2433_v38 = vsub.f32 %v2313_v7, %v2417_v56 }
 0x639   : > { %3841 = vpow2.f32 %v2436_v30  ;;  %v2412_v59 = vpop.xlane.xlu0 %2411 }
 0x63a   : > { %v2426_v61 = vmul.f32 1.442695, %v2421_v57  ;;  %v2438_v63 = vmul.f32 1.442695, %v2433_v38  ;;  %v2418_v9 = vmax.f32 %v4676_v19, %v2412_v59 }
 0x63c   : > { %3843 = vpow2.f32 %v2426_v61  ;;  %v2422_v0 = vsub.f32 %v4676_v19, %v2418_v9  ;;  %v2434_v1 = vsub.f32 %v4748_v13, %v2418_v9  ;;  %v2210_v13 = vadd.f32 %v4738_v26, %v4782_v62 }
 0x63d   : > { %3845 = vpow2.f32 %v2438_v63  ;;  %v2415_v2 = vpop.xlane.xlu1 %2414  ;;  %v2007_v50 = vpop.xlane.xlu0 %2006 }
 0x63e   : > { %3847 = vpow2.f32 %v1987_v60  ;;  %v2428_v3 = vmul.f32 1.442695, %v2422_v0  ;;  %v2440_v4 = vmul.f32 1.442695, %v2434_v1  ;;  %v2419_v12 = vmax.f32 %v4679_v22, %v2415_v2 }
 0x63f   : > { %v2017_v54 = vadd.f32 %v2007_v50, %v4782_v62 }
 0x640   : > { %3849 = vpow2.f32 %v2428_v3  ;;  %v2423_v7 = vsub.f32 %v4679_v22, %v2419_v12  ;;  %v2435_v41 = vsub.f32 %v4752_v23, %v2419_v12 }
 0x641   : > { %3851 = vpow2.f32 %v2440_v4  ;;  %v2010_v51 = vpop.xlane.xlu1 %2009  ;;  %v2013_v53 = vpop.xlane.xlu0 %2012 }
 0x642   : > { %v2430_v19 = vmul.f32 1.442695, %v2423_v7  ;;  %v2442_v11 = vmul.f32 1.442695, %v2435_v41  ;;  %v2018_v38 = vadd.f32 %v2010_v51, %v2002_v20  ;;  %v2019_v63 = vadd.f32 %v2013_v53, %v2003_v28 }
 0x644   : > { %3853 = vpow2.f32 %v2430_v19 }
 0x645   : > { %v3840_v18 = vpop.eup %3839  ;;  %3855 = vpow2.f32 %v2442_v11  ;;  %v2016_v30 = vpop.xlane.xlu1 %2015 }
 0x646   : > { %v3842_v5 = vpop.eup %3841  ;;  %v4786_v21 = vmul.f32 %v3840_v18, %v2210_v13  ;;  %v2444_v57 = vmul.f32 %v3840_v18, %v2017_v54 }
 0x647   : > { %v2448_v22 = vsel %vm1960_vm7, %v3842_v5, 0.0  ;;  %v2468_v23 = vpack.c.bf16 %v3842_v5, %v3842_v5 }
 0x648   : > { %2449 = vadd.xlane.f32.xlu0 %v2448_v22 }
 0x649   : > { %v3844_v27 = vpop.eup %3843  ;;  %3576 = vmatmul.mubr.msk.bf16.vlgmr.msra.gmra.mxu0 %vm1960_vm7, %v2468_v23 }
 0x64a   : > { %v3846_v26 = vpop.eup %3845  ;;  %3586 = vmatpush3.bf16.msra.mxu0 %v2568_v37  ;;  %3587 = vmatprep.mubr.msk.bf16.mxu0 %vm4122_vm4, %v4121_v14  ;;  %v4794_v31 = vmul.f32 %v3844_v27, %v2211_v25  ;;  %v2445_v61 = vmul.f32 %v3844_v27, %v2018_v38 }
 0x64b   : > { %v3848_v32 = vpop.eup %3847  ;;  %v2451_v10 = vsel %vm1960_vm7, %v3846_v26, 0.0  ;;  %v2469_v17 = vpack.c.bf16 %v3846_v26, %v3846_v26  ;;  %3597 = vmatprep.subr.bf16.mxu0 %v4121_v14 }
 0x64c   : > { %2452 = vadd.xlane.f32.xlu1 %v2451_v10  ;;  %v2004_v43 = vmul.f32 0.0, %v3848_v32 }
 0x64d   : > { %v3850_v35 = vpop.eup %3849  ;;  %3582 = vmatmul.mubr.msk.bf16.vlgmr.msra.gmra.mxu1 %vm1960_vm7, %v2469_v17 }
 0x64e   : > { %v3852_v39 = vpop.eup %3851  ;;  %3592 = vmatpush3.bf16.msra.mxu1 %v2614_v24  ;;  %3593 = vmatprep.mubr.msk.bf16.mxu1 %vm4122_vm4, %v4121_v14  ;;  %v2466_v29 = vmul.f32 %v3850_v35, %v2212_v52  ;;  %v2213_v40 = vadd.f32 %v4744_v58, %v2004_v43  ;;  %v3810_v58 = vld [vmem:[#allocation10 + $0x10] sm:$0xff]   ;;  %v2446_v1 = vmul.f32 %v3850_v35, %v2019_v63 }
 0x64f   : > { %v2454_v34 = vsel %vm1960_vm7, %v3852_v39, 0.0  ;;  %v2470_v44 = vpack.c.bf16 %v3852_v39, %v3852_v39  ;;  %3609 = vmatprep.subr.bf16.mxu1 %v4121_v14  ;;  %v2020_v2 = vadd.f32 %v2016_v30, %v2004_v43  ;;  %v3812_v30 = vld [vmem:[#allocation10] sm:$0xff]  }
 0x650   : > { %2455 = vadd.xlane.f32.xlu0 %v2454_v34 }
 0x651   : > { %v3854_v55 = vpop.eup %3853  ;;  %3588 = vmatmul.mubr.msk.bf16.vlgmr.msra.gmra.mxu0 %vm1960_vm7, %v2470_v44 }
 0x652   : > { %v3856_v45 = vpop.eup %3855  ;;  %v2467_v46 = vmul.f32 %v3854_v55, %v2213_v40  ;;  %3605 = vmatprep.mubr.msk.bf16.mxu0 %vm4122_vm4, %v4121_v14  ;;  %3598 = vmatpush3.bf16.msra.mxu0 %v3809_v33  ;;  %v2447_v12 = vmul.f32 %v3854_v55, %v2020_v2 }
 0x653   : > { %v2457_v48 = vsel %vm1960_vm7, %v3856_v45, 0.0  ;;  %v2471_v49 = vpack.c.bf16 %v3856_v45, %v3856_v45  ;;  %3599 = vmatprep.subr.bf16.mxu0 %v4121_v14 }
 0x654   : > { %2458 = vadd.xlane.f32.xlu1 %v2457_v48  ;;  %v3811_v48 = vld [vmem:[#allocation10 + $0x8] sm:$0xff]  }
 0x655   : > { %3594 = vmatmul.mubr.msk.bf16.vlgmr.msra.gmra.mxu1 %vm1960_vm7, %v2471_v49 }
 0x656   : > { %3617 = vmatprep.mubr.msk.bf16.mxu1 %vm4122_vm4, %v4121_v14  ;;  %3600 = vmatpush3.bf16.msra.mxu0 %v3810_v58 }
 0x657   : > { %3601 = vmatprep.subr.bf16.mxu0 %v4121_v14 }
 0x65a   : > { %3602 = vmatpush3.bf16.msra.mxu0 %v3811_v48 }
 0x65b   : > { %3603 = vmatprep.subr.bf16.mxu0 %v4121_v14 }
 0x65e   : > { %3604 = vmatpush3.bf16.msra.mxu0 %v3812_v30  ;;  %v3824_v30 = vld [vmem:[%s5051_s26] sm:$0xff]  }
 0x65f   : > { %3621 = vmatprep.subr.bf16.mxu0 %v4121_v14 }
 0x6d1   : > { %v2450_v56 = vpop.xlane.xlu0 %2449 }
 0x6d2   : > { %v2460_v59 = vadd.f32 %v2450_v56, %v2444_v57 }
 0x6d4   : > { %3857 = vrcp.f32 %v2460_v59 }
 0x6d5   : > { %v2453_v60 = vpop.xlane.xlu1 %2452 }
 0x6d6   : > { %v2461_v9 = vadd.f32 %v2453_v60, %v2445_v61 }
 0x6d8   : > { %3859 = vrcp.f32 %v2461_v9 }
 0x6d9   : > { %v2456_v0 = vpop.xlane.xlu0 %2455 }
 0x6da   : > { %v2462_v3 = vadd.f32 %v2456_v0, %v2446_v1 }
 0x6dc   : > { %3861 = vrcp.f32 %v2462_v3 }
 0x6dd   : > { %v2459_v4 = vpop.xlane.xlu1 %2458 }
 0x6de   : > { %v2463_v6 = vadd.f32 %v2459_v4, %v2447_v12 }
 0x6e0   : > { %3863 = vrcp.f32 %v2463_v6 }
 0x6e1   : > { %v3858_v8 = vpop.eup %3857 }
 0x6e5   : > { %v3860_v15 = vpop.eup %3859 }
 0x6e9   : > { %v3862_v25 = vpop.eup %3861 }
 0x6ed   : > { %v3864_v24 = vpop.eup %3863 }
 0x709   : > { %v2512_v7 = vpop.f32.mrf.mxu0 }
 0x70a   : > { %v2656_v41 = vadd.f32 %v2512_v7, %v4786_v21 }
 0x70b   : > { %v3577_v62 = vpop.f32.mrf.mxu0 }
 0x70c   : > { %v2664_v19 = vmul.f32 %v3858_v8, %v2656_v41 }
 0x70d   : > { %v2515_v11 = vpop.f32.mrf.mxu0  ;;  %v2558_v47 = vpop.f32.mrf.mxu1 }
 0x70e   : > { %v2657_v13 = vadd.f32 %v2558_v47, %v4794_v31 }
 0x70f   : > { %v3578_v18 = vpop.f32.mrf.mxu0  ;;  %v3583_v5 = vpop.f32.mrf.mxu1 }
 0x710   : > { %v2665_v20 = vmul.f32 %v3860_v15, %v2657_v13  ;;  %v3370_v5 = vld [vmem:[%s5048_s9] ss:$0 sm:$0xff]  ;;  %s5053_s9 = sld [smem:[#allocation38_spill]] }
 0x711   : > { %v2561_v22 = vpop.f32.mrf.mxu1  ;;  %v2604_v23 = vpop.f32.mrf.mxu0 }
 0x712   : > { %v2658_v37 = vadd.f32 %v2604_v23, %v2466_v29 }
 0x713   : > { %v3584_v16 = vpop.f32.mrf.mxu1  ;;  %v3589_v27 = vpop.f32.mrf.mxu0 }
 0x714   : > { %v2666_v26 = vmul.f32 %v3862_v25, %v2658_v37  ;;  %v3869_v37 = vld [vmem:[%s4446_s18] sm:$0xff]  ;;  %s5054_s18 = sld [smem:[#allocation20_spill]] }
 0x715   : > { %v2607_v28 = vpop.f32.mrf.mxu0  ;;  %v2650_v21 = vpop.f32.mrf.mxu1 }
 0x716   : > { %v2668_v32 = vcombine.low %v2664_v19, %v2666_v26  ;;  %v2669_v10 = vcombine.high %v2664_v19, %v2666_v26  ;;  %v2659_v17 = vadd.f32 %v2650_v21, %v2467_v46 }
 0x717   : > { %v3590_v52 = vpop.f32.mrf.mxu0  ;;  %v3595_v35 = vpop.f32.mrf.mxu1 }
 0x718   : > { %v2667_v31 = vmul.f32 %v3864_v24, %v2659_v17  ;;  %v2676_v40 = vrot.slane %v2668_v32, %v4616_v36  ;;  %v2683_v29 = vrot.slane %v2669_v10, %v4616_v36  ;;  %v3813_v24 = vld [vmem:[#allocation11 + $0x18] sm:$0xff]   ;;  %v3814_v52 = vld [vmem:[#allocation11 + $0x10] sm:$0xff]   ;;  %v3815_v35 = vld [vmem:[#allocation11 + $0x8] sm:$0xff]  }
 0x719   : > { %v2653_v39 = vpop.f32.mrf.mxu1  ;;  %3610 = vmatpush3.bf16.msra.mxu1 %v3813_v24 }
 0x71a   : > { %v2684_v43 = vcombine.low %v2665_v20, %v2667_v31  ;;  %v2685_v34 = vcombine.high %v2665_v20, %v2667_v31  ;;  %3611 = vmatprep.subr.bf16.mxu1 %v4121_v14  ;;  %v3816_v31 = vld [vmem:[#allocation11] sm:$0xff]   ;;  %p5057_p4 = scmp.ne.s32.totalorder %s5054_s18, 0 }
 0x71b   : > { %v3596_v44 = vpop.f32.mrf.mxu1 }
 0x71c   : > { %v2692_v55 = vrot.slane %v2684_v43, %v4616_v36  ;;  %v2699_v45 = vrot.slane %v2685_v34, %v4616_v36 }
 0x71d   : > { %3612 = vmatpush3.bf16.msra.mxu1 %v3814_v52 }
 0x71e   : > { %v2700_v49 = vcombine.low %v2676_v40, %v2692_v55  ;;  %v2701_v33 = vcombine.high %v2676_v40, %v2692_v55  ;;  %v2716_v46 = vcombine.low %v2683_v29, %v2699_v45  ;;  %v2717_v58 = vcombine.high %v2683_v29, %v2699_v45  ;;  %3613 = vmatprep.subr.bf16.mxu1 %v4121_v14  ;;  %v3376_v40 = vld [vmem:[%s5049_s22] ss:$0 sm:$0xff]  ;;  %s3157_s22 = sshll.u32 %s712_s16, 4  ;;  %s4907_s22 = int_to_ptr.vmem [resolvable:$true] %s3157_s22 }
 0x71f   : > { %v3377_v55 = vld [vmem:[%s5050_s14] ss:$0 sm:$0xff]  ;;  %s5055_s14 = sld [smem:[#allocation39_spill]]  ;;  %s3976_s4 = scalar_lea.vmem %s4907_s22, 128 }
 0x720   : > { %v2708_v50 = vrot.slane %v2700_v49, %v4619_v42  ;;  %v2715_v51 = vrot.slane %v2701_v33, %v4619_v42  ;;  %v2724_v53 = vrot.slane %v2716_v46, %v4619_v42  ;;  %v2731_v54 = vrot.slane %v2717_v58, %v4619_v42  ;;  %v3817_v33 = vld [vmem:[%s5051_s26 + $0x38] sm:$0xff]   ;;  %v3818_v46 = vld [vmem:[%s5051_s26 + $0x30] sm:$0xff]   ;;  %v3819_v58 = vld [vmem:[%s5051_s26 + $0x28] sm:$0xff]   ;;  %p3977_p11 = scmp.ne.s32.totalorder %s4907_s22, %s3976_s4 }
 0x721   : > { %3614 = vmatpush3.bf16.msra.mxu1 %v3815_v35 }
 0x722   : > { %v2736_v56 = vcombine.low %v2708_v50, %v2715_v51  ;;  %v3368_v57 = vcombine.high %v2708_v50, %v2715_v51  ;;  %v2752_v38 = vcombine.low %v2724_v53, %v2731_v54  ;;  %v3369_v59 = vcombine.high %v2724_v53, %v2731_v54  ;;  %3615 = vmatprep.subr.bf16.mxu1 %v4121_v14  ;;  %v3820_v50 = vld [vmem:[%s5051_s26 + $0x20] sm:$0xff]   ;;  %v3821_v51 = vld [vmem:[%s5051_s26 + $0x18] sm:$0xff]   ;;  %v3822_v53 = vld [vmem:[%s5051_s26 + $0x10] sm:$0xff]   ;;  %p3978_p13 = pnand %p3977_p11, %p5057_p4 }
 0x723   : > { %v3823_v54 = vld [vmem:[%s5051_s26 + $0x8] sm:$0xff]  }
 0x724   : > { %v2743_v60 = vrot.slane %v2736_v56, %v4616_v36  ;;  %v2751_v61 = vrot.slane %v3368_v57, %v4616_v36  ;;  %v2759_v63 = vrot.slane %v2752_v38, %v4616_v36  ;;  %v2767_v9 = vrot.slane %v3369_v59, %v4616_v36  ;;  %p3979_p8 = pneg %p3978_p13 }
 0x725   : > { %3616 = vmatpush3.bf16.msra.mxu1 %v3816_v31 }
 0x726   : > { %v2769_v0 = vcombine.high %v2743_v60, %v2751_v61  ;;  %v2785_v1 = vcombine.high %v2759_v63, %v2767_v9  ;;  %v2768_v2 = vcombine.low %v2743_v60, %v2751_v61  ;;  %v2784_v3 = vcombine.low %v2759_v63, %v2767_v9 }
 0x728   : > { %v2783_v4 = vrot.slane %v2769_v0, %v4619_v42  ;;  %v2799_v12 = vrot.slane %v2785_v1, %v4619_v42  ;;  %v2776_v6 = vrot.slane %v2768_v2, %v4619_v42  ;;  %v2792_v7 = vrot.slane %v2784_v3, %v4619_v42 }
 0x72a   : > { %v2802_v41 = vcombine.low %v2783_v4, %v2799_v12  ;;  %v2801_v8 = vcombine.high %v2776_v6, %v2792_v7  ;;  %v2803_v62 = vcombine.high %v2783_v4, %v2799_v12  ;;  %v2800_v19 = vcombine.low %v2776_v6, %v2792_v7  ;;  %v3384_v7 = vld [vmem:[%s5053_s9] ss:$0 sm:$0xff] }
 0x72c   : > { %2809 = vrot.lane.b32.xlu1 %v2802_v41, %s4129_s30  ;;  %2805 = vrot.lane.b32.xlu0 %v2801_v8, %s4130_s27  ;;  %s5052_s30 = sld [smem:[#allocation36_spill]]  ;;  %s3394_s27 = sshll.u32 %s4092_s2, 1 }
 0x730   : > { %2813 = vrot.lane.b32.xlu1 %v2803_v62, %s4131_s28  ;;  %s3153_s28 = sadd.s32 %s4088_s21, %s3394_s27  ;;  %s5056_s21 = sand.u32 1, %s4068_s0  }
 0x731   : > { %s3395_s15 = sshll.u32 %s3153_s28, 7  ;;  %s3142_s2 = scalar_lea.sflag [#allocation7], %s5056_s21 }
 0x732   : > { %v3378_v56 = vld [vmem:[%s5052_s30] ss:$0 sm:$0xff]  ;;  %s4905_s17 = scalar_lea.hbm %s5055_s14, %s3395_s15  ;;  %s3980_s30 = sshll.u32 %s4132_s6, 4  ;;  %s3981_s30 = int_to_ptr.vmem [resolvable:$false] %s3980_s30 }
 0x733   : > { %s3982_s27 = scalar_lea.vmem %s3981_s30, 256  ;;  %p3983_p10 = scmp.lt.s32.totalorder %s4907_s22, %s3981_s30 }
 0x734   : > { %p3984_p9 = scmp.lt.s32.totalorder %s3982_s27, %s3976_s4 }
 0x736   : > { %p3985_p0 = por %p3984_p9, %p3983_p10 }
 0x738   : > { %p3986_p12 = pnand %p3985_p0, %p3979_p8 }
 0x79e   : > { %v2810_v36 = vpop.permute.xlu1 %2809  ;;  %v2806_v11 = vpop.permute.xlu0 %2805 }
 0x79f   : > { %v2816_v47 = vsel %vm1775_vm6, %v2800_v19, %v2806_v11 }
 0x7a0   : > { %v2818_v15 = vsel %vm2817_vm9, %v2816_v47, %v2810_v36 }
 0x7a2   : > { %v2814_v13 = vpop.permute.xlu1 %2813 }
 0x7a3   : > { %v2820_v42 = vsel %vm2819_vm10, %v2818_v15, %v2814_v13 }
 0x7a4   : > { %v2821_v18 = vpack.c.bf16 %v2820_v42, %v2820_v42 }
 0x7a6   : > { %3606 = vmatmul.mubr.msk.bf16.vlgmr.msra.gmra.mxu0 %vm1547_vm5, %v2821_v18 }
 0x7a7   : > { %3637 = vmatprep.mubr.msk.bf16.mxu0 %vm4122_vm4, %v4121_v14  ;;  %3622 = vmatpush3.bf16.msra.mxu0 %v3817_v33 }
 0x7a8   : > { %3623 = vmatprep.subr.bf16.mxu0 %v4121_v14 }
 0x7ab   : > { %3624 = vmatpush3.bf16.msra.mxu0 %v3818_v46 }
 0x7ac   : > { %3625 = vmatprep.subr.bf16.mxu0 %v4121_v14 }
 0x7af   : > { %3626 = vmatpush3.bf16.msra.mxu0 %v3819_v58 }
 0x7b0   : > { %3627 = vmatprep.subr.bf16.mxu0 %v4121_v14 }
 0x7b3   : > { %3628 = vmatpush3.bf16.msra.mxu0 %v3820_v50 }
 0x7b4   : > { %3629 = vmatprep.subr.bf16.mxu0 %v4121_v14 }
 0x7b7   : > { %3630 = vmatpush3.bf16.msra.mxu0 %v3821_v51 }
 0x7b8   : > { %3631 = vmatprep.subr.bf16.mxu0 %v4121_v14 }
 0x7bb   : > { %3632 = vmatpush3.bf16.msra.mxu0 %v3822_v53 }
 0x7bc   : > { %3633 = vmatprep.subr.bf16.mxu0 %v4121_v14 }
 0x7bf   : > { %3634 = vmatpush3.bf16.msra.mxu0 %v3823_v54 }
 0x7c0   : > { %3635 = vmatprep.subr.bf16.mxu0 %v4121_v14 }
 0x7c3   : > { %3636 = vmatpush3.bf16.msra.mxu0 %v3824_v30 }
 0x866   : > { %v2898_v20 = vpop.f32.mrf.mxu0 }
 0x867   : > { %v2899_v22 = vadd.f32 %v3370_v5, %v2898_v20 }
 0x868   : > { %v3607_v23 = vpop.f32.mrf.mxu0 }
 0x869   : > { %v4844_v25 = vadd.f32 %v3869_v37, %v2899_v22 }
 0x86a   : > { %v2901_v16 = vpop.f32.mrf.mxu0 }
 0x86b   : > { %v2907_v27 = vsel %vm1547_vm5, %v4844_v25, 0.0 }
 0x86c   : > { %2908 = vadd.xlane.f32.xlu0 %v2907_v27  ;;  %v3608_v26 = vpop.f32.mrf.mxu0 }
 0x8f5   : > { %v2909_v28 = vpop.xlane.xlu0 %2908 }
 0x8f6   : > { %v2911_v21 = vmul.f32 0.015625, %v2909_v28 }
 0x8f8   : > { %v2912_v32 = vsub.f32 %v4844_v25, %v2911_v21 }
 0x8fa   : > { %v2913_v10 = vmul.f32 %v2912_v32, %v2912_v32 }
 0x8fc   : > { %v2914_v17 = vsel %vm1547_vm5, %v2913_v10, 0.0 }
 0x8fd   : > { %2915 = vadd.xlane.f32.xlu1 %v2914_v17 }
 0x986   : > { %v2916_v39 = vpop.xlane.xlu1 %2915 }
 0x987   : > { %v2917_v43 = vmul.f32 0.015625, %v2916_v39 }
 0x989   : > { %v2918_v34 = vadd.f32 1e-06, %v2917_v43 }
 0x98b   : > { %3865 = vrsqrt.f32 %v2918_v34 }
 0x998   : > { %v3866_v44 = vpop.eup %3865 }
 0x999   : > { %v2920_v29 = vmul.f32 %v3866_v44, %v2912_v32 }
 0x99b   : > { %v2927_v45 = vmul.f32 %v3376_v40, %v2920_v29 }
 0x99d   : > { %v2934_v48 = vadd.f32 %v3377_v55, %v2927_v45 }
 0x99f   : > { %v2935_v49 = vpack.c.bf16 %v2934_v48, %v2934_v48 }
 0x9a1   : > { %3618 = vmatmul.mubr.msk.bf16.vlgmr.msra.gmra.mxu1 %vm1547_vm5, %v2935_v49 }
 0xa61   : > { %v3012_v57 = vpop.f32.mrf.mxu1 }
 0xa62   : > { %v3013_v38 = vadd.f32 %v3378_v56, %v3012_v57 }
 0xa63   : > { %v3619_v59 = vpop.f32.mrf.mxu1 }
 0xa64   : > { %v3019_v60 = vmul.f32 0.044715, %v3013_v38  ;;  %v3018_v3 = vmul.f32 0.5, %v3013_v38 }
 0xa65   : > { %v3015_v61 = vpop.f32.mrf.mxu1 }
 0xa66   : > { %v3020_v63 = vmul.f32 %v3019_v60, %v3013_v38 }
 0xa67   : > { %v3620_v9 = vpop.f32.mrf.mxu1 }
 0xa68   : > { %v3021_v0 = vmul.f32 %v3020_v63, %v3013_v38 }
 0xa6a   : > { %v3022_v1 = vadd.f32 %v3021_v0, %v3013_v38 }
 0xa6c   : > { %v3023_v2 = vmul.f32 0.7978846, %v3022_v1 }
 0xa6e   : > { %3867 = vtanh.f32 %v3023_v2 }
 0xa7b   : > { %v3868_v14 = vpop.eup %3867 }
 0xa7c   : > { %v3025_v4 = vadd.f32 1.0, %v3868_v14 }
 0xa7e   : > { %v3026_v12 = vmul.f32 %v3025_v4, %v3018_v3 }
 0xa80   : > { %v3027_v6 = vpack.c.bf16 %v3026_v12, %v3026_v12 }
 0xa82   : > { %3638 = vmatmul.mubr.bf16.vlgmr.msra.gmra.mxu0 %v3027_v6 }
 0xb42   : > { %v3133_v41 = vpop.f32.mrf.mxu0 }
 0xb43   : > { %v3134_v8 = vadd.f32 %v3384_v7, %v3133_v41 }
 0xb44   : > { %v3639_v62 = vpop.f32.mrf.mxu0 }
 0xb45   : > { %v3139_v19 = vadd.f32 %v3134_v8, %v4844_v25 }
 0xb46   : > { %v3136_v36 = vpop.f32.mrf.mxu0 }
 0xb47   : > { %3140 = vst.msk [vmem:[%s712_s16] sm:$0xff] %vm1547_vm5, %v3139_v19 }
 0xb48   : > { %v3640_v11 = vpop.f32.mrf.mxu0 }
 0xb49   : > { %3989 = shalt.err (!%p3986_p12)
}
 0xb4a   : > { %s3990_s10 = scalar_lea.hbm %s4905_s17, 128  ;;  %s3994_s13 = scalar_lea.hbm %s5055_s14, 512 }
 0xb4b   : > { %p3991_p2 = scmp.ne.s32.totalorder %s4905_s17, %s3990_s10  ;;  %p3995_p3 = scmp.lt.s32.totalorder %s4905_s17, %s5055_s14 }
 0xb4c   : > { %p3996_p7 = scmp.lt.s32.totalorder %s3994_s13, %s3990_s10 }
 0xb4d   : > { %p3992_p5 = pnand %p3991_p2, %p5057_p4 }
 0xb4e   : > { %p3997_p1 = por %p3996_p7, %p3995_p3 }
 0xb4f   : > { %p3993_p6 = pneg %p3992_p5 }
 0xb51   : > { %p3998_p11 = pnand %p3997_p1, %p3993_p6 }
 0xb53   : > { %4001 = shalt.err (!%p3998_p11)
}
 0xb54   : > { %3655 = dma.vmem_to_hbm [thread:$0]  (%p5057_p4), %s4907_s22, 128, %s4905_s17, %s3142_s2  }
 0xb55 PF: > { %s5058_s15 = sld [smem:[#allocation18_spill]]  ;;  %p3682_p13 = scmp.ge.s32.totalorder %s4104_s24, 2 }
 0xb56   : > { %s5059_s5 = sld [smem:[#allocation21_spill]] }
 0xb5b   : > { %s3169_s19 = sand.u32 1, %s5058_s15  }
 0xb5c   : > { %p5060_p8 = scmp.ne.s32.totalorder %s5059_s5, 0  ;;  %s3170_s21 = scalar_lea.sflag [#allocation7], %s3169_s19 }
 0xb5e   : > { %p3672_p10 = pnand %p3682_p13, %p5060_p8 }
 0xb60   : > { %p3673_p9 = pneg %p3672_p10 }
 0xb62   : > { %4059 = dma.done.wait (%p3673_p9), %s3170_s21, 128  }
 0xb63   : > { %4061 = vsyncadd (%p3673_p9), %s3170_s21, 4294967168  ;;  %s37_s24 = sadd.s32 1, %s4104_s24   ;;  %s5061_s21 = sld [smem:[#allocation19_spill]] }
 0xb64   : > { %p34_p0 = scmp.ge.s32.totalorder %s37_s24, 6   ;;  %s5062_s22 = sld [smem:[#allocation22_spill]] }
 0xb65   : > { %s5063_s18 = sld [smem:[#allocation23_spill]]  ;;  %s5064_s28 = smov %s4068_s0 }
 0xb66   : > { %s5065_s0 = smov %s4072_s29  ;;  %s5066_s29 = smov %s4389_s11 }
 0xb67   : > { %s5067_s30 = smov %s4080_s20  ;;  %s5068_s20 = smov %s4084_s1 }
 0xb68   : > { %s5069_s1 = smov %s4384_s3  ;;  %s5070_s2 = smov %s4100_s23 }
 0xb69   :  { %36 = sbr.rel (!%p34_p0) target bundleno = 28 (0x1c), region = 169 }
 0xb6b   : > { %s5071_s23 = smov %s5063_s18 }
 0xb6e   :  { %3175 = vsyncpa [#allocation6], 1 }
 0xb6f   :  { %3177 = vsyncpa [#allocation6 + $0x1], 1 }
 0xb70   :  { %3178 = vsyncpa [#allocation9], 1 }
 0xb71   :  { %3179 = vsyncpa [#allocation12], 1 }
 0xb72   :  { %3180 = vsyncpa [#allocation7], 1 }
 0xb73   :  { %3182 = vsyncpa [#allocation7 + $0x1], 1 }

</bundles_post_ra>
